<compile_context>
chip_gen: v6e
topology: v6e:2x2x1
jax: 0.10.0
libtpu: 0.0.40
codegen_flags: <defaults>
</compile_context>

<pallas_src>
import jax
import jax.numpy as jnp
from jax import lax
from jax.experimental import pallas as pl
from jax.experimental.pallas import tpu as pltpu


def make_kernel(H, W, C1, C2, NB, KPAD):
    WP = W + 4                    # padded row stride
    PADLEN = (H + 5) * WP         # per-image flat length (padded image + slack row)
    COLS = NB * PADLEN            # matmul N dimension (all NB images)
    XCOLS = COLS + 5 * WP         # padded-image scratch length (covers max tap offset)
    KROWS = 25 * C1               # tap rows of the im2col matrix; row KROWS = bias ones

    def kernel(x_ref, w_ref, o_ref, xp_ref, col_ref):
        # x_ref  : (NB, C1, H*W)   lane-dense flattened input (NCHW rows)
        # w_ref  : (C2, KPAD)      fused tap weights + bias column, zero K-padded
        # o_ref  : (NB, C2, H*W)   lane-dense flattened output
        # xp_ref : (C1, XCOLS)     zero-padded flat image(s), row stride WP
        # col_ref: (KPAD, COLS)    im2col matrix (+ ones bias row + zero pad rows)

        # 1) Zero the padded-image scratch every step (halos and inter-image gaps
        #    must be zero; do NOT gate on program_id==0 — unsafe under megacore).
        #    At this size one bulk fill is cheaper than per-cell halo stores.
        xp_ref[...] = jnp.zeros((C1, XCOLS), jnp.float32)

        # 2) Scatter interior rows: xp[c, n*PADLEN + (h+2)*WP + 2 + w] = x[n,c,h,w]
        for n in range(NB):
            for h in range(H):
                dst = n * PADLEN + (h + 2) * WP + 2
                xp_ref[:, dst:dst + W] = x_ref[n, :, h * W:(h + 1) * W]

        # 3) Build im2col: one contiguous lane-shifted copy per tap.
        for kh in range(5):
            for kw in range(5):
                t = kh * 5 + kw
                off = kh * WP + kw
                col_ref[t * C1:(t + 1) * C1, :] = xp_ref[:, off:off + COLS]
        # Bias row (ones) + zero the K-padding rows (never leave stale VMEM in K).
        col_ref[KROWS:KROWS + 1, :] = jnp.ones((1, COLS), jnp.float32)
        if KPAD > KROWS + 1:
            col_ref[KROWS + 1:KPAD, :] = jnp.zeros((KPAD - KROWS - 1, COLS),
                                                   jnp.float32)

        # 4) The whole fused conv (+bias) as one MXU matmul: (C2,KPAD)@(KPAD,COLS).
        acc = jnp.dot(w_ref[...], col_ref[...], preferred_element_type=jnp.float32)

        # 5) Store only the valid output pixels (drops halo/slack columns here, so
        #    the wrapper performs no post-crop HBM pass).
        for n in range(NB):
            for h in range(H):
                src = n * PADLEN + h * WP
                o_ref[n, :, h * W:(h + 1) * W] = acc[:, src:src + W].astype(o_ref.dtype)

    return kernel


def _fuse_weights(w1, b1, w2, b2, w3, b3, kpad):
    """Fold conv3 (1x1) into effective 5x5 tap weights + bias (exact: module is linear),
    then flatten to a lane-dense (C2, kpad) matrix whose column (kh*5+kw)*C1 + c holds
    tap (kh,kw) / input channel c, followed by one bias column and zero K-padding."""
    C1, C2 = w1.shape[2], w1.shape[3]
    w3a = w3[:C1]                 # (C1, C2)  identity (x) path
    w3b = w3[C1:C1 + C2]          # (C2, C2)  conv1 path
    w3c = w3[C1 + C2:]            # (C2, C2)  conv2 path

    w_eff = jnp.einsum('hwcd,de->hwce', w2, w3c)                          # 5x5 path
    w_eff = w_eff.at[1:4, 1:4].add(jnp.einsum('hwcd,de->hwce', w1, w3b))  # 3x3 path
    w_eff = w_eff.at[2, 2].add(w3a)                                       # identity
    b_eff = b1 @ w3b + b2 @ w3c + b3                                      # (C2,)

    w2d = jnp.transpose(w_eff, (3, 0, 1, 2)).reshape(C2, 25 * C1)   # (C2, 25*C1)
    w2d = jnp.concatenate([w2d, b_eff[:, None]], axis=1)            # bias column
    w2d = jnp.pad(w2d, ((0, 0), (0, kpad - w2d.shape[1])))          # K -> kpad
    return w2d


def abc_forward(x, w1, b1, w2, b2, w3, b3):
    """x: (N, C1, H, W) float32 (NCHW). Conv weights HWIO. Returns (N, C2, H, W)."""
    N, C1, H, W = x.shape
    C2 = w1.shape[-1]
    assert w3.shape[0] == C1 + 2 * C2, "conv3 input channels must equal c1 + 2*c2"

    NB = N                                    # images per grid step (all fit in VMEM here)
    KPAD = 128 * pl.cdiv(25 * C1 + 1, 128)    # pad contraction to a full MXU K pass
    WP = W + 4
    PADLEN = (H + 5) * WP
    COLS = NB * PADLEN
    XCOLS = COLS + 5 * WP

    w2d = _fuse_weights(w1, b1, w2, b2, w3, b3, KPAD)
    x_flat = x.reshape(N, C1, H * W)          # free: NCHW is contiguous

    kernel = make_kernel(H, W, C1, C2, NB, KPAD)

    grid_spec = pltpu.PrefetchScalarGridSpec(
        num_scalar_prefetch=0,
        grid=(N // NB,),
        in_specs=[
            pl.BlockSpec((NB, C1, H * W), lambda g: (g, 0, 0)),
            pl.BlockSpec((C2, KPAD), lambda g: (0, 0)),
        ],
        out_specs=pl.BlockSpec((NB, C2, H * W), lambda g: (g, 0, 0)),
        scratch_shapes=[
            pltpu.VMEM((C1, XCOLS), jnp.float32),     # padded image(s)
            pltpu.VMEM((KPAD, COLS), jnp.float32),    # im2col matrix
        ],
    )

    y_flat = pl.pallas_call(
        kernel,
        out_shape=jax.ShapeDtypeStruct((N, C2, H * W), jnp.float32),
        grid_spec=grid_spec,
        compiler_params=pltpu.CompilerParams(dimension_semantics=("parallel",)),
    )(x_flat, w2d)

    return y_flat.reshape(N, C2, H, W)        # metadata-only reshape


def _reference(x, w1, b1, w2, b2, w3, b3):
    dn = ('NCHW', 'HWIO', 'NCHW')
    bc = lambda b: b[None, :, None, None]
    x1 = lax.conv_general_dilated(x, w1, (1, 1), 'SAME', dimension_numbers=dn) + bc(b1)
    x2 = lax.conv_general_dilated(x, w2, (1, 1), 'SAME', dimension_numbers=dn) + bc(b2)
    cat = jnp.concatenate([x, x1, x2], axis=1)
    w3_1x1 = w3.reshape(1, 1, w3.shape[0], w3.shape[1])
    y = lax.conv_general_dilated(cat, w3_1x1, (1, 1), 'SAME', dimension_numbers=dn)
    return y + bc(b3)


if __name__ == "__main__":
    # The torch module's conv3 expects 3*c2 input channels after cat(x, x1, x2),
    # which implicitly requires c1 == c2.
    N, H, W = 2, 16, 16
    C1 = C2 = 4

    key = jax.random.PRNGKey(0)
    kx, k1, k2, k3, kb1, kb2, kb3 = jax.random.split(key, 7)

    x = jax.random.normal(kx, (N, C1, H, W), jnp.float32)
    w1 = jax.random.normal(k1, (3, 3, C1, C2), jnp.float32) * 0.1
    b1 = jax.random.normal(kb1, (C2,), jnp.float32) * 0.1
    w2 = jax.random.normal(k2, (5, 5, C1, C2), jnp.float32) * 0.1
    b2 = jax.random.normal(kb2, (C2,), jnp.float32) * 0.1
    w3 = jax.random.normal(k3, (C1 + 2 * C2, C2), jnp.float32) * 0.1
    b3 = jax.random.normal(kb3, (C2,), jnp.float32) * 0.1

    out = abc_forward(x, w1, b1, w2, b2, w3, b3)
    out = jax.block_until_ready(out)

    ref = _reference(x, w1, b1, w2, b2, w3, b3)
    assert out.shape == (N, C2, H, W)
    assert jnp.allclose(out, ref, atol=1e-4, rtol=1e-4), "mismatch vs reference"

    print("KERNEL_OK")
</pallas_src>

<mosaic_0001>
module attributes {stable_mosaic.version = 11 : i64} {
  func.func @kernel(%arg0: i32, %arg1: memref<2x4x256xf32, #tpu.memory_space<vmem>>, %arg2: memref<4x128xf32, #tpu.memory_space<vmem>>, %arg3: memref<2x4x256xf32, #tpu.memory_space<vmem>>, %arg4: memref<4x940xf32, #tpu.memory_space<vmem>>, %arg5: memref<128x840xf32, #tpu.memory_space<vmem>>) attributes {dimension_semantics = [#tpu.dimension_semantics<parallel>], iteration_bounds = array<i64: 1>, scalar_prefetch = 0 : i64, scratch_operands = 2 : i64, tpu.core_type = #tpu.core_type<tc>, window_params = [{transform_indices = @transform_0, window_bounds = array<i64: 2, 4, 256>}, {pipeline_mode = #tpu.pipeline_mode<synchronous>, transform_indices = @transform_1, window_bounds = array<i64: 4, 128>}, {transform_indices = @transform_2, window_bounds = array<i64: 2, 4, 256>}]} {
    %cst = arith.constant 0.000000e+00 : f32
    %0 = vector.broadcast %cst : f32 to vector<4x940xf32>
    %c0 = arith.constant 0 : index
    %c0_0 = arith.constant 0 : index
    %1 = vector.load %arg4[%c0, %c0_0] : memref<4x940xf32, #tpu.memory_space<vmem>>, vector<4x940xf32>
    tpu.vector_store %arg4[%c0, %c0_0], %0 {strides = array<i32>} : memref<4x940xf32, #tpu.memory_space<vmem>>, vector<4x940xf32>,
    %c0_1 = arith.constant 0 : index
    %c0_2 = arith.constant 0 : index
    %c0_3 = arith.constant 0 : index
    %2 = vector.load %arg1[%c0_1, %c0_2, %c0_3] : memref<2x4x256xf32, #tpu.memory_space<vmem>>, vector<1x4x16xf32>
    %3 = vector.shape_cast %2 : vector<1x4x16xf32> to vector<4x16xf32>
    %c0_4 = arith.constant 0 : index
    %c42 = arith.constant 42 : index
    %4 = vector.load %arg4[%c0_4, %c42] : memref<4x940xf32, #tpu.memory_space<vmem>>, vector<4x16xf32>
    tpu.vector_store %arg4[%c0_4, %c42], %3 {strides = array<i32>} : memref<4x940xf32, #tpu.memory_space<vmem>>, vector<4x16xf32>,
    %c0_5 = arith.constant 0 : index
    %c0_6 = arith.constant 0 : index
    %c16 = arith.constant 16 : index
    %5 = vector.load %arg1[%c0_5, %c0_6, %c16] : memref<2x4x256xf32, #tpu.memory_space<vmem>>, vector<1x4x16xf32>
    %6 = vector.shape_cast %5 : vector<1x4x16xf32> to vector<4x16xf32>
    %c0_7 = arith.constant 0 : index
    %c62 = arith.constant 62 : index
    %7 = vector.load %arg4[%c0_7, %c62] : memref<4x940xf32, #tpu.memory_space<vmem>>, vector<4x16xf32>
    tpu.vector_store %arg4[%c0_7, %c62], %6 {strides = array<i32>} : memref<4x940xf32, #tpu.memory_space<vmem>>, vector<4x16xf32>,
    %c0_8 = arith.constant 0 : index
    %c0_9 = arith.constant 0 : index
    %c32 = arith.constant 32 : index
    %8 = vector.load %arg1[%c0_8, %c0_9, %c32] : memref<2x4x256xf32, #tpu.memory_space<vmem>>, vector<1x4x16xf32>
    %9 = vector.shape_cast %8 : vector<1x4x16xf32> to vector<4x16xf32>
    %c0_10 = arith.constant 0 : index
    %c82 = arith.constant 82 : index
    %10 = vector.load %arg4[%c0_10, %c82] : memref<4x940xf32, #tpu.memory_space<vmem>>, vector<4x16xf32>
    tpu.vector_store %arg4[%c0_10, %c82], %9 {strides = array<i32>} : memref<4x940xf32, #tpu.memory_space<vmem>>, vector<4x16xf32>,
    %c0_11 = arith.constant 0 : index
    %c0_12 = arith.constant 0 : index
    %c48 = arith.constant 48 : index
    %11 = vector.load %arg1[%c0_11, %c0_12, %c48] : memref<2x4x256xf32, #tpu.memory_space<vmem>>, vector<1x4x16xf32>
    %12 = vector.shape_cast %11 : vector<1x4x16xf32> to vector<4x16xf32>
    %c0_13 = arith.constant 0 : index
    %c102 = arith.constant 102 : index
    %13 = vector.load %arg4[%c0_13, %c102] : memref<4x940xf32, #tpu.memory_space<vmem>>, vector<4x16xf32>
    tpu.vector_store %arg4[%c0_13, %c102], %12 {strides = array<i32>} : memref<4x940xf32, #tpu.memory_space<vmem>>, vector<4x16xf32>,
    %c0_14 = arith.constant 0 : index
    %c0_15 = arith.constant 0 : index
    %c64 = arith.constant 64 : index
    %14 = vector.load %arg1[%c0_14, %c0_15, %c64] : memref<2x4x256xf32, #tpu.memory_space<vmem>>, vector<1x4x16xf32>
    %15 = vector.shape_cast %14 : vector<1x4x16xf32> to vector<4x16xf32>
    %c0_16 = arith.constant 0 : index
    %c122 = arith.constant 122 : index
    %16 = vector.load %arg4[%c0_16, %c122] : memref<4x940xf32, #tpu.memory_space<vmem>>, vector<4x16xf32>
    tpu.vector_store %arg4[%c0_16, %c122], %15 {strides = array<i32>} : memref<4x940xf32, #tpu.memory_space<vmem>>, vector<4x16xf32>,
    %c0_17 = arith.constant 0 : index
    %c0_18 = arith.constant 0 : index
    %c80 = arith.constant 80 : index
    %17 = vector.load %arg1[%c0_17, %c0_18, %c80] : memref<2x4x256xf32, #tpu.memory_space<vmem>>, vector<1x4x16xf32>
    %18 = vector.shape_cast %17 : vector<1x4x16xf32> to vector<4x16xf32>
    %c0_19 = arith.constant 0 : index
    %c142 = arith.constant 142 : index
    %19 = vector.load %arg4[%c0_19, %c142] : memref<4x940xf32, #tpu.memory_space<vmem>>, vector<4x16xf32>
    tpu.vector_store %arg4[%c0_19, %c142], %18 {strides = array<i32>} : memref<4x940xf32, #tpu.memory_space<vmem>>, vector<4x16xf32>,
    %c0_20 = arith.constant 0 : index
    %c0_21 = arith.constant 0 : index
    %c96 = arith.constant 96 : index
    %20 = vector.load %arg1[%c0_20, %c0_21, %c96] : memref<2x4x256xf32, #tpu.memory_space<vmem>>, vector<1x4x16xf32>
    %21 = vector.shape_cast %20 : vector<1x4x16xf32> to vector<4x16xf32>
    %c0_22 = arith.constant 0 : index
    %c162 = arith.constant 162 : index
    %22 = vector.load %arg4[%c0_22, %c162] : memref<4x940xf32, #tpu.memory_space<vmem>>, vector<4x16xf32>
    tpu.vector_store %arg4[%c0_22, %c162], %21 {strides = array<i32>} : memref<4x940xf32, #tpu.memory_space<vmem>>, vector<4x16xf32>,
    %c0_23 = arith.constant 0 : index
    %c0_24 = arith.constant 0 : index
    %c112 = arith.constant 112 : index
    %23 = vector.load %arg1[%c0_23, %c0_24, %c112] : memref<2x4x256xf32, #tpu.memory_space<vmem>>, vector<1x4x16xf32>
    %24 = vector.shape_cast %23 : vector<1x4x16xf32> to vector<4x16xf32>
    %c0_25 = arith.constant 0 : index
    %c182 = arith.constant 182 : index
    %25 = vector.load %arg4[%c0_25, %c182] : memref<4x940xf32, #tpu.memory_space<vmem>>, vector<4x16xf32>
    tpu.vector_store %arg4[%c0_25, %c182], %24 {strides = array<i32>} : memref<4x940xf32, #tpu.memory_space<vmem>>, vector<4x16xf32>,
    %c0_26 = arith.constant 0 : index
    %c0_27 = arith.constant 0 : index
    %c128 = arith.constant 128 : index
    %26 = vector.load %arg1[%c0_26, %c0_27, %c128] : memref<2x4x256xf32, #tpu.memory_space<vmem>>, vector<1x4x16xf32>
    %27 = vector.shape_cast %26 : vector<1x4x16xf32> to vector<4x16xf32>
    %c0_28 = arith.constant 0 : index
    %c202 = arith.constant 202 : index
    %28 = vector.load %arg4[%c0_28, %c202] : memref<4x940xf32, #tpu.memory_space<vmem>>, vector<4x16xf32>
    tpu.vector_store %arg4[%c0_28, %c202], %27 {strides = array<i32>} : memref<4x940xf32, #tpu.memory_space<vmem>>, vector<4x16xf32>,
    %c0_29 = arith.constant 0 : index
    %c0_30 = arith.constant 0 : index
    %c144 = arith.constant 144 : index
    %29 = vector.load %arg1[%c0_29, %c0_30, %c144] : memref<2x4x256xf32, #tpu.memory_space<vmem>>, vector<1x4x16xf32>
    %30 = vector.shape_cast %29 : vector<1x4x16xf32> to vector<4x16xf32>
    %c0_31 = arith.constant 0 : index
    %c222 = arith.constant 222 : index
    %31 = vector.load %arg4[%c0_31, %c222] : memref<4x940xf32, #tpu.memory_space<vmem>>, vector<4x16xf32>
    tpu.vector_store %arg4[%c0_31, %c222], %30 {strides = array<i32>} : memref<4x940xf32, #tpu.memory_space<vmem>>, vector<4x16xf32>,
    %c0_32 = arith.constant 0 : index
    %c0_33 = arith.constant 0 : index
    %c160 = arith.constant 160 : index
    %32 = vector.load %arg1[%c0_32, %c0_33, %c160] : memref<2x4x256xf32, #tpu.memory_space<vmem>>, vector<1x4x16xf32>
    %33 = vector.shape_cast %32 : vector<1x4x16xf32> to vector<4x16xf32>
    %c0_34 = arith.constant 0 : index
    %c242 = arith.constant 242 : index
    %34 = vector.load %arg4[%c0_34, %c242] : memref<4x940xf32, #tpu.memory_space<vmem>>, vector<4x16xf32>
    tpu.vector_store %arg4[%c0_34, %c242], %33 {strides = array<i32>} : memref<4x940xf32, #tpu.memory_space<vmem>>, vector<4x16xf32>,
    %c0_35 = arith.constant 0 : index
    %c0_36 = arith.constant 0 : index
    %c176 = arith.constant 176 : index
    %35 = vector.load %arg1[%c0_35, %c0_36, %c176] : memref<2x4x256xf32, #tpu.memory_space<vmem>>, vector<1x4x16xf32>
    %36 = vector.shape_cast %35 : vector<1x4x16xf32> to vector<4x16xf32>
    %c0_37 = arith.constant 0 : index
    %c262 = arith.constant 262 : index
    %37 = vector.load %arg4[%c0_37, %c262] : memref<4x940xf32, #tpu.memory_space<vmem>>, vector<4x16xf32>
    tpu.vector_store %arg4[%c0_37, %c262], %36 {strides = array<i32>} : memref<4x940xf32, #tpu.memory_space<vmem>>, vector<4x16xf32>,
    %c0_38 = arith.constant 0 : index
    %c0_39 = arith.constant 0 : index
    %c192 = arith.constant 192 : index
    %38 = vector.load %arg1[%c0_38, %c0_39, %c192] : memref<2x4x256xf32, #tpu.memory_space<vmem>>, vector<1x4x16xf32>
    %39 = vector.shape_cast %38 : vector<1x4x16xf32> to vector<4x16xf32>
    %c0_40 = arith.constant 0 : index
    %c282 = arith.constant 282 : index
    %40 = vector.load %arg4[%c0_40, %c282] : memref<4x940xf32, #tpu.memory_space<vmem>>, vector<4x16xf32>
    tpu.vector_store %arg4[%c0_40, %c282], %39 {strides = array<i32>} : memref<4x940xf32, #tpu.memory_space<vmem>>, vector<4x16xf32>,
    %c0_41 = arith.constant 0 : index
    %c0_42 = arith.constant 0 : index
    %c208 = arith.constant 208 : index
    %41 = vector.load %arg1[%c0_41, %c0_42, %c208] : memref<2x4x256xf32, #tpu.memory_space<vmem>>, vector<1x4x16xf32>
    %42 = vector.shape_cast %41 : vector<1x4x16xf32> to vector<4x16xf32>
    %c0_43 = arith.constant 0 : index
    %c302 = arith.constant 302 : index
    %43 = vector.load %arg4[%c0_43, %c302] : memref<4x940xf32, #tpu.memory_space<vmem>>, vector<4x16xf32>
    tpu.vector_store %arg4[%c0_43, %c302], %42 {strides = array<i32>} : memref<4x940xf32, #tpu.memory_space<vmem>>, vector<4x16xf32>,
    %c0_44 = arith.constant 0 : index
    %c0_45 = arith.constant 0 : index
    %c224 = arith.constant 224 : index
    %44 = vector.load %arg1[%c0_44, %c0_45, %c224] : memref<2x4x256xf32, #tpu.memory_space<vmem>>, vector<1x4x16xf32>
    %45 = vector.shape_cast %44 : vector<1x4x16xf32> to vector<4x16xf32>
    %c0_46 = arith.constant 0 : index
    %c322 = arith.constant 322 : index
    %46 = vector.load %arg4[%c0_46, %c322] : memref<4x940xf32, #tpu.memory_space<vmem>>, vector<4x16xf32>
    tpu.vector_store %arg4[%c0_46, %c322], %45 {strides = array<i32>} : memref<4x940xf32, #tpu.memory_space<vmem>>, vector<4x16xf32>,
    %c0_47 = arith.constant 0 : index
    %c0_48 = arith.constant 0 : index
    %c240 = arith.constant 240 : index
    %47 = vector.load %arg1[%c0_47, %c0_48, %c240] : memref<2x4x256xf32, #tpu.memory_space<vmem>>, vector<1x4x16xf32>
    %48 = vector.shape_cast %47 : vector<1x4x16xf32> to vector<4x16xf32>
    %c0_49 = arith.constant 0 : index
    %c342 = arith.constant 342 : index
    %49 = vector.load %arg4[%c0_49, %c342] : memref<4x940xf32, #tpu.memory_space<vmem>>, vector<4x16xf32>
    tpu.vector_store %arg4[%c0_49, %c342], %48 {strides = array<i32>} : memref<4x940xf32, #tpu.memory_space<vmem>>, vector<4x16xf32>,
    %c1 = arith.constant 1 : index
    %c0_50 = arith.constant 0 : index
    %c0_51 = arith.constant 0 : index
    %50 = vector.load %arg1[%c1, %c0_50, %c0_51] : memref<2x4x256xf32, #tpu.memory_space<vmem>>, vector<1x4x16xf32>
    %51 = vector.shape_cast %50 : vector<1x4x16xf32> to vector<4x16xf32>
    %c0_52 = arith.constant 0 : index
    %c462 = arith.constant 462 : index
    %52 = vector.load %arg4[%c0_52, %c462] : memref<4x940xf32, #tpu.memory_space<vmem>>, vector<4x16xf32>
    tpu.vector_store %arg4[%c0_52, %c462], %51 {strides = array<i32>} : memref<4x940xf32, #tpu.memory_space<vmem>>, vector<4x16xf32>,
    %c1_53 = arith.constant 1 : index
    %c0_54 = arith.constant 0 : index
    %c16_55 = arith.constant 16 : index
    %53 = vector.load %arg1[%c1_53, %c0_54, %c16_55] : memref<2x4x256xf32, #tpu.memory_space<vmem>>, vector<1x4x16xf32>
    %54 = vector.shape_cast %53 : vector<1x4x16xf32> to vector<4x16xf32>
    %c0_56 = arith.constant 0 : index
    %c482 = arith.constant 482 : index
    %55 = vector.load %arg4[%c0_56, %c482] : memref<4x940xf32, #tpu.memory_space<vmem>>, vector<4x16xf32>
    tpu.vector_store %arg4[%c0_56, %c482], %54 {strides = array<i32>} : memref<4x940xf32, #tpu.memory_space<vmem>>, vector<4x16xf32>,
    %c1_57 = arith.constant 1 : index
    %c0_58 = arith.constant 0 : index
    %c32_59 = arith.constant 32 : index
    %56 = vector.load %arg1[%c1_57, %c0_58, %c32_59] : memref<2x4x256xf32, #tpu.memory_space<vmem>>, vector<1x4x16xf32>
    %57 = vector.shape_cast %56 : vector<1x4x16xf32> to vector<4x16xf32>
    %c0_60 = arith.constant 0 : index
    %c502 = arith.constant 502 : index
    %58 = vector.load %arg4[%c0_60, %c502] : memref<4x940xf32, #tpu.memory_space<vmem>>, vector<4x16xf32>
    tpu.vector_store %arg4[%c0_60, %c502], %57 {strides = array<i32>} : memref<4x940xf32, #tpu.memory_space<vmem>>, vector<4x16xf32>,
    %c1_61 = arith.constant 1 : index
    %c0_62 = arith.constant 0 : index
    %c48_63 = arith.constant 48 : index
    %59 = vector.load %arg1[%c1_61, %c0_62, %c48_63] : memref<2x4x256xf32, #tpu.memory_space<vmem>>, vector<1x4x16xf32>
    %60 = vector.shape_cast %59 : vector<1x4x16xf32> to vector<4x16xf32>
    %c0_64 = arith.constant 0 : index
    %c522 = arith.constant 522 : index
    %61 = vector.load %arg4[%c0_64, %c522] : memref<4x940xf32, #tpu.memory_space<vmem>>, vector<4x16xf32>
    tpu.vector_store %arg4[%c0_64, %c522], %60 {strides = array<i32>} : memref<4x940xf32, #tpu.memory_space<vmem>>, vector<4x16xf32>,
    %c1_65 = arith.constant 1 : index
    %c0_66 = arith.constant 0 : index
    %c64_67 = arith.constant 64 : index
    %62 = vector.load %arg1[%c1_65, %c0_66, %c64_67] : memref<2x4x256xf32, #tpu.memory_space<vmem>>, vector<1x4x16xf32>
    %63 = vector.shape_cast %62 : vector<1x4x16xf32> to vector<4x16xf32>
    %c0_68 = arith.constant 0 : index
    %c542 = arith.constant 542 : index
    %64 = vector.load %arg4[%c0_68, %c542] : memref<4x940xf32, #tpu.memory_space<vmem>>, vector<4x16xf32>
    tpu.vector_store %arg4[%c0_68, %c542], %63 {strides = array<i32>} : memref<4x940xf32, #tpu.memory_space<vmem>>, vector<4x16xf32>,
    %c1_69 = arith.constant 1 : index
    %c0_70 = arith.constant 0 : index
    %c80_71 = arith.constant 80 : index
    %65 = vector.load %arg1[%c1_69, %c0_70, %c80_71] : memref<2x4x256xf32, #tpu.memory_space<vmem>>, vector<1x4x16xf32>
    %66 = vector.shape_cast %65 : vector<1x4x16xf32> to vector<4x16xf32>
    %c0_72 = arith.constant 0 : index
    %c562 = arith.constant 562 : index
    %67 = vector.load %arg4[%c0_72, %c562] : memref<4x940xf32, #tpu.memory_space<vmem>>, vector<4x16xf32>
    tpu.vector_store %arg4[%c0_72, %c562], %66 {strides = array<i32>} : memref<4x940xf32, #tpu.memory_space<vmem>>, vector<4x16xf32>,
    %c1_73 = arith.constant 1 : index
    %c0_74 = arith.constant 0 : index
    %c96_75 = arith.constant 96 : index
    %68 = vector.load %arg1[%c1_73, %c0_74, %c96_75] : memref<2x4x256xf32, #tpu.memory_space<vmem>>, vector<1x4x16xf32>
    %69 = vector.shape_cast %68 : vector<1x4x16xf32> to vector<4x16xf32>
    %c0_76 = arith.constant 0 : index
    %c582 = arith.constant 582 : index
    %70 = vector.load %arg4[%c0_76, %c582] : memref<4x940xf32, #tpu.memory_space<vmem>>, vector<4x16xf32>
    tpu.vector_store %arg4[%c0_76, %c582], %69 {strides = array<i32>} : memref<4x940xf32, #tpu.memory_space<vmem>>, vector<4x16xf32>,
    %c1_77 = arith.constant 1 : index
    %c0_78 = arith.constant 0 : index
    %c112_79 = arith.constant 112 : index
    %71 = vector.load %arg1[%c1_77, %c0_78, %c112_79] : memref<2x4x256xf32, #tpu.memory_space<vmem>>, vector<1x4x16xf32>
    %72 = vector.shape_cast %71 : vector<1x4x16xf32> to vector<4x16xf32>
    %c0_80 = arith.constant 0 : index
    %c602 = arith.constant 602 : index
    %73 = vector.load %arg4[%c0_80, %c602] : memref<4x940xf32, #tpu.memory_space<vmem>>, vector<4x16xf32>
    tpu.vector_store %arg4[%c0_80, %c602], %72 {strides = array<i32>} : memref<4x940xf32, #tpu.memory_space<vmem>>, vector<4x16xf32>,
    %c1_81 = arith.constant 1 : index
    %c0_82 = arith.constant 0 : index
    %c128_83 = arith.constant 128 : index
    %74 = vector.load %arg1[%c1_81, %c0_82, %c128_83] : memref<2x4x256xf32, #tpu.memory_space<vmem>>, vector<1x4x16xf32>
    %75 = vector.shape_cast %74 : vector<1x4x16xf32> to vector<4x16xf32>
    %c0_84 = arith.constant 0 : index
    %c622 = arith.constant 622 : index
    %76 = vector.load %arg4[%c0_84, %c622] : memref<4x940xf32, #tpu.memory_space<vmem>>, vector<4x16xf32>
    tpu.vector_store %arg4[%c0_84, %c622], %75 {strides = array<i32>} : memref<4x940xf32, #tpu.memory_space<vmem>>, vector<4x16xf32>,
    %c1_85 = arith.constant 1 : index
    %c0_86 = arith.constant 0 : index
    %c144_87 = arith.constant 144 : index
    %77 = vector.load %arg1[%c1_85, %c0_86, %c144_87] : memref<2x4x256xf32, #tpu.memory_space<vmem>>, vector<1x4x16xf32>
    %78 = vector.shape_cast %77 : vector<1x4x16xf32> to vector<4x16xf32>
    %c0_88 = arith.constant 0 : index
    %c642 = arith.constant 642 : index
    %79 = vector.load %arg4[%c0_88, %c642] : memref<4x940xf32, #tpu.memory_space<vmem>>, vector<4x16xf32>
    tpu.vector_store %arg4[%c0_88, %c642], %78 {strides = array<i32>} : memref<4x940xf32, #tpu.memory_space<vmem>>, vector<4x16xf32>,
    %c1_89 = arith.constant 1 : index
    %c0_90 = arith.constant 0 : index
    %c160_91 = arith.constant 160 : index
    %80 = vector.load %arg1[%c1_89, %c0_90, %c160_91] : memref<2x4x256xf32, #tpu.memory_space<vmem>>, vector<1x4x16xf32>
    %81 = vector.shape_cast %80 : vector<1x4x16xf32> to vector<4x16xf32>
    %c0_92 = arith.constant 0 : index
    %c662 = arith.constant 662 : index
    %82 = vector.load %arg4[%c0_92, %c662] : memref<4x940xf32, #tpu.memory_space<vmem>>, vector<4x16xf32>
    tpu.vector_store %arg4[%c0_92, %c662], %81 {strides = array<i32>} : memref<4x940xf32, #tpu.memory_space<vmem>>, vector<4x16xf32>,
    %c1_93 = arith.constant 1 : index
    %c0_94 = arith.constant 0 : index
    %c176_95 = arith.constant 176 : index
    %83 = vector.load %arg1[%c1_93, %c0_94, %c176_95] : memref<2x4x256xf32, #tpu.memory_space<vmem>>, vector<1x4x16xf32>
    %84 = vector.shape_cast %83 : vector<1x4x16xf32> to vector<4x16xf32>
    %c0_96 = arith.constant 0 : index
    %c682 = arith.constant 682 : index
    %85 = vector.load %arg4[%c0_96, %c682] : memref<4x940xf32, #tpu.memory_space<vmem>>, vector<4x16xf32>
    tpu.vector_store %arg4[%c0_96, %c682], %84 {strides = array<i32>} : memref<4x940xf32, #tpu.memory_space<vmem>>, vector<4x16xf32>,
    %c1_97 = arith.constant 1 : index
    %c0_98 = arith.constant 0 : index
    %c192_99 = arith.constant 192 : index
    %86 = vector.load %arg1[%c1_97, %c0_98, %c192_99] : memref<2x4x256xf32, #tpu.memory_space<vmem>>, vector<1x4x16xf32>
    %87 = vector.shape_cast %86 : vector<1x4x16xf32> to vector<4x16xf32>
    %c0_100 = arith.constant 0 : index
    %c702 = arith.constant 702 : index
    %88 = vector.load %arg4[%c0_100, %c702] : memref<4x940xf32, #tpu.memory_space<vmem>>, vector<4x16xf32>
    tpu.vector_store %arg4[%c0_100, %c702], %87 {strides = array<i32>} : memref<4x940xf32, #tpu.memory_space<vmem>>, vector<4x16xf32>,
    %c1_101 = arith.constant 1 : index
    %c0_102 = arith.constant 0 : index
    %c208_103 = arith.constant 208 : index
    %89 = vector.load %arg1[%c1_101, %c0_102, %c208_103] : memref<2x4x256xf32, #tpu.memory_space<vmem>>, vector<1x4x16xf32>
    %90 = vector.shape_cast %89 : vector<1x4x16xf32> to vector<4x16xf32>
    %c0_104 = arith.constant 0 : index
    %c722 = arith.constant 722 : index
    %91 = vector.load %arg4[%c0_104, %c722] : memref<4x940xf32, #tpu.memory_space<vmem>>, vector<4x16xf32>
    tpu.vector_store %arg4[%c0_104, %c722], %90 {strides = array<i32>} : memref<4x940xf32, #tpu.memory_space<vmem>>, vector<4x16xf32>,
    %c1_105 = arith.constant 1 : index
    %c0_106 = arith.constant 0 : index
    %c224_107 = arith.constant 224 : index
    %92 = vector.load %arg1[%c1_105, %c0_106, %c224_107] : memref<2x4x256xf32, #tpu.memory_space<vmem>>, vector<1x4x16xf32>
    %93 = vector.shape_cast %92 : vector<1x4x16xf32> to vector<4x16xf32>
    %c0_108 = arith.constant 0 : index
    %c742 = arith.constant 742 : index
    %94 = vector.load %arg4[%c0_108, %c742] : memref<4x940xf32, #tpu.memory_space<vmem>>, vector<4x16xf32>
    tpu.vector_store %arg4[%c0_108, %c742], %93 {strides = array<i32>} : memref<4x940xf32, #tpu.memory_space<vmem>>, vector<4x16xf32>,
    %c1_109 = arith.constant 1 : index
    %c0_110 = arith.constant 0 : index
    %c240_111 = arith.constant 240 : index
    %95 = vector.load %arg1[%c1_109, %c0_110, %c240_111] : memref<2x4x256xf32, #tpu.memory_space<vmem>>, vector<1x4x16xf32>
    %96 = vector.shape_cast %95 : vector<1x4x16xf32> to vector<4x16xf32>
    %c0_112 = arith.constant 0 : index
    %c762 = arith.constant 762 : index
    %97 = vector.load %arg4[%c0_112, %c762] : memref<4x940xf32, #tpu.memory_space<vmem>>, vector<4x16xf32>
    tpu.vector_store %arg4[%c0_112, %c762], %96 {strides = array<i32>} : memref<4x940xf32, #tpu.memory_space<vmem>>, vector<4x16xf32>,
    %c0_113 = arith.constant 0 : index
    %c0_114 = arith.constant 0 : index
    %98 = vector.load %arg4[%c0_113, %c0_114] : memref<4x940xf32, #tpu.memory_space<vmem>>, vector<4x840xf32>
    %c0_115 = arith.constant 0 : index
    %c0_116 = arith.constant 0 : index
    %99 = vector.load %arg5[%c0_115, %c0_116] : memref<128x840xf32, #tpu.memory_space<vmem>>, vector<4x840xf32>
    tpu.vector_store %arg5[%c0_115, %c0_116], %98 {strides = array<i32>} : memref<128x840xf32, #tpu.memory_space<vmem>>, vector<4x840xf32>,
    %c0_117 = arith.constant 0 : index
    %c1_118 = arith.constant 1 : index
    %100 = vector.load %arg4[%c0_117, %c1_118] : memref<4x940xf32, #tpu.memory_space<vmem>>, vector<4x840xf32>
    %c4 = arith.constant 4 : index
    %c0_119 = arith.constant 0 : index
    %101 = vector.load %arg5[%c4, %c0_119] : memref<128x840xf32, #tpu.memory_space<vmem>>, vector<4x840xf32>
    tpu.vector_store %arg5[%c4, %c0_119], %100 {strides = array<i32>} : memref<128x840xf32, #tpu.memory_space<vmem>>, vector<4x840xf32>,
    %c0_120 = arith.constant 0 : index
    %c2 = arith.constant 2 : index
    %102 = vector.load %arg4[%c0_120, %c2] : memref<4x940xf32, #tpu.memory_space<vmem>>, vector<4x840xf32>
    %c8 = arith.constant 8 : index
    %c0_121 = arith.constant 0 : index
    %103 = vector.load %arg5[%c8, %c0_121] : memref<128x840xf32, #tpu.memory_space<vmem>>, vector<4x840xf32>
    tpu.vector_store %arg5[%c8, %c0_121], %102 {strides = array<i32>} : memref<128x840xf32, #tpu.memory_space<vmem>>, vector<4x840xf32>,
    %c0_122 = arith.constant 0 : index
    %c3 = arith.constant 3 : index
    %104 = vector.load %arg4[%c0_122, %c3] : memref<4x940xf32, #tpu.memory_space<vmem>>, vector<4x840xf32>
    %c12 = arith.constant 12 : index
    %c0_123 = arith.constant 0 : index
    %105 = vector.load %arg5[%c12, %c0_123] : memref<128x840xf32, #tpu.memory_space<vmem>>, vector<4x840xf32>
    tpu.vector_store %arg5[%c12, %c0_123], %104 {strides = array<i32>} : memref<128x840xf32, #tpu.memory_space<vmem>>, vector<4x840xf32>,
    %c0_124 = arith.constant 0 : index
    %c4_125 = arith.constant 4 : index
    %106 = vector.load %arg4[%c0_124, %c4_125] : memref<4x940xf32, #tpu.memory_space<vmem>>, vector<4x840xf32>
    %c16_126 = arith.constant 16 : index
    %c0_127 = arith.constant 0 : index
    %107 = vector.load %arg5[%c16_126, %c0_127] : memref<128x840xf32, #tpu.memory_space<vmem>>, vector<4x840xf32>
    tpu.vector_store %arg5[%c16_126, %c0_127], %106 {strides = array<i32>} : memref<128x840xf32, #tpu.memory_space<vmem>>, vector<4x840xf32>,
    %c0_128 = arith.constant 0 : index
    %c20 = arith.constant 20 : index
    %108 = vector.load %arg4[%c0_128, %c20] : memref<4x940xf32, #tpu.memory_space<vmem>>, vector<4x840xf32>
    %c20_129 = arith.constant 20 : index
    %c0_130 = arith.constant 0 : index
    %109 = vector.load %arg5[%c20_129, %c0_130] : memref<128x840xf32, #tpu.memory_space<vmem>>, vector<4x840xf32>
    tpu.vector_store %arg5[%c20_129, %c0_130], %108 {strides = array<i32>} : memref<128x840xf32, #tpu.memory_space<vmem>>, vector<4x840xf32>,
    %c0_131 = arith.constant 0 : index
    %c21 = arith.constant 21 : index
    %110 = vector.load %arg4[%c0_131, %c21] : memref<4x940xf32, #tpu.memory_space<vmem>>, vector<4x840xf32>
    %c24 = arith.constant 24 : index
    %c0_132 = arith.constant 0 : index
    %111 = vector.load %arg5[%c24, %c0_132] : memref<128x840xf32, #tpu.memory_space<vmem>>, vector<4x840xf32>
    tpu.vector_store %arg5[%c24, %c0_132], %110 {strides = array<i32>} : memref<128x840xf32, #tpu.memory_space<vmem>>, vector<4x840xf32>,
    %c0_133 = arith.constant 0 : index
    %c22 = arith.constant 22 : index
    %112 = vector.load %arg4[%c0_133, %c22] : memref<4x940xf32, #tpu.memory_space<vmem>>, vector<4x840xf32>
    %c28 = arith.constant 28 : index
    %c0_134 = arith.constant 0 : index
    %113 = vector.load %arg5[%c28, %c0_134] : memref<128x840xf32, #tpu.memory_space<vmem>>, vector<4x840xf32>
    tpu.vector_store %arg5[%c28, %c0_134], %112 {strides = array<i32>} : memref<128x840xf32, #tpu.memory_space<vmem>>, vector<4x840xf32>,
    %c0_135 = arith.constant 0 : index
    %c23 = arith.constant 23 : index
    %114 = vector.load %arg4[%c0_135, %c23] : memref<4x940xf32, #tpu.memory_space<vmem>>, vector<4x840xf32>
    %c32_136 = arith.constant 32 : index
    %c0_137 = arith.constant 0 : index
    %115 = vector.load %arg5[%c32_136, %c0_137] : memref<128x840xf32, #tpu.memory_space<vmem>>, vector<4x840xf32>
    tpu.vector_store %arg5[%c32_136, %c0_137], %114 {strides = array<i32>} : memref<128x840xf32, #tpu.memory_space<vmem>>, vector<4x840xf32>,
    %c0_138 = arith.constant 0 : index
    %c24_139 = arith.constant 24 : index
    %116 = vector.load %arg4[%c0_138, %c24_139] : memref<4x940xf32, #tpu.memory_space<vmem>>, vector<4x840xf32>
    %c36 = arith.constant 36 : index
    %c0_140 = arith.constant 0 : index
    %117 = vector.load %arg5[%c36, %c0_140] : memref<128x840xf32, #tpu.memory_space<vmem>>, vector<4x840xf32>
    tpu.vector_store %arg5[%c36, %c0_140], %116 {strides = array<i32>} : memref<128x840xf32, #tpu.memory_space<vmem>>, vector<4x840xf32>,
    %c0_141 = arith.constant 0 : index
    %c40 = arith.constant 40 : index
    %118 = vector.load %arg4[%c0_141, %c40] : memref<4x940xf32, #tpu.memory_space<vmem>>, vector<4x840xf32>
    %c40_142 = arith.constant 40 : index
    %c0_143 = arith.constant 0 : index
    %119 = vector.load %arg5[%c40_142, %c0_143] : memref<128x840xf32, #tpu.memory_space<vmem>>, vector<4x840xf32>
    tpu.vector_store %arg5[%c40_142, %c0_143], %118 {strides = array<i32>} : memref<128x840xf32, #tpu.memory_space<vmem>>, vector<4x840xf32>,
    %c0_144 = arith.constant 0 : index
    %c41 = arith.constant 41 : index
    %120 = vector.load %arg4[%c0_144, %c41] : memref<4x940xf32, #tpu.memory_space<vmem>>, vector<4x840xf32>
    %c44 = arith.constant 44 : index
    %c0_145 = arith.constant 0 : index
    %121 = vector.load %arg5[%c44, %c0_145] : memref<128x840xf32, #tpu.memory_space<vmem>>, vector<4x840xf32>
    tpu.vector_store %arg5[%c44, %c0_145], %120 {strides = array<i32>} : memref<128x840xf32, #tpu.memory_space<vmem>>, vector<4x840xf32>,
    %c0_146 = arith.constant 0 : index
    %c42_147 = arith.constant 42 : index
    %122 = vector.load %arg4[%c0_146, %c42_147] : memref<4x940xf32, #tpu.memory_space<vmem>>, vector<4x840xf32>
    %c48_148 = arith.constant 48 : index
    %c0_149 = arith.constant 0 : index
    %123 = vector.load %arg5[%c48_148, %c0_149] : memref<128x840xf32, #tpu.memory_space<vmem>>, vector<4x840xf32>
    tpu.vector_store %arg5[%c48_148, %c0_149], %122 {strides = array<i32>} : memref<128x840xf32, #tpu.memory_space<vmem>>, vector<4x840xf32>,
    %c0_150 = arith.constant 0 : index
    %c43 = arith.constant 43 : index
    %124 = vector.load %arg4[%c0_150, %c43] : memref<4x940xf32, #tpu.memory_space<vmem>>, vector<4x840xf32>
    %c52 = arith.constant 52 : index
    %c0_151 = arith.constant 0 : index
    %125 = vector.load %arg5[%c52, %c0_151] : memref<128x840xf32, #tpu.memory_space<vmem>>, vector<4x840xf32>
    tpu.vector_store %arg5[%c52, %c0_151], %124 {strides = array<i32>} : memref<128x840xf32, #tpu.memory_space<vmem>>, vector<4x840xf32>,
    %c0_152 = arith.constant 0 : index
    %c44_153 = arith.constant 44 : index
    %126 = vector.load %arg4[%c0_152, %c44_153] : memref<4x940xf32, #tpu.memory_space<vmem>>, vector<4x840xf32>
    %c56 = arith.constant 56 : index
    %c0_154 = arith.constant 0 : index
    %127 = vector.load %arg5[%c56, %c0_154] : memref<128x840xf32, #tpu.memory_space<vmem>>, vector<4x840xf32>
    tpu.vector_store %arg5[%c56, %c0_154], %126 {strides = array<i32>} : memref<128x840xf32, #tpu.memory_space<vmem>>, vector<4x840xf32>,
    %c0_155 = arith.constant 0 : index
    %c60 = arith.constant 60 : index
    %128 = vector.load %arg4[%c0_155, %c60] : memref<4x940xf32, #tpu.memory_space<vmem>>, vector<4x840xf32>
    %c60_156 = arith.constant 60 : index
    %c0_157 = arith.constant 0 : index
    %129 = vector.load %arg5[%c60_156, %c0_157] : memref<128x840xf32, #tpu.memory_space<vmem>>, vector<4x840xf32>
    tpu.vector_store %arg5[%c60_156, %c0_157], %128 {strides = array<i32>} : memref<128x840xf32, #tpu.memory_space<vmem>>, vector<4x840xf32>,
    %c0_158 = arith.constant 0 : index
    %c61 = arith.constant 61 : index
    %130 = vector.load %arg4[%c0_158, %c61] : memref<4x940xf32, #tpu.memory_space<vmem>>, vector<4x840xf32>
    %c64_159 = arith.constant 64 : index
    %c0_160 = arith.constant 0 : index
    %131 = vector.load %arg5[%c64_159, %c0_160] : memref<128x840xf32, #tpu.memory_space<vmem>>, vector<4x840xf32>
    tpu.vector_store %arg5[%c64_159, %c0_160], %130 {strides = array<i32>} : memref<128x840xf32, #tpu.memory_space<vmem>>, vector<4x840xf32>,
    %c0_161 = arith.constant 0 : index
    %c62_162 = arith.constant 62 : index
    %132 = vector.load %arg4[%c0_161, %c62_162] : memref<4x940xf32, #tpu.memory_space<vmem>>, vector<4x840xf32>
    %c68 = arith.constant 68 : index
    %c0_163 = arith.constant 0 : index
    %133 = vector.load %arg5[%c68, %c0_163] : memref<128x840xf32, #tpu.memory_space<vmem>>, vector<4x840xf32>
    tpu.vector_store %arg5[%c68, %c0_163], %132 {strides = array<i32>} : memref<128x840xf32, #tpu.memory_space<vmem>>, vector<4x840xf32>,
    %c0_164 = arith.constant 0 : index
    %c63 = arith.constant 63 : index
    %134 = vector.load %arg4[%c0_164, %c63] : memref<4x940xf32, #tpu.memory_space<vmem>>, vector<4x840xf32>
    %c72 = arith.constant 72 : index
    %c0_165 = arith.constant 0 : index
    %135 = vector.load %arg5[%c72, %c0_165] : memref<128x840xf32, #tpu.memory_space<vmem>>, vector<4x840xf32>
    tpu.vector_store %arg5[%c72, %c0_165], %134 {strides = array<i32>} : memref<128x840xf32, #tpu.memory_space<vmem>>, vector<4x840xf32>,
    %c0_166 = arith.constant 0 : index
    %c64_167 = arith.constant 64 : index
    %136 = vector.load %arg4[%c0_166, %c64_167] : memref<4x940xf32, #tpu.memory_space<vmem>>, vector<4x840xf32>
    %c76 = arith.constant 76 : index
    %c0_168 = arith.constant 0 : index
    %137 = vector.load %arg5[%c76, %c0_168] : memref<128x840xf32, #tpu.memory_space<vmem>>, vector<4x840xf32>
    tpu.vector_store %arg5[%c76, %c0_168], %136 {strides = array<i32>} : memref<128x840xf32, #tpu.memory_space<vmem>>, vector<4x840xf32>,
    %c0_169 = arith.constant 0 : index
    %c80_170 = arith.constant 80 : index
    %138 = vector.load %arg4[%c0_169, %c80_170] : memref<4x940xf32, #tpu.memory_space<vmem>>, vector<4x840xf32>
    %c80_171 = arith.constant 80 : index
    %c0_172 = arith.constant 0 : index
    %139 = vector.load %arg5[%c80_171, %c0_172] : memref<128x840xf32, #tpu.memory_space<vmem>>, vector<4x840xf32>
    tpu.vector_store %arg5[%c80_171, %c0_172], %138 {strides = array<i32>} : memref<128x840xf32, #tpu.memory_space<vmem>>, vector<4x840xf32>,
    %c0_173 = arith.constant 0 : index
    %c81 = arith.constant 81 : index
    %140 = vector.load %arg4[%c0_173, %c81] : memref<4x940xf32, #tpu.memory_space<vmem>>, vector<4x840xf32>
    %c84 = arith.constant 84 : index
    %c0_174 = arith.constant 0 : index
    %141 = vector.load %arg5[%c84, %c0_174] : memref<128x840xf32, #tpu.memory_space<vmem>>, vector<4x840xf32>
    tpu.vector_store %arg5[%c84, %c0_174], %140 {strides = array<i32>} : memref<128x840xf32, #tpu.memory_space<vmem>>, vector<4x840xf32>,
    %c0_175 = arith.constant 0 : index
    %c82_176 = arith.constant 82 : index
    %142 = vector.load %arg4[%c0_175, %c82_176] : memref<4x940xf32, #tpu.memory_space<vmem>>, vector<4x840xf32>
    %c88 = arith.constant 88 : index
    %c0_177 = arith.constant 0 : index
    %143 = vector.load %arg5[%c88, %c0_177] : memref<128x840xf32, #tpu.memory_space<vmem>>, vector<4x840xf32>
    tpu.vector_store %arg5[%c88, %c0_177], %142 {strides = array<i32>} : memref<128x840xf32, #tpu.memory_space<vmem>>, vector<4x840xf32>,
    %c0_178 = arith.constant 0 : index
    %c83 = arith.constant 83 : index
    %144 = vector.load %arg4[%c0_178, %c83] : memref<4x940xf32, #tpu.memory_space<vmem>>, vector<4x840xf32>
    %c92 = arith.constant 92 : index
    %c0_179 = arith.constant 0 : index
    %145 = vector.load %arg5[%c92, %c0_179] : memref<128x840xf32, #tpu.memory_space<vmem>>, vector<4x840xf32>
    tpu.vector_store %arg5[%c92, %c0_179], %144 {strides = array<i32>} : memref<128x840xf32, #tpu.memory_space<vmem>>, vector<4x840xf32>,
    %c0_180 = arith.constant 0 : index
    %c84_181 = arith.constant 84 : index
    %146 = vector.load %arg4[%c0_180, %c84_181] : memref<4x940xf32, #tpu.memory_space<vmem>>, vector<4x840xf32>
    %c96_182 = arith.constant 96 : index
    %c0_183 = arith.constant 0 : index
    %147 = vector.load %arg5[%c96_182, %c0_183] : memref<128x840xf32, #tpu.memory_space<vmem>>, vector<4x840xf32>
    tpu.vector_store %arg5[%c96_182, %c0_183], %146 {strides = array<i32>} : memref<128x840xf32, #tpu.memory_space<vmem>>, vector<4x840xf32>,
    %cst_184 = arith.constant 1.000000e+00 : f32
    %148 = vector.broadcast %cst_184 : f32 to vector<1x840xf32>
    %c100 = arith.constant 100 : index
    %c0_185 = arith.constant 0 : index
    %149 = vector.load %arg5[%c100, %c0_185] : memref<128x840xf32, #tpu.memory_space<vmem>>, vector<1x840xf32>
    tpu.vector_store %arg5[%c100, %c0_185], %148 {strides = array<i32>} : memref<128x840xf32, #tpu.memory_space<vmem>>, vector<1x840xf32>,
    %cst_186 = arith.constant 0.000000e+00 : f32
    %150 = vector.broadcast %cst_186 : f32 to vector<27x840xf32>
    %c101 = arith.constant 101 : index
    %c0_187 = arith.constant 0 : index
    %151 = vector.load %arg5[%c101, %c0_187] : memref<128x840xf32, #tpu.memory_space<vmem>>, vector<27x840xf32>
    tpu.vector_store %arg5[%c101, %c0_187], %150 {strides = array<i32>} : memref<128x840xf32, #tpu.memory_space<vmem>>, vector<27x840xf32>,
    %c0_188 = arith.constant 0 : index
    %c0_189 = arith.constant 0 : index
    %152 = vector.load %arg2[%c0_188, %c0_189] : memref<4x128xf32, #tpu.memory_space<vmem>>, vector<4x128xf32>
    %c0_190 = arith.constant 0 : index
    %c0_191 = arith.constant 0 : index
    %153 = vector.load %arg5[%c0_190, %c0_191] : memref<128x840xf32, #tpu.memory_space<vmem>>, vector<128x840xf32>
    %cst_192 = arith.constant dense<0.000000e+00> : vector<4x840xf32>
    %154 = tpu.matmul %152, %153, %cst_192 {dimension_numbers = #tpu.dot_dimension_numbers<[1], [0], [0], [1], [0, 0, 1, 1], [], []>} : vector<4x128xf32>, vector<128x840xf32>, vector<4x840xf32> -> vector<4x840xf32>
    %155 = vector.extract_strided_slice %154 {offsets = [0, 0], sizes = [4, 16], strides = [1, 1]} : vector<4x840xf32> to vector<4x16xf32>
    %c0_193 = arith.constant 0 : index
    %c0_194 = arith.constant 0 : index
    %c0_195 = arith.constant 0 : index
    %156 = vector.load %arg3[%c0_193, %c0_194, %c0_195] : memref<2x4x256xf32, #tpu.memory_space<vmem>>, vector<1x4x16xf32>
    %157 = vector.shape_cast %156 : vector<1x4x16xf32> to vector<4x16xf32>
    %158 = vector.shape_cast %155 : vector<4x16xf32> to vector<1x4x16xf32>
    tpu.vector_store %arg3[%c0_193, %c0_194, %c0_195], %158 {strides = array<i32>} : memref<2x4x256xf32, #tpu.memory_space<vmem>>, vector<1x4x16xf32>,
    %159 = vector.extract_strided_slice %154 {offsets = [0, 20], sizes = [4, 16], strides = [1, 1]} : vector<4x840xf32> to vector<4x16xf32>
    %c0_196 = arith.constant 0 : index
    %c0_197 = arith.constant 0 : index
    %c16_198 = arith.constant 16 : index
    %160 = vector.load %arg3[%c0_196, %c0_197, %c16_198] : memref<2x4x256xf32, #tpu.memory_space<vmem>>, vector<1x4x16xf32>
    %161 = vector.shape_cast %160 : vector<1x4x16xf32> to vector<4x16xf32>
    %162 = vector.shape_cast %159 : vector<4x16xf32> to vector<1x4x16xf32>
    tpu.vector_store %arg3[%c0_196, %c0_197, %c16_198], %162 {strides = array<i32>} : memref<2x4x256xf32, #tpu.memory_space<vmem>>, vector<1x4x16xf32>,
    %163 = vector.extract_strided_slice %154 {offsets = [0, 40], sizes = [4, 16], strides = [1, 1]} : vector<4x840xf32> to vector<4x16xf32>
    %c0_199 = arith.constant 0 : index
    %c0_200 = arith.constant 0 : index
    %c32_201 = arith.constant 32 : index
    %164 = vector.load %arg3[%c0_199, %c0_200, %c32_201] : memref<2x4x256xf32, #tpu.memory_space<vmem>>, vector<1x4x16xf32>
    %165 = vector.shape_cast %164 : vector<1x4x16xf32> to vector<4x16xf32>
    %166 = vector.shape_cast %163 : vector<4x16xf32> to vector<1x4x16xf32>
    tpu.vector_store %arg3[%c0_199, %c0_200, %c32_201], %166 {strides = array<i32>} : memref<2x4x256xf32, #tpu.memory_space<vmem>>, vector<1x4x16xf32>,
    %167 = vector.extract_strided_slice %154 {offsets = [0, 60], sizes = [4, 16], strides = [1, 1]} : vector<4x840xf32> to vector<4x16xf32>
    %c0_202 = arith.constant 0 : index
    %c0_203 = arith.constant 0 : index
    %c48_204 = arith.constant 48 : index
    %168 = vector.load %arg3[%c0_202, %c0_203, %c48_204] : memref<2x4x256xf32, #tpu.memory_space<vmem>>, vector<1x4x16xf32>
    %169 = vector.shape_cast %168 : vector<1x4x16xf32> to vector<4x16xf32>
    %170 = vector.shape_cast %167 : vector<4x16xf32> to vector<1x4x16xf32>
    tpu.vector_store %arg3[%c0_202, %c0_203, %c48_204], %170 {strides = array<i32>} : memref<2x4x256xf32, #tpu.memory_space<vmem>>, vector<1x4x16xf32>,
    %171 = vector.extract_strided_slice %154 {offsets = [0, 80], sizes = [4, 16], strides = [1, 1]} : vector<4x840xf32> to vector<4x16xf32>
    %c0_205 = arith.constant 0 : index
    %c0_206 = arith.constant 0 : index
    %c64_207 = arith.constant 64 : index
    %172 = vector.load %arg3[%c0_205, %c0_206, %c64_207] : memref<2x4x256xf32, #tpu.memory_space<vmem>>, vector<1x4x16xf32>
    %173 = vector.shape_cast %172 : vector<1x4x16xf32> to vector<4x16xf32>
    %174 = vector.shape_cast %171 : vector<4x16xf32> to vector<1x4x16xf32>
    tpu.vector_store %arg3[%c0_205, %c0_206, %c64_207], %174 {strides = array<i32>} : memref<2x4x256xf32, #tpu.memory_space<vmem>>, vector<1x4x16xf32>,
    %175 = vector.extract_strided_slice %154 {offsets = [0, 100], sizes = [4, 16], strides = [1, 1]} : vector<4x840xf32> to vector<4x16xf32>
    %c0_208 = arith.constant 0 : index
    %c0_209 = arith.constant 0 : index
    %c80_210 = arith.constant 80 : index
    %176 = vector.load %arg3[%c0_208, %c0_209, %c80_210] : memref<2x4x256xf32, #tpu.memory_space<vmem>>, vector<1x4x16xf32>
    %177 = vector.shape_cast %176 : vector<1x4x16xf32> to vector<4x16xf32>
    %178 = vector.shape_cast %175 : vector<4x16xf32> to vector<1x4x16xf32>
    tpu.vector_store %arg3[%c0_208, %c0_209, %c80_210], %178 {strides = array<i32>} : memref<2x4x256xf32, #tpu.memory_space<vmem>>, vector<1x4x16xf32>,
    %179 = vector.extract_strided_slice %154 {offsets = [0, 120], sizes = [4, 16], strides = [1, 1]} : vector<4x840xf32> to vector<4x16xf32>
    %c0_211 = arith.constant 0 : index
    %c0_212 = arith.constant 0 : index
    %c96_213 = arith.constant 96 : index
    %180 = vector.load %arg3[%c0_211, %c0_212, %c96_213] : memref<2x4x256xf32, #tpu.memory_space<vmem>>, vector<1x4x16xf32>
    %181 = vector.shape_cast %180 : vector<1x4x16xf32> to vector<4x16xf32>
    %182 = vector.shape_cast %179 : vector<4x16xf32> to vector<1x4x16xf32>
    tpu.vector_store %arg3[%c0_211, %c0_212, %c96_213], %182 {strides = array<i32>} : memref<2x4x256xf32, #tpu.memory_space<vmem>>, vector<1x4x16xf32>,
    %183 = vector.extract_strided_slice %154 {offsets = [0, 140], sizes = [4, 16], strides = [1, 1]} : vector<4x840xf32> to vector<4x16xf32>
    %c0_214 = arith.constant 0 : index
    %c0_215 = arith.constant 0 : index
    %c112_216 = arith.constant 112 : index
    %184 = vector.load %arg3[%c0_214, %c0_215, %c112_216] : memref<2x4x256xf32, #tpu.memory_space<vmem>>, vector<1x4x16xf32>
    %185 = vector.shape_cast %184 : vector<1x4x16xf32> to vector<4x16xf32>
    %186 = vector.shape_cast %183 : vector<4x16xf32> to vector<1x4x16xf32>
    tpu.vector_store %arg3[%c0_214, %c0_215, %c112_216], %186 {strides = array<i32>} : memref<2x4x256xf32, #tpu.memory_space<vmem>>, vector<1x4x16xf32>,
    %187 = vector.extract_strided_slice %154 {offsets = [0, 160], sizes = [4, 16], strides = [1, 1]} : vector<4x840xf32> to vector<4x16xf32>
    %c0_217 = arith.constant 0 : index
    %c0_218 = arith.constant 0 : index
    %c128_219 = arith.constant 128 : index
    %188 = vector.load %arg3[%c0_217, %c0_218, %c128_219] : memref<2x4x256xf32, #tpu.memory_space<vmem>>, vector<1x4x16xf32>
    %189 = vector.shape_cast %188 : vector<1x4x16xf32> to vector<4x16xf32>
    %190 = vector.shape_cast %187 : vector<4x16xf32> to vector<1x4x16xf32>
    tpu.vector_store %arg3[%c0_217, %c0_218, %c128_219], %190 {strides = array<i32>} : memref<2x4x256xf32, #tpu.memory_space<vmem>>, vector<1x4x16xf32>,
    %191 = vector.extract_strided_slice %154 {offsets = [0, 180], sizes = [4, 16], strides = [1, 1]} : vector<4x840xf32> to vector<4x16xf32>
    %c0_220 = arith.constant 0 : index
    %c0_221 = arith.constant 0 : index
    %c144_222 = arith.constant 144 : index
    %192 = vector.load %arg3[%c0_220, %c0_221, %c144_222] : memref<2x4x256xf32, #tpu.memory_space<vmem>>, vector<1x4x16xf32>
    %193 = vector.shape_cast %192 : vector<1x4x16xf32> to vector<4x16xf32>
    %194 = vector.shape_cast %191 : vector<4x16xf32> to vector<1x4x16xf32>
    tpu.vector_store %arg3[%c0_220, %c0_221, %c144_222], %194 {strides = array<i32>} : memref<2x4x256xf32, #tpu.memory_space<vmem>>, vector<1x4x16xf32>,
    %195 = vector.extract_strided_slice %154 {offsets = [0, 200], sizes = [4, 16], strides = [1, 1]} : vector<4x840xf32> to vector<4x16xf32>
    %c0_223 = arith.constant 0 : index
    %c0_224 = arith.constant 0 : index
    %c160_225 = arith.constant 160 : index
    %196 = vector.load %arg3[%c0_223, %c0_224, %c160_225] : memref<2x4x256xf32, #tpu.memory_space<vmem>>, vector<1x4x16xf32>
    %197 = vector.shape_cast %196 : vector<1x4x16xf32> to vector<4x16xf32>
    %198 = vector.shape_cast %195 : vector<4x16xf32> to vector<1x4x16xf32>
    tpu.vector_store %arg3[%c0_223, %c0_224, %c160_225], %198 {strides = array<i32>} : memref<2x4x256xf32, #tpu.memory_space<vmem>>, vector<1x4x16xf32>,
    %199 = vector.extract_strided_slice %154 {offsets = [0, 220], sizes = [4, 16], strides = [1, 1]} : vector<4x840xf32> to vector<4x16xf32>
    %c0_226 = arith.constant 0 : index
    %c0_227 = arith.constant 0 : index
    %c176_228 = arith.constant 176 : index
    %200 = vector.load %arg3[%c0_226, %c0_227, %c176_228] : memref<2x4x256xf32, #tpu.memory_space<vmem>>, vector<1x4x16xf32>
    %201 = vector.shape_cast %200 : vector<1x4x16xf32> to vector<4x16xf32>
    %202 = vector.shape_cast %199 : vector<4x16xf32> to vector<1x4x16xf32>
    tpu.vector_store %arg3[%c0_226, %c0_227, %c176_228], %202 {strides = array<i32>} : memref<2x4x256xf32, #tpu.memory_space<vmem>>, vector<1x4x16xf32>,
    %203 = vector.extract_strided_slice %154 {offsets = [0, 240], sizes = [4, 16], strides = [1, 1]} : vector<4x840xf32> to vector<4x16xf32>
    %c0_229 = arith.constant 0 : index
    %c0_230 = arith.constant 0 : index
    %c192_231 = arith.constant 192 : index
    %204 = vector.load %arg3[%c0_229, %c0_230, %c192_231] : memref<2x4x256xf32, #tpu.memory_space<vmem>>, vector<1x4x16xf32>
    %205 = vector.shape_cast %204 : vector<1x4x16xf32> to vector<4x16xf32>
    %206 = vector.shape_cast %203 : vector<4x16xf32> to vector<1x4x16xf32>
    tpu.vector_store %arg3[%c0_229, %c0_230, %c192_231], %206 {strides = array<i32>} : memref<2x4x256xf32, #tpu.memory_space<vmem>>, vector<1x4x16xf32>,
    %207 = vector.extract_strided_slice %154 {offsets = [0, 260], sizes = [4, 16], strides = [1, 1]} : vector<4x840xf32> to vector<4x16xf32>
    %c0_232 = arith.constant 0 : index
    %c0_233 = arith.constant 0 : index
    %c208_234 = arith.constant 208 : index
    %208 = vector.load %arg3[%c0_232, %c0_233, %c208_234] : memref<2x4x256xf32, #tpu.memory_space<vmem>>, vector<1x4x16xf32>
    %209 = vector.shape_cast %208 : vector<1x4x16xf32> to vector<4x16xf32>
    %210 = vector.shape_cast %207 : vector<4x16xf32> to vector<1x4x16xf32>
    tpu.vector_store %arg3[%c0_232, %c0_233, %c208_234], %210 {strides = array<i32>} : memref<2x4x256xf32, #tpu.memory_space<vmem>>, vector<1x4x16xf32>,
    %211 = vector.extract_strided_slice %154 {offsets = [0, 280], sizes = [4, 16], strides = [1, 1]} : vector<4x840xf32> to vector<4x16xf32>
    %c0_235 = arith.constant 0 : index
    %c0_236 = arith.constant 0 : index
    %c224_237 = arith.constant 224 : index
    %212 = vector.load %arg3[%c0_235, %c0_236, %c224_237] : memref<2x4x256xf32, #tpu.memory_space<vmem>>, vector<1x4x16xf32>
    %213 = vector.shape_cast %212 : vector<1x4x16xf32> to vector<4x16xf32>
    %214 = vector.shape_cast %211 : vector<4x16xf32> to vector<1x4x16xf32>
    tpu.vector_store %arg3[%c0_235, %c0_236, %c224_237], %214 {strides = array<i32>} : memref<2x4x256xf32, #tpu.memory_space<vmem>>, vector<1x4x16xf32>,
    %215 = vector.extract_strided_slice %154 {offsets = [0, 300], sizes = [4, 16], strides = [1, 1]} : vector<4x840xf32> to vector<4x16xf32>
    %c0_238 = arith.constant 0 : index
    %c0_239 = arith.constant 0 : index
    %c240_240 = arith.constant 240 : index
    %216 = vector.load %arg3[%c0_238, %c0_239, %c240_240] : memref<2x4x256xf32, #tpu.memory_space<vmem>>, vector<1x4x16xf32>
    %217 = vector.shape_cast %216 : vector<1x4x16xf32> to vector<4x16xf32>
    %218 = vector.shape_cast %215 : vector<4x16xf32> to vector<1x4x16xf32>
    tpu.vector_store %arg3[%c0_238, %c0_239, %c240_240], %218 {strides = array<i32>} : memref<2x4x256xf32, #tpu.memory_space<vmem>>, vector<1x4x16xf32>,
    %219 = vector.extract_strided_slice %154 {offsets = [0, 420], sizes = [4, 16], strides = [1, 1]} : vector<4x840xf32> to vector<4x16xf32>
    %c1_241 = arith.constant 1 : index
    %c0_242 = arith.constant 0 : index
    %c0_243 = arith.constant 0 : index
    %220 = vector.load %arg3[%c1_241, %c0_242, %c0_243] : memref<2x4x256xf32, #tpu.memory_space<vmem>>, vector<1x4x16xf32>
    %221 = vector.shape_cast %220 : vector<1x4x16xf32> to vector<4x16xf32>
    %222 = vector.shape_cast %219 : vector<4x16xf32> to vector<1x4x16xf32>
    tpu.vector_store %arg3[%c1_241, %c0_242, %c0_243], %222 {strides = array<i32>} : memref<2x4x256xf32, #tpu.memory_space<vmem>>, vector<1x4x16xf32>,
    %223 = vector.extract_strided_slice %154 {offsets = [0, 440], sizes = [4, 16], strides = [1, 1]} : vector<4x840xf32> to vector<4x16xf32>
    %c1_244 = arith.constant 1 : index
    %c0_245 = arith.constant 0 : index
    %c16_246 = arith.constant 16 : index
    %224 = vector.load %arg3[%c1_244, %c0_245, %c16_246] : memref<2x4x256xf32, #tpu.memory_space<vmem>>, vector<1x4x16xf32>
    %225 = vector.shape_cast %224 : vector<1x4x16xf32> to vector<4x16xf32>
    %226 = vector.shape_cast %223 : vector<4x16xf32> to vector<1x4x16xf32>
    tpu.vector_store %arg3[%c1_244, %c0_245, %c16_246], %226 {strides = array<i32>} : memref<2x4x256xf32, #tpu.memory_space<vmem>>, vector<1x4x16xf32>,
    %227 = vector.extract_strided_slice %154 {offsets = [0, 460], sizes = [4, 16], strides = [1, 1]} : vector<4x840xf32> to vector<4x16xf32>
    %c1_247 = arith.constant 1 : index
    %c0_248 = arith.constant 0 : index
    %c32_249 = arith.constant 32 : index
    %228 = vector.load %arg3[%c1_247, %c0_248, %c32_249] : memref<2x4x256xf32, #tpu.memory_space<vmem>>, vector<1x4x16xf32>
    %229 = vector.shape_cast %228 : vector<1x4x16xf32> to vector<4x16xf32>
    %230 = vector.shape_cast %227 : vector<4x16xf32> to vector<1x4x16xf32>
    tpu.vector_store %arg3[%c1_247, %c0_248, %c32_249], %230 {strides = array<i32>} : memref<2x4x256xf32, #tpu.memory_space<vmem>>, vector<1x4x16xf32>,
    %231 = vector.extract_strided_slice %154 {offsets = [0, 480], sizes = [4, 16], strides = [1, 1]} : vector<4x840xf32> to vector<4x16xf32>
    %c1_250 = arith.constant 1 : index
    %c0_251 = arith.constant 0 : index
    %c48_252 = arith.constant 48 : index
    %232 = vector.load %arg3[%c1_250, %c0_251, %c48_252] : memref<2x4x256xf32, #tpu.memory_space<vmem>>, vector<1x4x16xf32>
    %233 = vector.shape_cast %232 : vector<1x4x16xf32> to vector<4x16xf32>
    %234 = vector.shape_cast %231 : vector<4x16xf32> to vector<1x4x16xf32>
    tpu.vector_store %arg3[%c1_250, %c0_251, %c48_252], %234 {strides = array<i32>} : memref<2x4x256xf32, #tpu.memory_space<vmem>>, vector<1x4x16xf32>,
    %235 = vector.extract_strided_slice %154 {offsets = [0, 500], sizes = [4, 16], strides = [1, 1]} : vector<4x840xf32> to vector<4x16xf32>
    %c1_253 = arith.constant 1 : index
    %c0_254 = arith.constant 0 : index
    %c64_255 = arith.constant 64 : index
    %236 = vector.load %arg3[%c1_253, %c0_254, %c64_255] : memref<2x4x256xf32, #tpu.memory_space<vmem>>, vector<1x4x16xf32>
    %237 = vector.shape_cast %236 : vector<1x4x16xf32> to vector<4x16xf32>
    %238 = vector.shape_cast %235 : vector<4x16xf32> to vector<1x4x16xf32>
    tpu.vector_store %arg3[%c1_253, %c0_254, %c64_255], %238 {strides = array<i32>} : memref<2x4x256xf32, #tpu.memory_space<vmem>>, vector<1x4x16xf32>,
    %239 = vector.extract_strided_slice %154 {offsets = [0, 520], sizes = [4, 16], strides = [1, 1]} : vector<4x840xf32> to vector<4x16xf32>
    %c1_256 = arith.constant 1 : index
    %c0_257 = arith.constant 0 : index
    %c80_258 = arith.constant 80 : index
    %240 = vector.load %arg3[%c1_256, %c0_257, %c80_258] : memref<2x4x256xf32, #tpu.memory_space<vmem>>, vector<1x4x16xf32>
    %241 = vector.shape_cast %240 : vector<1x4x16xf32> to vector<4x16xf32>
    %242 = vector.shape_cast %239 : vector<4x16xf32> to vector<1x4x16xf32>
    tpu.vector_store %arg3[%c1_256, %c0_257, %c80_258], %242 {strides = array<i32>} : memref<2x4x256xf32, #tpu.memory_space<vmem>>, vector<1x4x16xf32>,
    %243 = vector.extract_strided_slice %154 {offsets = [0, 540], sizes = [4, 16], strides = [1, 1]} : vector<4x840xf32> to vector<4x16xf32>
    %c1_259 = arith.constant 1 : index
    %c0_260 = arith.constant 0 : index
    %c96_261 = arith.constant 96 : index
    %244 = vector.load %arg3[%c1_259, %c0_260, %c96_261] : memref<2x4x256xf32, #tpu.memory_space<vmem>>, vector<1x4x16xf32>
    %245 = vector.shape_cast %244 : vector<1x4x16xf32> to vector<4x16xf32>
    %246 = vector.shape_cast %243 : vector<4x16xf32> to vector<1x4x16xf32>
    tpu.vector_store %arg3[%c1_259, %c0_260, %c96_261], %246 {strides = array<i32>} : memref<2x4x256xf32, #tpu.memory_space<vmem>>, vector<1x4x16xf32>,
    %247 = vector.extract_strided_slice %154 {offsets = [0, 560], sizes = [4, 16], strides = [1, 1]} : vector<4x840xf32> to vector<4x16xf32>
    %c1_262 = arith.constant 1 : index
    %c0_263 = arith.constant 0 : index
    %c112_264 = arith.constant 112 : index
    %248 = vector.load %arg3[%c1_262, %c0_263, %c112_264] : memref<2x4x256xf32, #tpu.memory_space<vmem>>, vector<1x4x16xf32>
    %249 = vector.shape_cast %248 : vector<1x4x16xf32> to vector<4x16xf32>
    %250 = vector.shape_cast %247 : vector<4x16xf32> to vector<1x4x16xf32>
    tpu.vector_store %arg3[%c1_262, %c0_263, %c112_264], %250 {strides = array<i32>} : memref<2x4x256xf32, #tpu.memory_space<vmem>>, vector<1x4x16xf32>,
    %251 = vector.extract_strided_slice %154 {offsets = [0, 580], sizes = [4, 16], strides = [1, 1]} : vector<4x840xf32> to vector<4x16xf32>
    %c1_265 = arith.constant 1 : index
    %c0_266 = arith.constant 0 : index
    %c128_267 = arith.constant 128 : index
    %252 = vector.load %arg3[%c1_265, %c0_266, %c128_267] : memref<2x4x256xf32, #tpu.memory_space<vmem>>, vector<1x4x16xf32>
    %253 = vector.shape_cast %252 : vector<1x4x16xf32> to vector<4x16xf32>
    %254 = vector.shape_cast %251 : vector<4x16xf32> to vector<1x4x16xf32>
    tpu.vector_store %arg3[%c1_265, %c0_266, %c128_267], %254 {strides = array<i32>} : memref<2x4x256xf32, #tpu.memory_space<vmem>>, vector<1x4x16xf32>,
    %255 = vector.extract_strided_slice %154 {offsets = [0, 600], sizes = [4, 16], strides = [1, 1]} : vector<4x840xf32> to vector<4x16xf32>
    %c1_268 = arith.constant 1 : index
    %c0_269 = arith.constant 0 : index
    %c144_270 = arith.constant 144 : index
    %256 = vector.load %arg3[%c1_268, %c0_269, %c144_270] : memref<2x4x256xf32, #tpu.memory_space<vmem>>, vector<1x4x16xf32>
    %257 = vector.shape_cast %256 : vector<1x4x16xf32> to vector<4x16xf32>
    %258 = vector.shape_cast %255 : vector<4x16xf32> to vector<1x4x16xf32>
    tpu.vector_store %arg3[%c1_268, %c0_269, %c144_270], %258 {strides = array<i32>} : memref<2x4x256xf32, #tpu.memory_space<vmem>>, vector<1x4x16xf32>,
    %259 = vector.extract_strided_slice %154 {offsets = [0, 620], sizes = [4, 16], strides = [1, 1]} : vector<4x840xf32> to vector<4x16xf32>
    %c1_271 = arith.constant 1 : index
    %c0_272 = arith.constant 0 : index
    %c160_273 = arith.constant 160 : index
    %260 = vector.load %arg3[%c1_271, %c0_272, %c160_273] : memref<2x4x256xf32, #tpu.memory_space<vmem>>, vector<1x4x16xf32>
    %261 = vector.shape_cast %260 : vector<1x4x16xf32> to vector<4x16xf32>
    %262 = vector.shape_cast %259 : vector<4x16xf32> to vector<1x4x16xf32>
    tpu.vector_store %arg3[%c1_271, %c0_272, %c160_273], %262 {strides = array<i32>} : memref<2x4x256xf32, #tpu.memory_space<vmem>>, vector<1x4x16xf32>,
    %263 = vector.extract_strided_slice %154 {offsets = [0, 640], sizes = [4, 16], strides = [1, 1]} : vector<4x840xf32> to vector<4x16xf32>
    %c1_274 = arith.constant 1 : index
    %c0_275 = arith.constant 0 : index
    %c176_276 = arith.constant 176 : index
    %264 = vector.load %arg3[%c1_274, %c0_275, %c176_276] : memref<2x4x256xf32, #tpu.memory_space<vmem>>, vector<1x4x16xf32>
    %265 = vector.shape_cast %264 : vector<1x4x16xf32> to vector<4x16xf32>
    %266 = vector.shape_cast %263 : vector<4x16xf32> to vector<1x4x16xf32>
    tpu.vector_store %arg3[%c1_274, %c0_275, %c176_276], %266 {strides = array<i32>} : memref<2x4x256xf32, #tpu.memory_space<vmem>>, vector<1x4x16xf32>,
    %267 = vector.extract_strided_slice %154 {offsets = [0, 660], sizes = [4, 16], strides = [1, 1]} : vector<4x840xf32> to vector<4x16xf32>
    %c1_277 = arith.constant 1 : index
    %c0_278 = arith.constant 0 : index
    %c192_279 = arith.constant 192 : index
    %268 = vector.load %arg3[%c1_277, %c0_278, %c192_279] : memref<2x4x256xf32, #tpu.memory_space<vmem>>, vector<1x4x16xf32>
    %269 = vector.shape_cast %268 : vector<1x4x16xf32> to vector<4x16xf32>
    %270 = vector.shape_cast %267 : vector<4x16xf32> to vector<1x4x16xf32>
    tpu.vector_store %arg3[%c1_277, %c0_278, %c192_279], %270 {strides = array<i32>} : memref<2x4x256xf32, #tpu.memory_space<vmem>>, vector<1x4x16xf32>,
    %271 = vector.extract_strided_slice %154 {offsets = [0, 680], sizes = [4, 16], strides = [1, 1]} : vector<4x840xf32> to vector<4x16xf32>
    %c1_280 = arith.constant 1 : index
    %c0_281 = arith.constant 0 : index
    %c208_282 = arith.constant 208 : index
    %272 = vector.load %arg3[%c1_280, %c0_281, %c208_282] : memref<2x4x256xf32, #tpu.memory_space<vmem>>, vector<1x4x16xf32>
    %273 = vector.shape_cast %272 : vector<1x4x16xf32> to vector<4x16xf32>
    %274 = vector.shape_cast %271 : vector<4x16xf32> to vector<1x4x16xf32>
    tpu.vector_store %arg3[%c1_280, %c0_281, %c208_282], %274 {strides = array<i32>} : memref<2x4x256xf32, #tpu.memory_space<vmem>>, vector<1x4x16xf32>,
    %275 = vector.extract_strided_slice %154 {offsets = [0, 700], sizes = [4, 16], strides = [1, 1]} : vector<4x840xf32> to vector<4x16xf32>
    %c1_283 = arith.constant 1 : index
    %c0_284 = arith.constant 0 : index
    %c224_285 = arith.constant 224 : index
    %276 = vector.load %arg3[%c1_283, %c0_284, %c224_285] : memref<2x4x256xf32, #tpu.memory_space<vmem>>, vector<1x4x16xf32>
    %277 = vector.shape_cast %276 : vector<1x4x16xf32> to vector<4x16xf32>
    %278 = vector.shape_cast %275 : vector<4x16xf32> to vector<1x4x16xf32>
    tpu.vector_store %arg3[%c1_283, %c0_284, %c224_285], %278 {strides = array<i32>} : memref<2x4x256xf32, #tpu.memory_space<vmem>>, vector<1x4x16xf32>,
    %279 = vector.extract_strided_slice %154 {offsets = [0, 720], sizes = [4, 16], strides = [1, 1]} : vector<4x840xf32> to vector<4x16xf32>
    %c1_286 = arith.constant 1 : index
    %c0_287 = arith.constant 0 : index
    %c240_288 = arith.constant 240 : index
    %280 = vector.load %arg3[%c1_286, %c0_287, %c240_288] : memref<2x4x256xf32, #tpu.memory_space<vmem>>, vector<1x4x16xf32>
    %281 = vector.shape_cast %280 : vector<1x4x16xf32> to vector<4x16xf32>
    %282 = vector.shape_cast %279 : vector<4x16xf32> to vector<1x4x16xf32>
    tpu.vector_store %arg3[%c1_286, %c0_287, %c240_288], %282 {strides = array<i32>} : memref<2x4x256xf32, #tpu.memory_space<vmem>>, vector<1x4x16xf32>,
    return
  }
  func.func @transform_0(%arg0: i32) -> (i32, i32, i32) {
    %c0_i32 = arith.constant 0 : i32
    %c0_i32_0 = arith.constant 0 : i32
    %c0_i32_1 = arith.constant 0 : i32
    return %arg0, %c0_i32, %c0_i32_0 : i32, i32, i32
  }
  func.func @transform_1(%arg0: i32) -> (i32, i32) {
    %c0_i32 = arith.constant 0 : i32
    %c0_i32_0 = arith.constant 0 : i32
    %c0_i32_1 = arith.constant 0 : i32
    return %c0_i32, %c0_i32_0 : i32, i32
  }
  func.func @transform_2(%arg0: i32) -> (i32, i32, i32) {
    %c0_i32 = arith.constant 0 : i32
    %c0_i32_0 = arith.constant 0 : i32
    %c0_i32_1 = arith.constant 0 : i32
    return %arg0, %c0_i32, %c0_i32_0 : i32, i32, i32
  }
}

</mosaic_0001>

<bundles_post_ra>
// kernel: tpu_custom_call.1
= control target key start
LH: loop header
LB: loop body
LE: loop exit
PB: predicated region body
PF: predicated region fallthrough
CT: control target
= control target key end

     0   :  { %7 = vsyncpa [#allocation5], 0  ;;  %s3025_s0 = inlined_call_operand.hbm [shape: f32[2,4,256], index: 0, kind: input, shape index: {}]   ;;  %s3026_s1 = inlined_call_operand.hbm [shape: f32[4,128], index: 1, kind: input, shape index: {}]   ;;  %s3027_s2 = inlined_call_operand.hbm [shape: f32[2,4,256], index: 2, kind: output, shape index: {}]  }
   0x1   :  { %8 = vsyncpa [#allocation8], 0 }
   0x2   :  { %9 = vsyncpa [#allocation6], 0  ;;  %s2116_s9 = smov [#allocation4]  }
   0x3   :  { %s15_s10 = sshll.u32 %s2116_s9, 4  ;;  %s16_s10 = int_to_ptr.vmem [resolvable:$true] %s15_s10 }
   0x4   :  { %s2058_s11 = scalar_lea.vmem %s16_s10, 256  ;;  %p2063_p1 = scmp.lt.s32.totalorder %s16_s10, %s16_s10 }
   0x5   :  { %p2059_p0 = scmp.ne.s32.totalorder %s16_s10, %s2058_s11  ;;  %p2064_p2 = scmp.lt.s32.totalorder %s2058_s11, %s2058_s11 }
   0x7   :  { %p2065_p3 = por %p2064_p2, %p2063_p1 }
   0x9   :  { %p2066_p4 = pnand %p2065_p3, %p2059_p0 }
   0xb   :  { %2069 = shalt.err (!%p2066_p4)
}
   0xc   :  { %s2117_s12 = smov 128   ;;  %s2118_s13 = smov 8  }
   0xd   :  { %21 = dma.hbm_to_vmem [thread:$0]  %s3025_s0, 256, %s16_s10, [#allocation5], %s2117_s12, %s2117_s12, %s2118_s13  }
   0xe   :  { %s2119_s16 = smov [#allocation7]  }
   0xf   :  { %s28_s17 = sshll.u32 %s2119_s16, 4  ;;  %s29_s17 = int_to_ptr.vmem [resolvable:$true] %s28_s17 }
  0x10   :  { %s2078_s18 = scalar_lea.vmem %s29_s17, 64  ;;  %p2083_p6 = scmp.lt.s32.totalorder %s29_s17, %s29_s17 }
  0x11   :  { %p2079_p5 = scmp.ne.s32.totalorder %s29_s17, %s2078_s18  ;;  %p2084_p7 = scmp.lt.s32.totalorder %s2078_s18, %s2078_s18 }
  0x13   :  { %p2085_p8 = por %p2084_p7, %p2083_p6 }
  0x15   :  { %p2086_p9 = pnand %p2085_p8, %p2079_p5 }
  0x17   :  { %2089 = shalt.err (!%p2086_p9)
}
  0x18   :  { %31 = dma.hbm_to_vmem [thread:$0]  %s3026_s1, 64, %s29_s17, [#allocation8]  }
  0x19   :  { %2110 = dma.done.wait [#allocation5], 256  }
  0x1a   :  { %2111 = vsyncadd [#allocation5], 4294967040 }
  0x1b   :  { %2112 = dma.done.wait [#allocation8], 64  }
  0x1c   :  { %2113 = vsyncadd [#allocation8], 4294967232  ;;  %v2120_v0 = vmov 0.0   ;;  %v59_v1 = vld [vmem:[#allocation4] sm:$0xf]  ;;  %s2121_s0 = smov 50  }
  0x1d   :  { %38 = vst [vmem:[#allocation2] sm:$0xff] %v2120_v0  ;;  %39 = vst [vmem:[#allocation2 + $0x8] sm:$0xff] %v2120_v0  ;;  %1589 = vmatprep.subr.mxu0 %v2120_v0  ;;  %1660 = vmatprep.subr.mxu1 %v2120_v0  ;;  %v45_v2 = vld [vmem:[#allocation4] sm:$0xf]  ;;  %s2122_s1 = smov 42   ;;  %s2123_s21 = smov 54  }
  0x1e   :  { %40 = vst [vmem:[#allocation2 + $0x10] sm:$0xff] %v2120_v0  ;;  %1462 = vst [vmem:[#allocation3 + $0x2a0] sm:$0xe0] %v2120_v0  ;;  %1590 = vmatpush1.msra.mxu0 %v2120_v0  ;;  %1661 = vmatpush1.msra.mxu1 %v2120_v0  ;;  %v66_v3 = vld [vmem:[#allocation4] sm:$0xf]  ;;  %s2124_s22 = smov 46  }
  0x1f   :  { %1463 = vst [vmem:[#allocation3 + $0x2a8] sm:$0xe0] %v2120_v0  ;;  %1464 = vst [vmem:[#allocation3 + $0x2b0] sm:$0xe0] %v2120_v0  ;;  %1591 = vmatprep.subr.mxu0 %v2120_v0  ;;  %1662 = vmatprep.subr.mxu1 %v2120_v0  ;;  %v52_v4 = vld [vmem:[#allocation4] sm:$0xf] }
  0x20   :  { %1465 = vst [vmem:[#allocation3 + $0x2b8] sm:$0xe0] %v2120_v0  ;;  %1466 = vst [vmem:[#allocation3 + $0x2c0] sm:$0xe0] %v2120_v0  ;;  %1592 = vmatpush1.msra.mxu0 %v2120_v0  ;;  %1663 = vmatpush1.msra.mxu1 %v2120_v0  ;;  %v85_v5 = vld [vmem:[#allocation4] sm:$0xf] }
  0x21   :  { %1467 = vst [vmem:[#allocation3 + $0x2c8] sm:$0xe0] %v2120_v0  ;;  %1470 = vst [vmem:[#allocation3 + $0x2d8] sm:$0xff] %v2120_v0  ;;  %1593 = vmatprep.subr.mxu0 %v2120_v0  ;;  %1664 = vmatprep.subr.mxu1 %v2120_v0  ;;  %v73_v6 = vld [vmem:[#allocation4] sm:$0xf]  ;;  %s2125_s23 = smov 62  }
  0x22   :  { %1594 = vmatpush1.msra.mxu0 %v2120_v0  ;;  %1665 = vmatpush1.msra.mxu1 %v2120_v0  ;;  %s2126_s24 = smov 58   ;;  %v99_v7 = vld [vmem:[#allocation4] sm:$0xf]  ;;  %s2127_s25 = smov 70   ;;  %v113_v9 = vld [vmem:[#allocation4 + $0x4] sm:$0xf] }
  0x23   :  { %1653 = vmatprep.mubr.f32.mxu0 %v2120_v0  ;;  %1724 = vmatprep.mubr.f32.mxu1 %v2120_v0  ;;  %v92_v8 = vld [vmem:[#allocation4] sm:$0xf]  ;;  %s2128_s26 = smov 66   ;;  %v106_v10 = vld [vmem:[#allocation4 + $0x4] sm:$0xf]  ;;  %s2129_s27 = smov 78  }
  0x24   :  { %61 = vrot.lane.b32.xlu1 %v59_v1, %s2121_s0  ;;  %47 = vrot.lane.b32.xlu0 %v45_v2, %s2122_s1  ;;  %s2130_s28 = smov 74   ;;  %v132_v11 = vld [vmem:[#allocation4 + $0x4] sm:$0xf]  ;;  %s2131_s29 = smov 86   ;;  %v168_v15 = vld [vmem:[#allocation4 + $0x8] sm:$0xf] }
  0x25   :  { %v120_v12 = vld [vmem:[#allocation4 + $0x4] sm:$0xf]  ;;  %s2132_s30 = smov 82   ;;  %s2133_s3 = smov 94   ;;  %v182_v16 = vld [vmem:[#allocation4 + $0x8] sm:$0xf] }
  0x26   :  { %v146_v13 = vld [vmem:[#allocation4 + $0x4] sm:$0xf]  ;;  %s2134_s4 = smov 90   ;;  %v175_v17 = vld [vmem:[#allocation4 + $0x8] sm:$0xf]  ;;  %s2135_s5 = smov 98  }
  0x27   :  { %v139_v14 = vld [vmem:[#allocation4 + $0x4] sm:$0xf]  ;;  %v194_v19 = vld [vmem:[#allocation4 + $0x8] sm:$0xf]  ;;  %s2136_s6 = smov 102   ;;  %s2137_s7 = smov 106  }
  0x28   :  { %68 = vrot.lane.b32.xlu1 %v66_v3, %s2123_s21  ;;  %54 = vrot.lane.b32.xlu0 %v52_v4, %s2124_s22  ;;  %v153_v18 = vld [vmem:[#allocation4 + $0x4] sm:$0xf]  ;;  %v208_v21 = vld [vmem:[#allocation4 + $0x8] sm:$0xf]  ;;  %v236_v25 = vld [vmem:[#allocation4 + $0xc] sm:$0xf] }
  0x29   :  { %v160_v20 = vld [vmem:[#allocation4 + $0x4] sm:$0xf]  ;;  %v201_v22 = vld [vmem:[#allocation4 + $0x8] sm:$0xf]  ;;  %v229_v26 = vld [vmem:[#allocation4 + $0xc] sm:$0xf] }
  0x2a   :  { %v222_v23 = vld [vmem:[#allocation4 + $0x8] sm:$0xf]  ;;  %vm41_vm0 = vcmask 1043456   ;;  %vm42_vm1 = vcmask 359428   ;;  %s2138_s8 = smov 114   ;;  %s2139_s9 = smov 110  }
  0x2b   :  { %v215_v24 = vld [vmem:[#allocation4 + $0x8] sm:$0xf]  ;;  %vm43_vm2 = vmor %vm42_vm1, %vm41_vm0  ;;  %v250_v27 = vld [vmem:[#allocation4 + $0xc] sm:$0xf]  ;;  %s2140_s10 = smov 122   ;;  %s2141_s11 = smov 118  }
  0x2c   :  { %87 = vrot.lane.b32.xlu1 %v85_v5, %s2125_s23  ;;  %75 = vrot.lane.b32.xlu0 %v73_v6, %s2126_s24  ;;  %44 = vst.msk [vmem:[#allocation2 + $0x18] sm:$0xff] %vm43_vm2, %v2120_v0  ;;  %v243_v28 = vld [vmem:[#allocation4 + $0xc] sm:$0xf]  ;;  %s2142_s14 = smov 10   ;;  %s2143_s15 = smov 126   ;;  %vm50_vm3 = vcmask 470352  }
  0x2d   :  { %v274_v29 = vld [vmem:[#allocation4 + $0xc] sm:$0xf]  ;;  %s2144_s16 = smov 2   ;;  %s2145_s17 = smov 6   ;;  %vm57_vm4 = vcmask 634352   ;;  %vm64_vm5 = vcmask 798352  }
  0x2e   :  { %v256_v30 = vld [vmem:[#allocation4 + $0xc] sm:$0xf]  ;;  %vm3028_vm6 = vcmask 962352   ;;  %vm81_vm7 = vcmask 1044432   ;;  %vm82_vm8 = vcmask 80900   ;;  %vm78_vm9 = vcmask 474112  }
  0x2f   :  { %v262_v31 = vld [vmem:[#allocation4 + $0xc] sm:$0xf]  ;;  %vm2241_vm10 = vmor %vm82_vm8, %vm81_vm7  ;;  %vm90_vm11 = vcmask 240752   ;;  %vm97_vm12 = vcmask 404752   ;;  %vm104_vm13 = vcmask 568752   ;;  %vm111_vm14 = vcmask 732752  }
  0x30   :  { %101 = vrot.lane.b32.xlu1 %v99_v7, %s2127_s25  ;;  %94 = vrot.lane.b32.xlu0 %v92_v8, %s2128_s26  ;;  %v268_v32 = vld [vmem:[#allocation4 + $0xc] sm:$0xf]  ;;  %vm118_vm15 = vcmask 896752   ;;  %vm128_vm0 = vcmask 1044368   ;;  %vm129_vm1 = vcmask 15364   ;;  %vm125_vm2 = vcmask 670720  }
  0x31   :  { %vm130_vm7 = vmor %vm129_vm1, %vm128_vm0  ;;  %vm137_vm8 = vcmask 175152   ;;  %vm158_vm0 = vcmask 667152   ;;  %s2146_s18 = smov 127   ;;  %s2147_s19 = smov 45  }
  0x32   :  { %s2148_s20 = smov 47   ;;  %s2150_s0 = smov 48  }
  0x33   :  { %s2151_s1 = smov 125   ;;  %s2152_s21 = smov 64  }
  0x34   :  { %115 = vrot.lane.b32.xlu1 %v113_v9, %s2129_s27  ;;  %108 = vrot.lane.b32.xlu0 %v106_v10, %s2130_s28  ;;  %s2153_s23 = smov 44   ;;  %s2154_s24 = smov 65  }
  0x35   :  { %s2155_s25 = smov 67   ;;  %s2157_s28 = smov 68  }
  0x38   :  { %134 = vrot.lane.b32.xlu1 %v132_v11, %s2131_s29  ;;  %122 = vrot.lane.b32.xlu0 %v120_v12, %s2132_s30 }
  0x3c   :  { %148 = vrot.lane.b32.xlu1 %v146_v13, %s2133_s3  ;;  %141 = vrot.lane.b32.xlu0 %v139_v14, %s2134_s4 }
  0x40   :  { %170 = vrot.lane.b32.xlu1 %v168_v15, %s2129_s27  ;;  %184 = vrot.lane.b32.xlu0 %v182_v16, %s2131_s29  ;;  %s2156_s27 = smov 84  }
  0x44   :  { %177 = vrot.lane.b32.xlu1 %v175_v17, %s2132_s30  ;;  %155 = vrot.lane.b32.xlu0 %v153_v18, %s2135_s5  ;;  %s2158_s30 = smov 85  }
  0x48   :  { %196 = vrot.lane.b32.xlu1 %v194_v19, %s2134_s4  ;;  %162 = vrot.lane.b32.xlu0 %v160_v20, %s2136_s6  ;;  %v1455_v19 = vlaneseq  ;;  %v2149_v20 = vmov 1.0   ;;  %s2160_s4 = smov 87  }
  0x4c   :  { %210 = vrot.lane.b32.xlu1 %v208_v21, %s2135_s5  ;;  %203 = vrot.lane.b32.xlu0 %v201_v22, %s2133_s3  ;;  %s2159_s3 = smov 88   ;;  %s2161_s5 = smov 105  }
  0x50   :  { %224 = vrot.lane.b32.xlu1 %v222_v23, %s2137_s7  ;;  %217 = vrot.lane.b32.xlu0 %v215_v24, %s2136_s6  ;;  %s2162_s6 = smov 104  }
  0x54   :  { %238 = vrot.lane.b32.xlu1 %v236_v25, %s2138_s8  ;;  %231 = vrot.lane.b32.xlu0 %v229_v26, %s2139_s9  ;;  %s2163_s8 = smov 107   ;;  %s2164_s9 = smov 124  }
  0x58   :  { %252 = vrot.lane.b32.xlu1 %v250_v27, %s2140_s10  ;;  %245 = vrot.lane.b32.xlu0 %v243_v28, %s2141_s11  ;;  %s2165_s10 = smov 108   ;;  %s2170_s11 = smov 92  }
  0x5c   :  { %276 = vrot.lane.b32.xlu1 %v274_v29, %s2142_s14  ;;  %258 = vrot.lane.b32.xlu0 %v256_v30, %s2143_s15  ;;  %s2171_s14 = smov 80  }
  0x60   :  { %264 = vrot.lane.b32.xlu0 %v262_v31, %s2144_s16  ;;  %270 = vrot.lane.b32.xlu1 %v268_v32, %s2145_s17  ;;  %s2173_s16 = smov 76   ;;  %s2174_s17 = smov 100  }
  0x96   :  { %v62_v33 = vpop.permute.xlu1 %61  ;;  %v48_v34 = vpop.permute.xlu0 %47 }
  0x97   :  { %51 = vst.msk [vmem:[#allocation2] sm:$0xf] %vm50_vm3, %v48_v34 }
  0x9a   :  { %v69_v35 = vpop.permute.xlu1 %68  ;;  %v55_v36 = vpop.permute.xlu0 %54 }
  0x9b   :  { %58 = vst.msk [vmem:[#allocation2] sm:$0xf] %vm57_vm4, %v55_v36 }
  0x9c   :  { %65 = vst.msk [vmem:[#allocation2] sm:$0xf] %vm64_vm5, %v62_v33 }
  0x9d   :  { %72 = vst.msk [vmem:[#allocation2] sm:$0xf] %vm3028_vm6, %v69_v35  ;;  %vm180_vm6 = vcmask 929552  }
  0x9e   :  { %v88_v37 = vpop.permute.xlu1 %87  ;;  %v76_v38 = vpop.permute.xlu0 %75 }
  0x9f   :  { %v77_v39 = vrot.slane %v76_v38, 4 }
  0xa1   :  { %v79_v41 = vsel %vm78_vm9, %v77_v39, %v76_v38  ;;  %vm144_vm9 = vcmask 339152  }
  0xa2   :  { %v102_v42 = vpop.permute.xlu1 %101  ;;  %v95_v43 = vpop.permute.xlu0 %94  ;;  %84 = vst.msk [vmem:[#allocation2] sm:$0xff] %vm2241_vm10, %v79_v41 }
  0xa3   :  { %91 = vst.msk [vmem:[#allocation2 + $0x4] sm:$0xf] %vm90_vm11, %v88_v37  ;;  %vm151_vm11 = vcmask 503152  }
  0xa4   :  { %98 = vst.msk [vmem:[#allocation2 + $0x4] sm:$0xf] %vm97_vm12, %v95_v43  ;;  %vm173_vm12 = vcmask 765552  }
  0xa5   :  { %105 = vst.msk [vmem:[#allocation2 + $0x4] sm:$0xf] %vm104_vm13, %v102_v42  ;;  %vm190_vm13 = vcmask 1044400  }
  0xa6   :  { %v116_v44 = vpop.permute.xlu1 %115  ;;  %v109_v45 = vpop.permute.xlu0 %108 }
  0xa7   :  { %112 = vst.msk [vmem:[#allocation2 + $0x4] sm:$0xf] %vm111_vm14, %v109_v45  ;;  %vm191_vm14 = vcmask 48132  }
  0xa8   :  { %119 = vst.msk [vmem:[#allocation2 + $0x4] sm:$0xf] %vm118_vm15, %v116_v44  ;;  %vm187_vm15 = vcmask 703488   ;;  %vm192_vm1 = vmor %vm191_vm14, %vm190_vm13  ;;  %vm234_vm13 = vcmask 1027952   ;;  %vm248_vm14 = vcmask 306352  }
  0xaa   :  { %v135_v46 = vpop.permute.xlu1 %134  ;;  %v123_v47 = vpop.permute.xlu0 %122 }
  0xab   :  { %v124_v48 = vrot.slane %v123_v47, 4 }
  0xad   :  { %v126_v49 = vsel %vm125_vm2, %v124_v48, %v123_v47  ;;  %vm199_vm2 = vcmask 207952  }
  0xae   :  { %v149_v50 = vpop.permute.xlu1 %148  ;;  %v142_v51 = vpop.permute.xlu0 %141  ;;  %131 = vst.msk [vmem:[#allocation2 + $0x4] sm:$0xff] %vm130_vm7, %v126_v49  ;;  %vm165_vm7 = vcmask 831152  }
  0xaf   :  { %138 = vst.msk [vmem:[#allocation2 + $0x8] sm:$0xf] %vm137_vm8, %v135_v46  ;;  %vm206_vm8 = vcmask 371952  }
  0xb0   :  { %145 = vst.msk [vmem:[#allocation2 + $0x8] sm:$0xf] %vm144_vm9, %v142_v51  ;;  %vm213_vm9 = vcmask 535952  }
  0xb1   :  { %152 = vst.msk [vmem:[#allocation2 + $0x8] sm:$0xf] %vm151_vm11, %v149_v50  ;;  %vm220_vm11 = vcmask 699952  }
  0xb2   :  { %v171_v52 = vpop.permute.xlu1 %170  ;;  %v185_v53 = vpop.permute.xlu0 %184 }
  0xb3   :  { %174 = vst.msk [vmem:[#allocation2 + $0xc] sm:$0xf] %vm173_vm12, %v171_v52  ;;  %v186_v54 = vrot.slane %v185_v53, 4  ;;  %vm227_vm12 = vcmask 863952  }
  0xb5   :  { %v283_v55 = vld [vmem:[#allocation2] sm:$0xff]  ;;  %v188_v59 = vsel %vm187_vm15, %v186_v54, %v185_v53 }
  0xb6   :  { %v178_v56 = vpop.permute.xlu1 %177  ;;  %v156_v57 = vpop.permute.xlu0 %155  ;;  %v290_v58 = vcombine.high %v283_v55, %v283_v55  ;;  %296 = vst [vmem:[#allocation3] sm:$0xf] %v283_v55  ;;  %v2274_v18 = vld [vmem:[#allocation2] sm:$0xff] }
  0xb7   :  { %181 = vst.msk [vmem:[#allocation2 + $0xc] sm:$0xf] %vm180_vm6, %v178_v56  ;;  %vm241_vm6 = vcmask 142352   ;;  %v2298_v21 = vcombine.high %v2274_v18, %v2274_v18  ;;  %v2306_v22 = vcombine.low %v2274_v18, %v2274_v18 }
  0xb8   :  { %159 = vst.msk [vmem:[#allocation2 + $0x8] sm:$0xf] %vm158_vm0, %v156_v57  ;;  %297 = vst [vmem:[#allocation3 + $0x8] sm:$0xf] %v290_v58  ;;  %vm279_vm0 = vcmask 80896  }
  0xb9   :  { %193 = vst.msk [vmem:[#allocation2 + $0xc] sm:$0xff] %vm192_vm1, %v188_v59  ;;  %vm3037_vm1 = vcmask 962352  }
  0xba   :  { %v197_v60 = vpop.permute.xlu1 %196  ;;  %v163_v61 = vpop.permute.xlu0 %162 }
  0xbb   :  { %200 = vst.msk [vmem:[#allocation2 + $0x10] sm:$0xf] %vm199_vm2, %v197_v60  ;;  %vm1283_vm2 = vcmask 384000  }
  0xbc   :  { %166 = vst.msk [vmem:[#allocation2 + $0x8] sm:$0xf] %vm165_vm7, %v163_v61  ;;  %vm1183_vm7 = vcmask 523264  }
  0xbe   :  { %v211_v62 = vpop.permute.xlu1 %210  ;;  %v204_v63 = vpop.permute.xlu0 %203 }
  0xbf   :  { %207 = vst.msk [vmem:[#allocation2 + $0x10] sm:$0xf] %vm206_vm8, %v204_v63  ;;  %vm377_vm8 = vcmask 1031168  }
  0xc0   :  { %214 = vst.msk [vmem:[#allocation2 + $0x10] sm:$0xf] %vm213_vm9, %v211_v62  ;;  %vm1083_vm9 = vcmask 539648  }
  0xc2   :  { %v225_v1 = vpop.permute.xlu1 %224  ;;  %v218_v2 = vpop.permute.xlu0 %217 }
  0xc3   :  { %v2248_v0 = vld [vmem:[#allocation2 + $0x8] sm:$0xff]  ;;  %221 = vst.msk [vmem:[#allocation2 + $0x10] sm:$0xf] %vm220_vm11, %v218_v2  ;;  %vm3029_vm11 = vcmask 1022976  }
  0xc4   :  { %298 = vst [vmem:[#allocation3 + $0x10] sm:$0xf] %v2248_v0  ;;  %v2253_v3 = vcombine.high %v2248_v0, %v2248_v0  ;;  %228 = vst.msk [vmem:[#allocation2 + $0x10] sm:$0xf] %vm227_vm12, %v225_v1  ;;  %v2354_v24 = vcombine.low %v2248_v0, %v2248_v0  ;;  %vm1333_vm12 = vcmask 375808  }
  0xc6   :  { %299 = vst [vmem:[#allocation3 + $0x18] sm:$0xf] %v2253_v3  ;;  %v239_v4 = vpop.permute.xlu1 %238  ;;  %v232_v5 = vpop.permute.xlu0 %231 }
  0xc7   :  { %242 = vst.msk [vmem:[#allocation2 + $0x14] sm:$0xf] %vm241_vm6, %v239_v4  ;;  %vm1233_vm6 = vcmask 392192  }
  0xc8   :  { %235 = vst.msk [vmem:[#allocation2 + $0x10] sm:$0xf] %vm234_vm13, %v232_v5  ;;  %vm1133_vm13 = vcmask 531456  }
  0xca   :  { %v253_v6 = vpop.permute.xlu1 %252  ;;  %v246_v7 = vpop.permute.xlu0 %245 }
  0xcb   :  { %249 = vst.msk [vmem:[#allocation2 + $0x14] sm:$0xf] %vm248_vm14, %v246_v7  ;;  %vm1033_vm14 = vcmask 547840  }
  0xcc   :  { %255 = vst.msk [vmem:[#allocation2 + $0x14] sm:$0xf] %vm50_vm3, %v253_v6  ;;  %vm1457_vm3 = vcmp.lt.s32.totalorder %v1455_v19, 840 }
  0xcd   :  { %1460 = vst.msk [vmem:[#allocation3 + $0x2a4] ss:$8 sm:$0xf] %vm1457_vm3, %v2149_v20  ;;  %1461 = vst.msk [vmem:[#allocation3 + $0x2a4] ss:$8 sm:$0x70] %vm1457_vm3, %v2149_v20 }
  0xce   :  { %v277_v8 = vpop.permute.xlu1 %276  ;;  %v259_v9 = vpop.permute.xlu0 %258  ;;  %vm888_vm3 = vcmask 695296  }
  0xcf   :  { %261 = vst.msk [vmem:[#allocation2 + $0x14] sm:$0xf] %vm57_vm4, %v259_v9  ;;  %v278_v10 = vrot.slane %v277_v8, 4  ;;  %vm330_vm4 = vcmask 1039360  }
  0xd1   :  { %v280_v13 = vsel %vm279_vm0, %v278_v10, %v277_v8  ;;  %vm934_vm0 = vcmask 687104  }
  0xd2   :  { %v265_v11 = vpop.permute.xlu0 %264  ;;  %v271_v12 = vpop.permute.xlu1 %270 }
  0xd3   :  { %267 = vst.msk [vmem:[#allocation2 + $0x14] sm:$0xf] %vm64_vm5, %v265_v11  ;;  %vm1433_vm5 = vcmask 359424  }
  0xd4   :  { %273 = vst.msk [vmem:[#allocation2 + $0x14] sm:$0xf] %vm3037_vm1, %v271_v12  ;;  %vm983_vm1 = vcmask 556032  }
  0xd5   :  { %282 = vst.msk [vmem:[#allocation2 + $0x14] sm:$0xff] %vm2241_vm10, %v280_v13  ;;  %vm1383_vm10 = vcmask 367616  }
  0xdc   :  { %v2262_v14 = vld [vmem:[#allocation2 + $0x10] sm:$0xff]  ;;  %v355_v15 = vld [vmem:[#allocation2 + $0x18] sm:$0xf] }
  0xdd   :  { %375 = vrot.lane.b32.xlu1 %v355_v15, %s2143_s15  ;;  %300 = vst [vmem:[#allocation3 + $0x20] sm:$0xf] %v2262_v14  ;;  %v2033_v16 = vld [vmem:[#allocation2 + $0x18] ss:$0 sps:$4 sm:$0xff]   ;;  %v2268_v17 = vcombine.high %v2262_v14, %v2262_v14  ;;  %v2316_v23 = vcombine.low %v2262_v14, %v2262_v14 }
  0xde   :  { %328 = vrot.lane.b32.xlu0 %v2033_v16, %s2146_s18  ;;  %v2518_v6 = vld [vmem:[#allocation2 + $0x18] sm:$0xff] }
  0xdf   :  { %301 = vst [vmem:[#allocation3 + $0x28] sm:$0xf] %v2268_v17 }
  0xe1   :  { %326 = vrot.lane.b32.xlu1 %v2262_v14, %s2146_s18 }
  0xe2   :  { %1369 = vrot.lane.b32.xlu0 %v2274_v18, %s2147_s19 }
  0xe5   :  { %371 = vrot.lane.b32.xlu1 %v2262_v14, %s2143_s15 }
  0xe6   :  { %1317 = vrot.lane.b32.xlu0 %v2274_v18, %s2124_s22 }
  0xe9   :  { %318 = vrot.lane.b32.xlu1 %v2274_v18, %s2146_s18 }
  0xea   :  { %1269 = vrot.lane.b32.xlu0 %v2274_v18, %s2148_s20 }
  0xed   :  { %363 = vrot.lane.b32.xlu1 %v2274_v18, %s2143_s15 }
  0xee   :  { %1217 = vrot.lane.b32.xlu0 %v2274_v18, %s2150_s0 }
  0xf1   :  { %412 = vrot.lane.b32.xlu1 %v2274_v18, %s2151_s1 }
  0xf2   :  { %1169 = vrot.lane.b32.xlu0 %v2274_v18, %s2152_s21 }
  0xf5   :  { %1417 = vrot.lane.b32.xlu1 %v2274_v18, %s2153_s23 }
  0xf6   :  { %1117 = vrot.lane.b32.xlu0 %v2274_v18, %s2154_s24 }
  0xf9   :  { %1419 = vrot.lane.b32.xlu1 %v2298_v21, %s2153_s23 }
  0xfa   :  { %1069 = vrot.lane.b32.xlu0 %v2274_v18, %s2128_s26 }
  0xfd   :  { %1367 = vrot.lane.b32.xlu1 %v2306_v22, %s2147_s19 }
  0xfe   :  { %1017 = vrot.lane.b32.xlu0 %v2274_v18, %s2155_s25 }
 0x101   :  { %1267 = vrot.lane.b32.xlu1 %v2306_v22, %s2148_s20 }
 0x102   :  { %324 = vrot.lane.b32.xlu0 %v2316_v23, %s2146_s18 }
 0x105   :  { %1167 = vrot.lane.b32.xlu1 %v2306_v22, %s2152_s21 }
 0x106   :  { %373 = vrot.lane.b32.xlu0 %v2268_v17, %s2143_s15 }
 0x109   :  { %1067 = vrot.lane.b32.xlu1 %v2306_v22, %s2128_s26 }
 0x10a   :  { %316 = vrot.lane.b32.xlu0 %v2306_v22, %s2146_s18 }
 0x10d   :  { %322 = vrot.lane.b32.xlu1 %v2248_v0, %s2146_s18 }
 0x10e   :  { %365 = vrot.lane.b32.xlu0 %v2298_v21, %s2143_s15 }
 0x111   :  { %367 = vrot.lane.b32.xlu1 %v2248_v0, %s2143_s15 }
 0x112   :  { %410 = vrot.lane.b32.xlu0 %v2306_v22, %s2151_s1 }
 0x115   :  { %1321 = vrot.lane.b32.xlu1 %v2248_v0, %s2124_s22 }
 0x116   :  { %1319 = vrot.lane.b32.xlu0 %v2298_v21, %s2124_s22 }
 0x119   :  { %1221 = vrot.lane.b32.xlu1 %v2248_v0, %s2150_s0 }
 0x11a   :  { %1219 = vrot.lane.b32.xlu0 %v2298_v21, %s2150_s0 }
 0x11d   :  { %1121 = vrot.lane.b32.xlu1 %v2248_v0, %s2154_s24 }
 0x11e   :  { %1119 = vrot.lane.b32.xlu0 %v2298_v21, %s2154_s24 }
 0x121   :  { %1021 = vrot.lane.b32.xlu1 %v2248_v0, %s2155_s25 }
 0x122   :  { %1019 = vrot.lane.b32.xlu0 %v2298_v21, %s2155_s25 }
 0x125   :  { %1371 = vrot.lane.b32.xlu1 %v2354_v24, %s2147_s19 }
 0x126   :  { %1421 = vrot.lane.b32.xlu0 %v2248_v0, %s2153_s23 }
 0x129   :  { %1271 = vrot.lane.b32.xlu1 %v2354_v24, %s2148_s20 }
 0x12a   :  { %320 = vrot.lane.b32.xlu0 %v2354_v24, %s2146_s18  ;;  %s2175_s18 = smov 60  }
 0x12d   :  { %1171 = vrot.lane.b32.xlu1 %v2354_v24, %s2152_s21 }
 0x12e   :  { %369 = vrot.lane.b32.xlu0 %v2253_v3, %s2143_s15  ;;  %s2172_s15 = smov 72  }
 0x131   :  { %1071 = vrot.lane.b32.xlu1 %v2354_v24, %s2128_s26 }
 0x132   :  { %414 = vrot.lane.b32.xlu0 %v2354_v24, %s2151_s1 }
 0x135   :  { %924 = vrot.lane.b32.xlu1 %v2248_v0, %s2156_s27 }
 0x136   :  { %922 = vrot.lane.b32.xlu0 %v2298_v21, %s2156_s27 }
 0x139   :  { %971 = vrot.lane.b32.xlu1 %v2354_v24, %s2157_s28 }
 0x13a   :  { %969 = vrot.lane.b32.xlu0 %v2274_v18, %s2157_s28 }
 0x13d   :  { %967 = vrot.lane.b32.xlu1 %v2306_v22, %s2157_s28 }
 0x13e   :  { %920 = vrot.lane.b32.xlu0 %v2274_v18, %s2156_s27 }
 0x141   :  { %832 = vrot.lane.b32.xlu1 %v2248_v0, %s2131_s29 }
 0x142   :  { %830 = vrot.lane.b32.xlu0 %v2298_v21, %s2131_s29 }
 0x145   :  { %878 = vrot.lane.b32.xlu1 %v2354_v24, %s2158_s30 }
 0x146   :  { %876 = vrot.lane.b32.xlu0 %v2274_v18, %s2158_s30 }
 0x149   :  { %874 = vrot.lane.b32.xlu1 %v2306_v22, %s2158_s30 }
 0x14a   :  { %828 = vrot.lane.b32.xlu0 %v2274_v18, %s2131_s29 }
 0x14d   :  { %739 = vrot.lane.b32.xlu1 %v2248_v0, %s2159_s3 }
 0x14e   :  { %737 = vrot.lane.b32.xlu0 %v2298_v21, %s2159_s3 }
 0x14f   :  { %v2400_v25 = vpop.permute.xlu1 %375 }
 0x150   :  { %v329_v26 = vpop.permute.xlu0 %328 }
 0x151   :  { %786 = vrot.lane.b32.xlu1 %v2354_v24, %s2160_s4 }
 0x152   :  { %784 = vrot.lane.b32.xlu0 %v2274_v18, %s2160_s4 }
 0x153   :  { %v327_v27 = vpop.permute.xlu1 %326 }
 0x154   :  { %v336_v28 = vsel %vm330_vm4, %v327_v27, %v329_v26  ;;  %v2409_v29 = vpop.permute.xlu0 %1369  ;;  %v2562_v26 = vcombine.low %v2518_v6, %v2518_v6 }
 0x155   :  { %349 = vst [vmem:[#allocation3 + $0x28] sm:$0xf0] %v336_v28  ;;  %782 = vrot.lane.b32.xlu1 %v2306_v22, %s2160_s4 }
 0x156   :  { %735 = vrot.lane.b32.xlu0 %v2274_v18, %s2159_s3 }
 0x157   :  { %v2413_v30 = vpop.permute.xlu1 %371 }
 0x158   :  { %v2417_v31 = vpop.permute.xlu0 %1317 }
 0x159   :  { %646 = vrot.lane.b32.xlu1 %v2248_v0, %s2161_s5 }
 0x15a   :  { %644 = vrot.lane.b32.xlu0 %v2298_v21, %s2161_s5 }
 0x15b   :  { %v2421_v32 = vpop.permute.xlu1 %318 }
 0x15c   :  { %v2425_v33 = vpop.permute.xlu0 %1269 }
 0x15d   :  { %693 = vrot.lane.b32.xlu1 %v2354_v24, %s2162_s6 }
 0x15e   :  { %691 = vrot.lane.b32.xlu0 %v2274_v18, %s2162_s6 }
 0x15f   :  { %v2429_v34 = vpop.permute.xlu1 %363 }
 0x160   :  { %v2433_v35 = vpop.permute.xlu0 %1217 }
 0x161   :  { %689 = vrot.lane.b32.xlu1 %v2306_v22, %s2162_s6 }
 0x162   :  { %642 = vrot.lane.b32.xlu0 %v2274_v18, %s2161_s5 }
 0x163   :  { %v2437_v36 = vpop.permute.xlu1 %412 }
 0x164   :  { %v2441_v37 = vpop.permute.xlu0 %1169 }
 0x165   :  { %553 = vrot.lane.b32.xlu1 %v2248_v0, %s2163_s8 }
 0x166   :  { %551 = vrot.lane.b32.xlu0 %v2298_v21, %s2163_s8 }
 0x167   :  { %v1418_v38 = vpop.permute.xlu1 %1417 }
 0x168   :  { %v2447_v39 = vpop.permute.xlu0 %1117 }
 0x169   :  { %600 = vrot.lane.b32.xlu1 %v2354_v24, %s2137_s7 }
 0x16a   :  { %598 = vrot.lane.b32.xlu0 %v2274_v18, %s2137_s7 }
 0x16b   :  { %v2451_v40 = vpop.permute.xlu1 %1419 }
 0x16c   :  { %v1434_v41 = vsel %vm1433_vm5, %v1418_v38, %v2451_v40  ;;  %v2457_v42 = vpop.permute.xlu0 %1069 }
 0x16d   :  { %1448 = vst [vmem:[#allocation3 + $0x2a0] sm:$0xf] %v1434_v41  ;;  %596 = vrot.lane.b32.xlu1 %v2306_v22, %s2137_s7 }
 0x16e   :  { %549 = vrot.lane.b32.xlu0 %v2274_v18, %s2163_s8 }
 0x16f   :  { %v1368_v43 = vpop.permute.xlu1 %1367 }
 0x170   :  { %v1384_v44 = vsel %vm1383_vm10, %v1368_v43, %v2409_v29  ;;  %v2465_v45 = vpop.permute.xlu0 %1017 }
 0x171   :  { %1398 = vst [vmem:[#allocation3 + $0x268] sm:$0xf0] %v1384_v44  ;;  %460 = vrot.lane.b32.xlu1 %v2248_v0, %s2164_s9 }
 0x172   :  { %458 = vrot.lane.b32.xlu0 %v2298_v21, %s2164_s9 }
 0x173   :  { %v1268_v46 = vpop.permute.xlu1 %1267 }
 0x174   :  { %v1284_v47 = vsel %vm1283_vm2, %v1268_v46, %v2425_v33  ;;  %v325_v48 = vpop.permute.xlu0 %324 }
 0x175   :  { %1298 = vst [vmem:[#allocation3 + $0x230] sm:$0xf0] %v1284_v47  ;;  %507 = vrot.lane.b32.xlu1 %v2354_v24, %s2165_s10  ;;  %v335_v49 = vsel %vm330_vm4, %v325_v48, %v327_v27 }
 0x176   :  { %348 = vst [vmem:[#allocation3 + $0x20] sm:$0xf0] %v335_v49  ;;  %505 = vrot.lane.b32.xlu0 %v2274_v18, %s2165_s10 }
 0x177   :  { %v1168_v50 = vpop.permute.xlu1 %1167 }
 0x178   :  { %v1184_v51 = vsel %vm1183_vm7, %v1168_v50, %v2441_v37  ;;  %v374_v52 = vpop.permute.xlu0 %373 }
 0x179   :  { %1198 = vst [vmem:[#allocation3 + $0x1f8] sm:$0xf0] %v1184_v51  ;;  %503 = vrot.lane.b32.xlu1 %v2306_v22, %s2165_s10  ;;  %v382_v53 = vsel %vm377_vm8, %v2413_v30, %v374_v52  ;;  %v383_v54 = vsel %vm377_vm8, %v374_v52, %v2400_v25 }
 0x17a   :  { %395 = vst [vmem:[#allocation3 + $0x58] sm:$0xf] %v382_v53  ;;  %396 = vst [vmem:[#allocation3 + $0x60] sm:$0xf] %v383_v54  ;;  %456 = vrot.lane.b32.xlu0 %v2274_v18, %s2164_s9 }
 0x17b   :  { %v1068_v55 = vpop.permute.xlu1 %1067 }
 0x17c   :  { %v1084_v56 = vsel %vm1083_vm9, %v1068_v55, %v2457_v42  ;;  %v317_v57 = vpop.permute.xlu0 %316 }
 0x17d   :  { %1098 = vst [vmem:[#allocation3 + $0x1c0] sm:$0xf0] %v1084_v56  ;;  %1425 = vrot.lane.b32.xlu1 %v2262_v14, %s2153_s23  ;;  %v331_v58 = vsel %vm330_vm4, %v317_v57, %v2421_v32 }
 0x17e   :  { %344 = vst [vmem:[#allocation3] sm:$0xf0] %v331_v58  ;;  %1423 = vrot.lane.b32.xlu0 %v2253_v3, %s2153_s23 }
 0x17f   :  { %v2494_v59 = vpop.permute.xlu1 %322 }
 0x180   :  { %v334_v60 = vsel %vm330_vm4, %v2494_v59, %v325_v48  ;;  %v366_v61 = vpop.permute.xlu0 %365 }
 0x181   :  { %347 = vst [vmem:[#allocation3 + $0x18] sm:$0xf0] %v334_v60  ;;  %1325 = vrot.lane.b32.xlu1 %v2262_v14, %s2124_s22  ;;  %v378_v62 = vsel %vm377_vm8, %v2429_v34, %v366_v61 }
 0x182   :  { %391 = vst [vmem:[#allocation3 + $0x38] sm:$0xf] %v378_v62  ;;  %1323 = vrot.lane.b32.xlu0 %v2253_v3, %s2124_s22 }
 0x183   :  { %v2504_v63 = vpop.permute.xlu1 %367 }
 0x184   :  { %v379_v1 = vsel %vm377_vm8, %v366_v61, %v2504_v63  ;;  %v411_v2 = vpop.permute.xlu0 %410 }
 0x185   :  { %392 = vst [vmem:[#allocation3 + $0x40] sm:$0xf] %v379_v1  ;;  %1375 = vrot.lane.b32.xlu1 %v2316_v23, %s2147_s19  ;;  %v425_v4 = vsel %vm3029_vm11, %v411_v2, %v2437_v36 }
 0x186   :  { %438 = vst [vmem:[#allocation3 + $0x38] sm:$0xf0] %v425_v4  ;;  %1373 = vrot.lane.b32.xlu0 %v2248_v0, %s2147_s19 }
 0x187   :  { %v2514_v5 = vpop.permute.xlu1 %1321 }
 0x188   :  { %v1320_v7 = vpop.permute.xlu0 %1319 }
 0x189   :  { %1429 = vrot.lane.b32.xlu1 %v2518_v6, %s2153_s23  ;;  %v1334_v8 = vsel %vm1333_vm12, %v2417_v31, %v1320_v7  ;;  %v1335_v9 = vsel %vm1333_vm12, %v1320_v7, %v2514_v5 }
 0x18a   :  { %1348 = vst [vmem:[#allocation3 + $0x268] sm:$0xf] %v1334_v8  ;;  %1349 = vst [vmem:[#allocation3 + $0x270] sm:$0xf] %v1335_v9  ;;  %1427 = vrot.lane.b32.xlu0 %v2268_v17, %s2153_s23 }
 0x18b   :  { %v2526_v10 = vpop.permute.xlu1 %1221 }
 0x18c   :  { %v1220_v11 = vpop.permute.xlu0 %1219 }
 0x18d   :  { %1225 = vrot.lane.b32.xlu1 %v2262_v14, %s2150_s0  ;;  %v1234_v12 = vsel %vm1233_vm6, %v2433_v35, %v1220_v11  ;;  %v1235_v13 = vsel %vm1233_vm6, %v1220_v11, %v2526_v10 }
 0x18e   :  { %1248 = vst [vmem:[#allocation3 + $0x230] sm:$0xf] %v1234_v12  ;;  %1249 = vst [vmem:[#allocation3 + $0x238] sm:$0xf] %v1235_v13  ;;  %1223 = vrot.lane.b32.xlu0 %v2253_v3, %s2150_s0 }
 0x18f   :  { %v2536_v15 = vpop.permute.xlu1 %1121 }
 0x190   :  { %v1120_v16 = vpop.permute.xlu0 %1119 }
 0x191   :  { %1275 = vrot.lane.b32.xlu1 %v2316_v23, %s2148_s20  ;;  %v1134_v18 = vsel %vm1133_vm13, %v2447_v39, %v1120_v16  ;;  %v1135_v19 = vsel %vm1133_vm13, %v1120_v16, %v2536_v15  ;;  %v1559_v49 = vld [vmem:[#allocation3 + $0x268] sm:$0xff] }
 0x192   :  { %1148 = vst [vmem:[#allocation3 + $0x1f8] sm:$0xf] %v1134_v18  ;;  %1149 = vst [vmem:[#allocation3 + $0x200] sm:$0xf] %v1135_v19  ;;  %1273 = vrot.lane.b32.xlu0 %v2248_v0, %s2148_s20 }
 0x193   :  { %v2546_v20 = vpop.permute.xlu1 %1021 }
 0x194   :  { %v1020_v21 = vpop.permute.xlu0 %1019 }
 0x195   :  { %1329 = vrot.lane.b32.xlu1 %v2518_v6, %s2124_s22  ;;  %v1034_v22 = vsel %vm1033_vm14, %v2465_v45, %v1020_v21  ;;  %v1035_v24 = vsel %vm1033_vm14, %v1020_v21, %v2546_v20 }
 0x196   :  { %1048 = vst [vmem:[#allocation3 + $0x1c0] sm:$0xf] %v1034_v22  ;;  %1049 = vst [vmem:[#allocation3 + $0x1c8] sm:$0xf] %v1035_v24  ;;  %1327 = vrot.lane.b32.xlu0 %v2268_v17, %s2124_s22 }
 0x197   :  { %v2556_v25 = vpop.permute.xlu1 %1371 }
 0x198   :  { %v1385_v27 = vsel %vm1383_vm10, %v2409_v29, %v2556_v25  ;;  %v2567_v28 = vpop.permute.xlu0 %1421 }
 0x199   :  { %1399 = vst [vmem:[#allocation3 + $0x270] sm:$0xf0] %v1385_v27  ;;  %1379 = vrot.lane.b32.xlu1 %v2562_v26, %s2147_s19  ;;  %v1435_v31 = vsel %vm1433_vm5, %v2451_v40, %v2567_v28  ;;  %v1547_v54 = vld [vmem:[#allocation3 + $0x1f8] sm:$0xff] }
 0x19a   :  { %1449 = vst [vmem:[#allocation3 + $0x2a8] sm:$0xf] %v1435_v31  ;;  %1377 = vrot.lane.b32.xlu0 %v2262_v14, %s2147_s19 }
 0x19b   :  { %v2574_v34 = vpop.permute.xlu1 %1271 }
 0x19c   :  { %v1285_v29 = vsel %vm1283_vm2, %v2425_v33, %v2574_v34  ;;  %v321_v35 = vpop.permute.xlu0 %320 }
 0x19d   :  { %1299 = vst [vmem:[#allocation3 + $0x238] sm:$0xf0] %v1285_v29  ;;  %1125 = vrot.lane.b32.xlu1 %v2262_v14, %s2154_s24  ;;  %v332_v38 = vsel %vm330_vm4, %v2421_v32, %v321_v35  ;;  %v333_v39 = vsel %vm330_vm4, %v321_v35, %v2494_v59  ;;  %v1541_v58 = vld [vmem:[#allocation3 + $0x1c0] sm:$0xff]  ;;  %vm3031_vm4 = vcmask 719872  }
 0x19e   :  { %345 = vst [vmem:[#allocation3 + $0x8] sm:$0xf0] %v332_v38  ;;  %346 = vst [vmem:[#allocation3 + $0x10] sm:$0xf0] %v333_v39  ;;  %1123 = vrot.lane.b32.xlu0 %v2253_v3, %s2154_s24 }
 0x19f   :  { %v2587_v40 = vpop.permute.xlu1 %1171 }
 0x1a0   :  { %v1185_v33 = vsel %vm1183_vm7, %v2441_v37, %v2587_v40  ;;  %v370_v41 = vpop.permute.xlu0 %369  ;;  %v1565_v37 = vld [vmem:[#allocation3 + $0x2a0] sm:$0xff]  ;;  %v1560_v47 = vld [vmem:[#allocation3 + $0x270] sm:$0xff] }
 0x1a1   :  { %1199 = vst [vmem:[#allocation3 + $0x200] sm:$0xf0] %v1185_v33  ;;  %1175 = vrot.lane.b32.xlu1 %v2316_v23, %s2152_s21  ;;  %v380_v32 = vsel %vm377_vm8, %v2504_v63, %v370_v41  ;;  %v381_v43 = vsel %vm377_vm8, %v370_v41, %v2413_v30  ;;  %v1566_v44 = vld [vmem:[#allocation3 + $0x2a8] sm:$0xff]  ;;  %vm3030_vm8 = vcmask 711680  }
 0x1a2   :  { %393 = vst [vmem:[#allocation3 + $0x48] sm:$0xf] %v380_v32  ;;  %394 = vst [vmem:[#allocation3 + $0x50] sm:$0xf] %v381_v43  ;;  %1595 = vmatprep.subr.mxu0 %v1566_v44  ;;  %1173 = vrot.lane.b32.xlu0 %v2248_v0, %s2152_s21  ;;  %v2684_v43 = vld [vmem:[#allocation2 + $0x10] sm:$0xff] }
 0x1a3   :  { %v2600_v45 = vpop.permute.xlu1 %1071  ;;  %1596 = vmatpush1.msra.mxu0 %v1565_v37 }
 0x1a4   :  { %v1085_v46 = vsel %vm1083_vm9, %v2457_v42, %v2600_v45  ;;  %v1554_v48 = vld [vmem:[#allocation3 + $0x238] sm:$0xff]  ;;  %1597 = vmatprep.subr.mxu0 %v1560_v47  ;;  %v2609_v30 = vpop.permute.xlu0 %414  ;;  %v1553_v42 = vld [vmem:[#allocation3 + $0x230] sm:$0xff] }
 0x1a5   :  { %1099 = vst [vmem:[#allocation3 + $0x1c8] sm:$0xf0] %v1085_v46  ;;  %1229 = vrot.lane.b32.xlu1 %v2518_v6, %s2150_s0  ;;  %v426_v50 = vsel %vm3029_vm11, %v2437_v36, %v2609_v30  ;;  %1598 = vmatpush1.msra.mxu0 %v1559_v49  ;;  %vm3033_vm11 = vcmask 859136  }
 0x1a6   :  { %439 = vst [vmem:[#allocation3 + $0x40] sm:$0xf0] %v426_v50  ;;  %1599 = vmatprep.subr.mxu0 %v1554_v48  ;;  %1227 = vrot.lane.b32.xlu0 %v2268_v17, %s2150_s0  ;;  %v2696_v48 = vcombine.low %v2684_v43, %v2684_v43 }
 0x1a7   :  { %v2614_v51 = vpop.permute.xlu1 %924  ;;  %1600 = vmatpush1.msra.mxu0 %v1553_v42 }
 0x1a8   :  { %v1548_v52 = vld [vmem:[#allocation3 + $0x200] sm:$0xff]  ;;  %v923_v53 = vpop.permute.xlu0 %922 }
 0x1a9   :  { %1279 = vrot.lane.b32.xlu1 %v2562_v26, %s2148_s20  ;;  %1601 = vmatprep.subr.mxu0 %v1548_v52  ;;  %v936_v36 = vsel %vm934_vm0, %v923_v53, %v2614_v51 }
 0x1aa   :  { %1602 = vmatpush1.msra.mxu0 %v1547_v54  ;;  %949 = vst [vmem:[#allocation3 + $0x190] sm:$0xf] %v936_v36  ;;  %1277 = vrot.lane.b32.xlu0 %v2262_v14, %s2148_s20  ;;  %v912_v54 = vld [vmem:[#allocation2 + $0x18] sm:$0xf] }
 0x1ab   :  { %v2622_v55 = vpop.permute.xlu1 %971 }
 0x1ac   :  { %v1542_v56 = vld [vmem:[#allocation3 + $0x1c8] sm:$0xff]  ;;  %v970_v57 = vpop.permute.xlu0 %969 }
 0x1ad   :  { %1025 = vrot.lane.b32.xlu1 %v2262_v14, %s2155_s25  ;;  %1603 = vmatprep.subr.mxu0 %v1542_v56  ;;  %v985_v59 = vsel %vm983_vm1, %v970_v57, %v2622_v55 }
 0x1ae   :  { %1604 = vmatpush1.msra.mxu0 %v1541_v58  ;;  %999 = vst [vmem:[#allocation3 + $0x190] sm:$0xf0] %v985_v59  ;;  %1023 = vrot.lane.b32.xlu0 %v2253_v3, %s2155_s25 }
 0x1af   :  { %v968_v60 = vpop.permute.xlu1 %967 }
 0x1b0   :  { %v984_v61 = vsel %vm983_vm1, %v968_v60, %v970_v57  ;;  %v921_v62 = vpop.permute.xlu0 %920 }
 0x1b1   :  { %998 = vst [vmem:[#allocation3 + $0x188] sm:$0xf0] %v984_v61  ;;  %1075 = vrot.lane.b32.xlu1 %v2316_v23, %s2128_s26  ;;  %v935_v63 = vsel %vm934_vm0, %v921_v62, %v923_v53 }
 0x1b2   :  { %948 = vst [vmem:[#allocation3 + $0x188] sm:$0xf] %v935_v63  ;;  %1073 = vrot.lane.b32.xlu0 %v2248_v0, %s2128_s26 }
 0x1b3   :  { %v2636_v1 = vpop.permute.xlu1 %832 }
 0x1b4   :  { %v831_v2 = vpop.permute.xlu0 %830 }
 0x1b5   :  { %1129 = vrot.lane.b32.xlu1 %v2518_v6, %s2154_s24  ;;  %v843_v4 = vsel %vm187_vm15, %v831_v2, %v2636_v1  ;;  %v1536_v7 = vld [vmem:[#allocation3 + $0x190] sm:$0xff] }
 0x1b6   :  { %856 = vst [vmem:[#allocation3 + $0x158] sm:$0xf] %v843_v4  ;;  %1127 = vrot.lane.b32.xlu0 %v2268_v17, %s2154_s24  ;;  %1605 = vmatprep.subr.mxu0 %v1536_v7 }
 0x1b7   :  { %v2644_v8 = vpop.permute.xlu1 %878 }
 0x1b8   :  { %v877_v9 = vpop.permute.xlu0 %876 }
 0x1b9   :  { %1179 = vrot.lane.b32.xlu1 %v2562_v26, %s2152_s21  ;;  %v890_v11 = vsel %vm888_vm3, %v877_v9, %v2644_v8  ;;  %v1535_v12 = vld [vmem:[#allocation3 + $0x188] sm:$0xff] }
 0x1ba   :  { %903 = vst [vmem:[#allocation3 + $0x158] sm:$0xf0] %v890_v11  ;;  %1177 = vrot.lane.b32.xlu0 %v2262_v14, %s2152_s21  ;;  %1606 = vmatpush1.msra.mxu0 %v1535_v12  ;;  %v820_v11 = vld [vmem:[#allocation2 + $0x18] sm:$0xf] }
 0x1bb   :  { %v875_v13 = vpop.permute.xlu1 %874 }
 0x1bc   :  { %v889_v16 = vsel %vm888_vm3, %v875_v13, %v877_v9  ;;  %v829_v18 = vpop.permute.xlu0 %828 }
 0x1bd   :  { %902 = vst [vmem:[#allocation3 + $0x150] sm:$0xf0] %v889_v16  ;;  %928 = vrot.lane.b32.xlu1 %v2262_v14, %s2156_s27  ;;  %v842_v19 = vsel %vm187_vm15, %v829_v18, %v831_v2 }
 0x1be   :  { %855 = vst [vmem:[#allocation3 + $0x150] sm:$0xf] %v842_v19  ;;  %926 = vrot.lane.b32.xlu0 %v2253_v3, %s2156_s27  ;;  %v2042_v19 = vld [vmem:[#allocation2 + $0x18] ss:$0 sps:$4 sm:$0xff]  }
 0x1bf   :  { %v2658_v21 = vpop.permute.xlu1 %739 }
 0x1c0   :  { %v738_v22 = vpop.permute.xlu0 %737 }
 0x1c1   :  { %975 = vrot.lane.b32.xlu1 %v2316_v23, %s2157_s28  ;;  %v751_v24 = vsel %vm3031_vm4, %v738_v22, %v2658_v21  ;;  %v1530_v27 = vld [vmem:[#allocation3 + $0x158] sm:$0xff] }
 0x1c2   :  { %764 = vst [vmem:[#allocation3 + $0x120] sm:$0xf] %v751_v24  ;;  %973 = vrot.lane.b32.xlu0 %v2248_v0, %s2157_s28  ;;  %1607 = vmatprep.subr.mxu0 %v1530_v27 }
 0x1c3   :  { %v2666_v31 = vpop.permute.xlu1 %786 }
 0x1c4   :  { %v785_v29 = vpop.permute.xlu0 %784 }
 0x1c5   :  { %1029 = vrot.lane.b32.xlu1 %v2518_v6, %s2155_s25  ;;  %v798_v23 = vsel %vm3030_vm8, %v785_v29, %v2666_v31  ;;  %v1529_v35 = vld [vmem:[#allocation3 + $0x150] sm:$0xff] }
 0x1c6   :  { %811 = vst [vmem:[#allocation3 + $0x120] sm:$0xf0] %v798_v23  ;;  %1027 = vrot.lane.b32.xlu0 %v2268_v17, %s2155_s25  ;;  %1608 = vmatpush1.msra.mxu0 %v1529_v35 }
 0x1c7   :  { %v783_v38 = vpop.permute.xlu1 %782 }
 0x1c8   :  { %v797_v39 = vsel %vm3030_vm8, %v783_v38, %v785_v29  ;;  %v736_v33 = vpop.permute.xlu0 %735  ;;  %vm3032_vm8 = vcmask 850944  }
 0x1c9   :  { %810 = vst [vmem:[#allocation3 + $0x118] sm:$0xf0] %v797_v39  ;;  %1079 = vrot.lane.b32.xlu1 %v2562_v26, %s2128_s26  ;;  %v750_v41 = vsel %vm3031_vm4, %v736_v33, %v738_v22  ;;  %vm563_vm4 = vcmask 875520  }
 0x1ca   :  { %763 = vst [vmem:[#allocation3 + $0x118] sm:$0xf] %v750_v41  ;;  %1077 = vrot.lane.b32.xlu0 %v2262_v14, %s2128_s26 }
 0x1cb   :  { %v2680_v32 = vpop.permute.xlu1 %646 }
 0x1cc   :  { %v645_v44 = vpop.permute.xlu0 %644 }
 0x1cd   :  { %836 = vrot.lane.b32.xlu1 %v2262_v14, %s2131_s29  ;;  %v658_v37 = vsel %vm3033_vm11, %v645_v44, %v2680_v32  ;;  %v1524_v46 = vld [vmem:[#allocation3 + $0x120] sm:$0xff] }
 0x1ce   :  { %671 = vst [vmem:[#allocation3 + $0xe8] sm:$0xf] %v658_v37  ;;  %834 = vrot.lane.b32.xlu0 %v2253_v3, %s2131_s29  ;;  %1609 = vmatprep.subr.mxu0 %v1524_v46  ;;  %v727_v46 = vld [vmem:[#allocation2 + $0x18] sm:$0xf] }
 0x1cf   :  { %v2690_v47 = vpop.permute.xlu1 %693 }
 0x1d0   :  { %v692_v49 = vpop.permute.xlu0 %691 }
 0x1d1   :  { %882 = vrot.lane.b32.xlu1 %v2696_v48, %s2158_s30  ;;  %v705_v50 = vsel %vm3032_vm8, %v692_v49, %v2690_v47  ;;  %v1523_v42 = vld [vmem:[#allocation3 + $0x118] sm:$0xff] }
 0x1d2   :  { %718 = vst [vmem:[#allocation3 + $0xe8] sm:$0xf0] %v705_v50  ;;  %880 = vrot.lane.b32.xlu0 %v2248_v0, %s2158_s30  ;;  %1610 = vmatpush1.msra.mxu0 %v1523_v42 }
 0x1d3   :  { %v690_v52 = vpop.permute.xlu1 %689 }
 0x1d4   :  { %v704_v53 = vsel %vm3032_vm8, %v690_v52, %v692_v49  ;;  %v643_v36 = vpop.permute.xlu0 %642  ;;  %vm3034_vm8 = vcmask 867328   ;;  %v2762_v49 = vcombine.high %v2684_v43, %v2684_v43 }
 0x1d5   :  { %717 = vst [vmem:[#allocation3 + $0xe0] sm:$0xf0] %v704_v53  ;;  %932 = vrot.lane.b32.xlu1 %v912_v54, %s2156_s27  ;;  %v657_v56 = vsel %vm3033_vm11, %v643_v36, %v645_v44  ;;  %vm470_vm11 = vcmask 1014784   ;;  %v1500_v54 = vld [vmem:[#allocation3 + $0x40] sm:$0xff]  ;;  %v2043_v36 = vld [vmem:[#allocation2 + $0x18] ss:$0 sps:$4 sm:$0xff]  }
 0x1d6   :  { %670 = vst [vmem:[#allocation3 + $0xe0] sm:$0xf] %v657_v56  ;;  %930 = vrot.lane.b32.xlu0 %v2268_v17, %s2156_s27  ;;  %v1499_v56 = vld [vmem:[#allocation3 + $0x38] sm:$0xff] }
 0x1d7   :  { %v2707_v57 = vpop.permute.xlu1 %553 }
 0x1d8   :  { %v552_v58 = vpop.permute.xlu0 %551 }
 0x1d9   :  { %979 = vrot.lane.b32.xlu1 %v2562_v26, %s2157_s28  ;;  %v565_v59 = vsel %vm563_vm4, %v552_v58, %v2707_v57  ;;  %v1518_v60 = vld [vmem:[#allocation3 + $0xe8] sm:$0xff] }
 0x1da   :  { %578 = vst [vmem:[#allocation3 + $0xb0] sm:$0xf] %v565_v59  ;;  %977 = vrot.lane.b32.xlu0 %v2262_v14, %s2157_s28  ;;  %1611 = vmatprep.subr.mxu0 %v1518_v60 }
 0x1db   :  { %v2715_v61 = vpop.permute.xlu1 %600 }
 0x1dc   :  { %v599_v62 = vpop.permute.xlu0 %598 }
 0x1dd   :  { %743 = vrot.lane.b32.xlu1 %v2684_v43, %s2159_s3  ;;  %v612_v26 = vsel %vm3034_vm8, %v599_v62, %v2715_v61  ;;  %v1517_v63 = vld [vmem:[#allocation3 + $0xe0] sm:$0xff] }
 0x1de   :  { %625 = vst [vmem:[#allocation3 + $0xb0] sm:$0xf0] %v612_v26  ;;  %741 = vrot.lane.b32.xlu0 %v2253_v3, %s2159_s3  ;;  %1612 = vmatpush1.msra.mxu0 %v1517_v63 }
 0x1df   :  { %v597_v2 = vpop.permute.xlu1 %596 }
 0x1e0   :  { %v611_v4 = vsel %vm3034_vm8, %v597_v2, %v599_v62  ;;  %v550_v14 = vpop.permute.xlu0 %549  ;;  %vm517_vm8 = vcmask 883712   ;;  %v1493_v62 = vld [vmem:[#allocation3] sm:$0xff] }
 0x1e1   :  { %624 = vst [vmem:[#allocation3 + $0xa8] sm:$0xf0] %v611_v4  ;;  %790 = vrot.lane.b32.xlu1 %v2696_v48, %s2160_s4  ;;  %v564_v7 = vsel %vm563_vm4, %v550_v14, %v552_v58  ;;  %v1494_v58 = vld [vmem:[#allocation3 + $0x8] sm:$0xff]  ;;  %v2780_v4 = vld [vmem:[#allocation7] sm:$0xf]  ;;  %v2049_v14 = vld [vmem:[#allocation3 + $0x2d8] sm:$0xff] }
 0x1e2   :  { %577 = vst [vmem:[#allocation3 + $0xa8] sm:$0xf] %v564_v7  ;;  %788 = vrot.lane.b32.xlu0 %v2248_v0, %s2160_s4 }
 0x1e3   :  { %v2729_v9 = vpop.permute.xlu1 %460 }
 0x1e4   :  { %v459_v12 = vpop.permute.xlu0 %458 }
 0x1e5   :  { %840 = vrot.lane.b32.xlu1 %v820_v11, %s2131_s29  ;;  %v472_v13 = vsel %vm470_vm11, %v459_v12, %v2729_v9  ;;  %v1512_v16 = vld [vmem:[#allocation3 + $0xb0] sm:$0xff] }
 0x1e6   :  { %485 = vst [vmem:[#allocation3 + $0x78] sm:$0xf] %v472_v13  ;;  %838 = vrot.lane.b32.xlu0 %v2268_v17, %s2131_s29  ;;  %1613 = vmatprep.subr.mxu0 %v1512_v16  ;;  %s2168_s29 = smov 112  }
 0x1e7   :  { %v2736_v18 = vpop.permute.xlu1 %507 }
 0x1e8   :  { %v506_v22 = vpop.permute.xlu0 %505 }
 0x1e9   :  { %886 = vrot.lane.b32.xlu1 %v2042_v19, %s2158_s30  ;;  %v519_v24 = vsel %vm517_vm8, %v506_v22, %v2736_v18  ;;  %v1511_v27 = vld [vmem:[#allocation3 + $0xa8] sm:$0xff] }
 0x1ea   :  { %532 = vst [vmem:[#allocation3 + $0x78] sm:$0xf0] %v519_v24  ;;  %884 = vrot.lane.b32.xlu0 %v2684_v43, %s2158_s30  ;;  %1614 = vmatpush1.msra.mxu0 %v1511_v27 }
 0x1eb   :  { %v504_v29 = vpop.permute.xlu1 %503 }
 0x1ec   :  { %v518_v23 = vsel %vm517_vm8, %v504_v29, %v506_v22  ;;  %v457_v17 = vpop.permute.xlu0 %456  ;;  %v634_v29 = vld [vmem:[#allocation2 + $0x18] sm:$0xf] }
 0x1ed   :  { %531 = vst [vmem:[#allocation3 + $0x70] sm:$0xf0] %v518_v23  ;;  %650 = vrot.lane.b32.xlu1 %v2684_v43, %s2161_s5  ;;  %v471_v35 = vsel %vm470_vm11, %v457_v17, %v459_v12 }
 0x1ee   :  { %484 = vst [vmem:[#allocation3 + $0x70] sm:$0xf] %v471_v35  ;;  %648 = vrot.lane.b32.xlu0 %v2253_v3, %s2161_s5 }
 0x1ef   :  { %v1426_v38 = vpop.permute.xlu1 %1425 }
 0x1f0   :  { %v1424_v39 = vpop.permute.xlu0 %1423 }
 0x1f1   :  { %697 = vrot.lane.b32.xlu1 %v2696_v48, %s2162_s6  ;;  %v1436_v33 = vsel %vm1433_vm5, %v2567_v28, %v1424_v39  ;;  %v1437_v41 = vsel %vm1433_vm5, %v1424_v39, %v1426_v38  ;;  %v1506_v44 = vld [vmem:[#allocation3 + $0x78] sm:$0xff] }
 0x1f2   :  { %1450 = vst [vmem:[#allocation3 + $0x2b0] sm:$0xf] %v1436_v33  ;;  %1451 = vst [vmem:[#allocation3 + $0x2b8] sm:$0xf] %v1437_v41  ;;  %695 = vrot.lane.b32.xlu0 %v2248_v0, %s2162_s6  ;;  %1615 = vmatprep.subr.mxu0 %v1506_v44  ;;  %v2045_v33 = vld [vmem:[#allocation2 + $0x18] ss:$0 sps:$4 sm:$0xff]  }
 0x1f3   :  { %v2756_v37 = vpop.permute.xlu1 %1325 }
 0x1f4   :  { %v1324_v50 = vpop.permute.xlu0 %1323 }
 0x1f5   :  { %747 = vrot.lane.b32.xlu1 %v727_v46, %s2159_s3  ;;  %v1336_v28 = vsel %vm1333_vm12, %v2514_v5, %v1324_v50  ;;  %v1337_v42 = vsel %vm1333_vm12, %v1324_v50, %v2756_v37  ;;  %v1505_v52 = vld [vmem:[#allocation3 + $0x70] sm:$0xff] }
 0x1f6   :  { %1350 = vst [vmem:[#allocation3 + $0x278] sm:$0xf] %v1336_v28  ;;  %1351 = vst [vmem:[#allocation3 + $0x280] sm:$0xf] %v1337_v42  ;;  %745 = vrot.lane.b32.xlu0 %v2762_v49, %s2159_s3  ;;  %1616 = vmatpush1.msra.mxu0 %v1505_v52 }
 0x1f7   :  { %v2769_v53 = vpop.permute.xlu1 %1375  ;;  %1617 = vmatprep.subr.mxu0 %v1500_v54 }
 0x1f8   :  { %1618 = vmatpush1.msra.mxu0 %v1499_v56  ;;  %v1374_v5 = vpop.permute.xlu0 %1373 }
 0x1f9   :  { %794 = vrot.lane.b32.xlu1 %v2043_v36, %s2160_s4  ;;  %v1386_v59 = vsel %vm1383_vm10, %v2556_v25, %v1374_v5  ;;  %v1387_v60 = vsel %vm1383_vm10, %v1374_v5, %v2769_v53  ;;  %1619 = vmatprep.subr.mxu0 %v1494_v58  ;;  %v1568_v26 = vld [vmem:[#allocation3 + $0x2b8] sm:$0xff]  ;;  %v1567_v63 = vld [vmem:[#allocation3 + $0x2b0] sm:$0xff] }
 0x1fa   :  { %1400 = vst [vmem:[#allocation3 + $0x278] sm:$0xf0] %v1386_v59  ;;  %1401 = vst [vmem:[#allocation3 + $0x280] sm:$0xf0] %v1387_v60  ;;  %792 = vrot.lane.b32.xlu0 %v2684_v43, %s2160_s4  ;;  %1620 = vmatpush1.msra.mxu0 %v1493_v62 }
 0x1fb   :  { %v1430_v2 = vpop.permute.xlu1 %1429  ;;  %1666 = vmatprep.subr.mxu1 %v1568_v26  ;;  %1731 = vmatprep.subr.mxu0 %v2049_v14 }
 0x1fc   :  { %1667 = vmatpush1.msra.mxu1 %v1567_v63  ;;  %v1428_v25 = vpop.permute.xlu0 %1427  ;;  %1654 = vmatmul.mubr.f32.vlgmr.msra.gmra.mxu0 %v2780_v4  ;;  %v2046_v63 = vld [vmem:[#allocation2 + $0x18] ss:$0 sps:$4 sm:$0xff]  }
 0x1fd   :  { %557 = vrot.lane.b32.xlu1 %v2684_v43, %s2163_s8  ;;  %v1438_v7 = vsel %vm1433_vm5, %v1426_v38, %v1428_v25  ;;  %v1439_v11 = vsel %vm1433_vm5, %v1428_v25, %v1430_v2  ;;  %1732 = vmatpush1.msra.mxu0 %v2049_v14  ;;  %vm3038_vm5 = vcmask 719872  }
 0x1fe   :  { %1452 = vst [vmem:[#allocation3 + $0x2c0] sm:$0xf] %v1438_v7  ;;  %1453 = vst [vmem:[#allocation3 + $0x2c8] sm:$0xf] %v1439_v11  ;;  %555 = vrot.lane.b32.xlu0 %v2253_v3, %s2163_s8  ;;  %1733 = vmatprep.subr.mxu0 %v2049_v14 }
 0x1ff   :  { %v2787_v12 = vpop.permute.xlu1 %1225  ;;  %1795 = vmatprep.mubr.f32.mxu0 %v2049_v14  ;;  %1734 = vmatpush1.msra.mxu0 %v2049_v14 }
 0x200   :  { %v1224_v13 = vpop.permute.xlu0 %1223  ;;  %1735 = vmatprep.subr.mxu0 %v2049_v14 }
 0x201   :  { %604 = vrot.lane.b32.xlu1 %v2696_v48, %s2137_s7  ;;  %v1236_v16 = vsel %vm1233_vm6, %v2526_v10, %v1224_v13  ;;  %v1237_v19 = vsel %vm1233_vm6, %v1224_v13, %v2787_v12  ;;  %v1562_v22 = vld [vmem:[#allocation3 + $0x280] sm:$0xff]  ;;  %v1561_v24 = vld [vmem:[#allocation3 + $0x278] sm:$0xff]  ;;  %1736 = vmatpush1.msra.mxu0 %v2049_v14 }
 0x202   :  { %1250 = vst [vmem:[#allocation3 + $0x240] sm:$0xf] %v1236_v16  ;;  %1251 = vst [vmem:[#allocation3 + $0x248] sm:$0xf] %v1237_v19  ;;  %602 = vrot.lane.b32.xlu0 %v2248_v0, %s2137_s7  ;;  %1668 = vmatprep.subr.mxu1 %v1562_v22  ;;  %v448_v22 = vld [vmem:[#allocation2 + $0x18] sm:$0xf] }
 0x203   :  { %v2797_v27 = vpop.permute.xlu1 %1275  ;;  %1669 = vmatpush1.msra.mxu1 %v1561_v24 }
 0x204   :  { %v1274_v10 = vpop.permute.xlu0 %1273 }
 0x205   :  { %654 = vrot.lane.b32.xlu1 %v634_v29, %s2161_s5  ;;  %v1286_v23 = vsel %vm1283_vm2, %v2574_v34, %v1274_v10  ;;  %v1287_v17 = vsel %vm1283_vm2, %v1274_v10, %v2797_v27  ;;  %v1570_v35 = vld [vmem:[#allocation3 + $0x2c8] sm:$0xff]  ;;  %v1569_v38 = vld [vmem:[#allocation3 + $0x2c0] sm:$0xff] }
 0x206   :  { %1300 = vst [vmem:[#allocation3 + $0x240] sm:$0xf0] %v1286_v23  ;;  %1301 = vst [vmem:[#allocation3 + $0x248] sm:$0xf0] %v1287_v17  ;;  %652 = vrot.lane.b32.xlu0 %v2762_v49, %s2161_s5  ;;  %1737 = vmatprep.subr.mxu0 %v1570_v35 }
 0x207   :  { %v1330_v39 = vpop.permute.xlu1 %1329  ;;  %1738 = vmatpush1.msra.mxu0 %v1569_v38 }
 0x208   :  { %v1328_v41 = vpop.permute.xlu0 %1327 }
 0x209   :  { %701 = vrot.lane.b32.xlu1 %v2045_v33, %s2162_s6  ;;  %v1338_v34 = vsel %vm1333_vm12, %v2756_v37, %v1328_v41  ;;  %v1339_v44 = vsel %vm1333_vm12, %v1328_v41, %v1330_v39  ;;  %v1416_v41 = vcombine.high %v2518_v6, %v2518_v6  ;;  %vm3044_vm12 = vcmask 850944  }
 0x20a   :  { %1352 = vst [vmem:[#allocation3 + $0x288] sm:$0xf] %v1338_v34  ;;  %1353 = vst [vmem:[#allocation3 + $0x290] sm:$0xf] %v1339_v44  ;;  %699 = vrot.lane.b32.xlu0 %v2684_v43, %s2162_s6 }
 0x20b   :  { %v1380_v46 = vpop.permute.xlu1 %1379 }
 0x20c   :  { %v1378_v50 = vpop.permute.xlu0 %1377 }
 0x20d   :  { %464 = vrot.lane.b32.xlu1 %v2684_v43, %s2164_s9  ;;  %v1388_v28 = vsel %vm1383_vm10, %v2769_v53, %v1378_v50  ;;  %v1389_v42 = vsel %vm1383_vm10, %v1378_v50, %v1380_v46  ;;  %v1556_v52 = vld [vmem:[#allocation3 + $0x248] sm:$0xff]  ;;  %v1555_v54 = vld [vmem:[#allocation3 + $0x240] sm:$0xff]  ;;  %vm3039_vm10 = vmmov %vm3038_vm5 }
 0x20e   :  { %1402 = vst [vmem:[#allocation3 + $0x288] sm:$0xf0] %v1388_v28  ;;  %1403 = vst [vmem:[#allocation3 + $0x290] sm:$0xf0] %v1389_v42  ;;  %462 = vrot.lane.b32.xlu0 %v2253_v3, %s2164_s9  ;;  %1670 = vmatprep.subr.mxu1 %v1556_v52  ;;  %v541_v3 = vld [vmem:[#allocation2 + $0x18] sm:$0xf] }
 0x20f   :  { %v2819_v37 = vpop.permute.xlu1 %1125  ;;  %1671 = vmatpush1.msra.mxu1 %v1555_v54 }
 0x210   :  { %v1124_v36 = vpop.permute.xlu0 %1123 }
 0x211   :  { %511 = vrot.lane.b32.xlu1 %v2696_v48, %s2165_s10  ;;  %v1136_v53 = vsel %vm1133_vm13, %v2536_v15, %v1124_v36  ;;  %v1137_v56 = vsel %vm1133_vm13, %v1124_v36, %v2819_v37 }
 0x212   :  { %1150 = vst [vmem:[#allocation3 + $0x208] sm:$0xf] %v1136_v53  ;;  %1151 = vst [vmem:[#allocation3 + $0x210] sm:$0xf] %v1137_v56  ;;  %509 = vrot.lane.b32.xlu0 %v2248_v0, %s2165_s10 }
 0x213   :  { %v2829_v5 = vpop.permute.xlu1 %1175 }
 0x214   :  { %v1174_v58 = vpop.permute.xlu0 %1173 }
 0x215   :  { %561 = vrot.lane.b32.xlu1 %v541_v3, %s2163_s8  ;;  %v1186_v59 = vsel %vm1183_vm7, %v2587_v40, %v1174_v58  ;;  %v1187_v15 = vsel %vm1183_vm7, %v1174_v58, %v2829_v5  ;;  %v1564_v60 = vld [vmem:[#allocation3 + $0x290] sm:$0xff]  ;;  %v1563_v62 = vld [vmem:[#allocation3 + $0x288] sm:$0xff] }
 0x216   :  { %1200 = vst [vmem:[#allocation3 + $0x208] sm:$0xf0] %v1186_v59  ;;  %1201 = vst [vmem:[#allocation3 + $0x210] sm:$0xf0] %v1187_v15  ;;  %559 = vrot.lane.b32.xlu0 %v2762_v49, %s2163_s8  ;;  %1739 = vmatprep.subr.mxu0 %v1564_v60 }
 0x217   :  { %v1230_v26 = vpop.permute.xlu1 %1229  ;;  %1740 = vmatpush1.msra.mxu0 %v1563_v62 }
 0x218   :  { %v1228_v2 = vpop.permute.xlu0 %1227 }
 0x219   :  { %608 = vrot.lane.b32.xlu1 %v2046_v63, %s2137_s7  ;;  %v1238_v40 = vsel %vm1233_vm6, %v2787_v12, %v1228_v2  ;;  %v1239_v14 = vsel %vm1233_vm6, %v1228_v2, %v1230_v26  ;;  %vm3045_vm6 = vmmov %vm3044_vm12 }
 0x21a   :  { %1252 = vst [vmem:[#allocation3 + $0x250] sm:$0xf] %v1238_v40  ;;  %1253 = vst [vmem:[#allocation3 + $0x258] sm:$0xf] %v1239_v14  ;;  %606 = vrot.lane.b32.xlu0 %v2684_v43, %s2137_s7  ;;  %s2169_s7 = smov 96  }
 0x21b   :  { %v1280_v25 = vpop.permute.xlu1 %1279 }
 0x21c   :  { %v1278_v7 = vpop.permute.xlu0 %1277 }
 0x21d   :  { %418 = vrot.lane.b32.xlu1 %v2696_v48, %s2151_s1  ;;  %v1288_v11 = vsel %vm1283_vm2, %v2797_v27, %v1278_v7  ;;  %v1289_v13 = vsel %vm1283_vm2, %v1278_v7, %v1280_v25  ;;  %v1550_v16 = vld [vmem:[#allocation3 + $0x210] sm:$0xff]  ;;  %v1549_v19 = vld [vmem:[#allocation3 + $0x208] sm:$0xff]  ;;  %vm3040_vm2 = vcmask 711680  }
 0x21e   :  { %1302 = vst [vmem:[#allocation3 + $0x250] sm:$0xf0] %v1288_v11  ;;  %1303 = vst [vmem:[#allocation3 + $0x258] sm:$0xf0] %v1289_v13  ;;  %416 = vrot.lane.b32.xlu0 %v2248_v0, %s2151_s1  ;;  %1672 = vmatprep.subr.mxu1 %v1550_v16  ;;  %v2047_v0 = vld [vmem:[#allocation2 + $0x18] ss:$0 sps:$4 sm:$0xff]  }
 0x21f   :  { %v2851_v12 = vpop.permute.xlu1 %1025  ;;  %1673 = vmatpush1.msra.mxu1 %v1549_v19 }
 0x220   :  { %v1024_v48 = vpop.permute.xlu0 %1023 }
 0x221   :  { %468 = vrot.lane.b32.xlu1 %v448_v22, %s2164_s9  ;;  %v1036_v24 = vsel %vm1033_vm14, %v2546_v20, %v1024_v48  ;;  %v1037_v27 = vsel %vm1033_vm14, %v1024_v48, %v2851_v12 }
 0x222   :  { %1050 = vst [vmem:[#allocation3 + $0x1d0] sm:$0xf] %v1036_v24  ;;  %1051 = vst [vmem:[#allocation3 + $0x1d8] sm:$0xf] %v1037_v27  ;;  %466 = vrot.lane.b32.xlu0 %v2762_v49, %s2164_s9  ;;  %v2048_v49 = vld [vmem:[#allocation2 + $0x18] ss:$0 sps:$4 sm:$0xff]  }
 0x223   :  { %v2860_v29 = vpop.permute.xlu1 %1075 }
 0x224   :  { %v1074_v10 = vpop.permute.xlu0 %1073 }
 0x225   :  { %515 = vrot.lane.b32.xlu1 %v2047_v0, %s2165_s10  ;;  %v1086_v23 = vsel %vm1083_vm9, %v2600_v45, %v1074_v10  ;;  %v1087_v20 = vsel %vm1083_vm9, %v1074_v10, %v2860_v29  ;;  %v1558_v17 = vld [vmem:[#allocation3 + $0x258] sm:$0xff]  ;;  %v1557_v35 = vld [vmem:[#allocation3 + $0x250] sm:$0xff] }
 0x226   :  { %1100 = vst [vmem:[#allocation3 + $0x1d0] sm:$0xf0] %v1086_v23  ;;  %1101 = vst [vmem:[#allocation3 + $0x1d8] sm:$0xf0] %v1087_v20  ;;  %513 = vrot.lane.b32.xlu0 %v2684_v43, %s2165_s10  ;;  %1741 = vmatprep.subr.mxu0 %v1558_v17 }
 0x227   :  { %v1130_v38 = vpop.permute.xlu1 %1129  ;;  %1742 = vmatpush1.msra.mxu0 %v1557_v35 }
 0x228   :  { %v1128_v39 = vpop.permute.xlu0 %1127 }
 0x229   :  { %422 = vrot.lane.b32.xlu1 %v2048_v49, %s2151_s1  ;;  %v1138_v45 = vsel %vm1133_vm13, %v2819_v37, %v1128_v39  ;;  %v1139_v33 = vsel %vm1133_vm13, %v1128_v39, %v1130_v38  ;;  %vm3046_vm13 = vmmov %vm3038_vm5 }
 0x22a   :  { %1152 = vst [vmem:[#allocation3 + $0x218] sm:$0xf] %v1138_v45  ;;  %1153 = vst [vmem:[#allocation3 + $0x220] sm:$0xf] %v1139_v33  ;;  %420 = vrot.lane.b32.xlu0 %v2684_v43, %s2151_s1  ;;  %s2178_s1 = smov 36  }
 0x22b   :  { %v1180_v34 = vpop.permute.xlu1 %1179 }
 0x22c   :  { %v1178_v44 = vpop.permute.xlu0 %1177 }
 0x22d   :  { %1031 = vrot.lane.b32.xlu1 %v1416_v41, %s2155_s25  ;;  %v1188_v46 = vsel %vm1183_vm7, %v2829_v5, %v1178_v44  ;;  %v1189_v50 = vsel %vm1183_vm7, %v1178_v44, %v1180_v34  ;;  %v1544_v28 = vld [vmem:[#allocation3 + $0x1d8] sm:$0xff]  ;;  %v1543_v42 = vld [vmem:[#allocation3 + $0x1d0] sm:$0xff]  ;;  %vm3041_vm7 = vmmov %vm3040_vm2  ;;  %s2180_s25 = smov 40  }
 0x22e   :  { %1202 = vst [vmem:[#allocation3 + $0x218] sm:$0xf0] %v1188_v46  ;;  %1203 = vst [vmem:[#allocation3 + $0x220] sm:$0xf0] %v1189_v50  ;;  %981 = vrot.lane.b32.xlu0 %v2518_v6, %s2157_s28  ;;  %1674 = vmatprep.subr.mxu1 %v1544_v28 }
 0x22f   :  { %v929_v52 = vpop.permute.xlu1 %928  ;;  %1675 = vmatpush1.msra.mxu1 %v1543_v42 }
 0x230   :  { %v927_v43 = vpop.permute.xlu0 %926 }
 0x231   :  { %1131 = vrot.lane.b32.xlu1 %v1416_v41, %s2154_s24  ;;  %v937_v54 = vsel %vm934_vm0, %v2614_v51, %v927_v43  ;;  %v938_v37 = vsel %vm934_vm0, %v927_v43, %v929_v52  ;;  %s2179_s24 = smov 32  }
 0x232   :  { %950 = vst [vmem:[#allocation3 + $0x198] sm:$0xf] %v937_v54  ;;  %951 = vst [vmem:[#allocation3 + $0x1a0] sm:$0xf] %v938_v37  ;;  %1081 = vrot.lane.b32.xlu0 %v2518_v6, %s2128_s26  ;;  %s2167_s26 = smov 116  }
 0x233   :  { %v976_v36 = vpop.permute.xlu1 %975 }
 0x234   :  { %v974_v53 = vpop.permute.xlu0 %973 }
 0x235   :  { %1231 = vrot.lane.b32.xlu1 %v1416_v41, %s2150_s0  ;;  %v986_v56 = vsel %vm983_vm1, %v2622_v55, %v974_v53  ;;  %v987_v5 = vsel %vm983_vm1, %v974_v53, %v976_v36  ;;  %v1552_v3 = vld [vmem:[#allocation3 + $0x220] sm:$0xff]  ;;  %v1551_v58 = vld [vmem:[#allocation3 + $0x218] sm:$0xff] }
 0x236   :  { %1000 = vst [vmem:[#allocation3 + $0x198] sm:$0xf0] %v986_v56  ;;  %1001 = vst [vmem:[#allocation3 + $0x1a0] sm:$0xf0] %v987_v5  ;;  %1181 = vrot.lane.b32.xlu0 %v2518_v6, %s2152_s21  ;;  %1743 = vmatprep.subr.mxu0 %v1552_v3 }
 0x237   :  { %v1030_v51 = vpop.permute.xlu1 %1029  ;;  %1744 = vmatpush1.msra.mxu0 %v1551_v58 }
 0x238   :  { %v1028_v59 = vpop.permute.xlu0 %1027 }
 0x239   :  { %1331 = vrot.lane.b32.xlu1 %v1416_v41, %s2124_s22  ;;  %v1038_v15 = vsel %vm1033_vm14, %v2851_v12, %v1028_v59  ;;  %v1039_v55 = vsel %vm1033_vm14, %v1028_v59, %v1030_v51  ;;  %vm3047_vm14 = vmmov %vm3038_vm5  ;;  %s2166_s22 = smov 120  }
 0x23a   :  { %1052 = vst [vmem:[#allocation3 + $0x1e0] sm:$0xf] %v1038_v15  ;;  %1053 = vst [vmem:[#allocation3 + $0x1e8] sm:$0xf] %v1039_v55  ;;  %1281 = vrot.lane.b32.xlu0 %v2518_v6, %s2148_s20  ;;  %s2177_s20 = smov 52  }
 0x23b   :  { %v1080_v60 = vpop.permute.xlu1 %1079 }
 0x23c   :  { %v1078_v62 = vpop.permute.xlu0 %1077 }
 0x23d   :  { %1381 = vrot.lane.b32.xlu1 %v2518_v6, %s2147_s19  ;;  %v1088_v26 = vsel %vm1083_vm9, %v2860_v29, %v1078_v62  ;;  %v1089_v63 = vsel %vm1083_vm9, %v1078_v62, %v1080_v60  ;;  %v1538_v2 = vld [vmem:[#allocation3 + $0x1a0] sm:$0xff]  ;;  %v1537_v40 = vld [vmem:[#allocation3 + $0x198] sm:$0xff]  ;;  %vm3042_vm9 = vcmask 859136   ;;  %s2176_s19 = smov 56  }
 0x23e   :  { %1102 = vst [vmem:[#allocation3 + $0x1e0] sm:$0xf0] %v1088_v26  ;;  %1103 = vst [vmem:[#allocation3 + $0x1e8] sm:$0xf0] %v1089_v63  ;;  %1431 = vrot.lane.b32.xlu0 %v1416_v41, %s2153_s23  ;;  %1676 = vmatprep.subr.mxu1 %v1538_v2 }
 0x23f   :  { %v837_v14 = vpop.permute.xlu1 %836  ;;  %1677 = vmatpush1.msra.mxu1 %v1537_v40 }
 0x240   :  { %v835_v25 = vpop.permute.xlu0 %834 }
 0x241   :  { %v844_v7 = vsel %vm187_vm15, %v2636_v1, %v835_v25  ;;  %v845_v6 = vsel %vm187_vm15, %v835_v25, %v837_v14 }
 0x242   :  { %857 = vst [vmem:[#allocation3 + $0x160] sm:$0xf] %v844_v7  ;;  %858 = vst [vmem:[#allocation3 + $0x168] sm:$0xf] %v845_v6 }
 0x243   :  { %v883_v11 = vpop.permute.xlu1 %882 }
 0x244   :  { %v881_v13 = vpop.permute.xlu0 %880 }
 0x245   :  { %v891_v16 = vsel %vm888_vm3, %v2644_v8, %v881_v13  ;;  %v892_v19 = vsel %vm888_vm3, %v881_v13, %v883_v11  ;;  %v1546_v12 = vld [vmem:[#allocation3 + $0x1e8] sm:$0xff]  ;;  %v1545_v22 = vld [vmem:[#allocation3 + $0x1e0] sm:$0xff] }
 0x246   :  { %904 = vst [vmem:[#allocation3 + $0x160] sm:$0xf0] %v891_v16  ;;  %905 = vst [vmem:[#allocation3 + $0x168] sm:$0xf0] %v892_v19  ;;  %1745 = vmatprep.subr.mxu0 %v1546_v12 }
 0x247   :  { %v933_v48 = vpop.permute.xlu1 %932  ;;  %1746 = vmatpush1.msra.mxu0 %v1545_v22 }
 0x248   :  { %v931_v24 = vpop.permute.xlu0 %930 }
 0x249   :  { %v939_v1 = vsel %vm934_vm0, %v929_v52, %v931_v24  ;;  %v940_v27 = vsel %vm934_vm0, %v931_v24, %v933_v48  ;;  %vm3048_vm0 = vmmov %vm3040_vm2 }
 0x24a   :  { %952 = vst [vmem:[#allocation3 + $0x1a8] sm:$0xf] %v939_v1  ;;  %953 = vst [vmem:[#allocation3 + $0x1b0] sm:$0xf] %v940_v27 }
 0x24b   :  { %v980_v29 = vpop.permute.xlu1 %979 }
 0x24c   :  { %v978_v0 = vpop.permute.xlu0 %977 }
 0x24d   :  { %v988_v8 = vsel %vm983_vm1, %v976_v36, %v978_v0  ;;  %v989_v10 = vsel %vm983_vm1, %v978_v0, %v980_v29  ;;  %v1532_v23 = vld [vmem:[#allocation3 + $0x168] sm:$0xff]  ;;  %v1531_v20 = vld [vmem:[#allocation3 + $0x160] sm:$0xff]  ;;  %vm3049_vm1 = vmmov %vm3048_vm0 }
 0x24e   :  { %1002 = vst [vmem:[#allocation3 + $0x1a8] sm:$0xf0] %v988_v8  ;;  %1003 = vst [vmem:[#allocation3 + $0x1b0] sm:$0xf0] %v989_v10  ;;  %1678 = vmatprep.subr.mxu1 %v1532_v23 }
 0x24f   :  { %v744_v17 = vpop.permute.xlu1 %743  ;;  %1679 = vmatpush1.msra.mxu1 %v1531_v20 }
 0x250   :  { %v742_v35 = vpop.permute.xlu0 %741 }
 0x251   :  { %v752_v38 = vsel %vm3038_vm5, %v2658_v21, %v742_v35  ;;  %v753_v49 = vsel %vm3039_vm10, %v742_v35, %v744_v17  ;;  %vm3052_vm10 = vmmov %vm3042_vm9 }
 0x252   :  { %765 = vst [vmem:[#allocation3 + $0x128] sm:$0xf] %v752_v38  ;;  %766 = vst [vmem:[#allocation3 + $0x130] sm:$0xf] %v753_v49 }
 0x253   :  { %v791_v39 = vpop.permute.xlu1 %790 }
 0x254   :  { %v789_v45 = vpop.permute.xlu0 %788 }
 0x255   :  { %v799_v33 = vsel %vm3040_vm2, %v2666_v31, %v789_v45  ;;  %v800_v41 = vsel %vm3041_vm7, %v789_v45, %v791_v39  ;;  %v1540_v34 = vld [vmem:[#allocation3 + $0x1b0] sm:$0xff]  ;;  %v1539_v44 = vld [vmem:[#allocation3 + $0x1a8] sm:$0xff]  ;;  %vm3053_vm2 = vmmov %vm3042_vm9 }
 0x256   :  { %812 = vst [vmem:[#allocation3 + $0x128] sm:$0xf0] %v799_v33  ;;  %813 = vst [vmem:[#allocation3 + $0x130] sm:$0xf0] %v800_v41  ;;  %1747 = vmatprep.subr.mxu0 %v1540_v34 }
 0x257   :  { %v841_v46 = vpop.permute.xlu1 %840  ;;  %1748 = vmatpush1.msra.mxu0 %v1539_v44  ;;  %vm3054_vm7 = vmmov %vm3045_vm6 }
 0x258   :  { %v839_v50 = vpop.permute.xlu0 %838 }
 0x259   :  { %v846_v21 = vsel %vm187_vm15, %v837_v14, %v839_v50  ;;  %v847_v28 = vsel %vm187_vm15, %v839_v50, %v841_v46  ;;  %vm3043_vm15 = vmmov %vm3042_vm9 }
 0x25a   :  { %859 = vst [vmem:[#allocation3 + $0x170] sm:$0xf] %v846_v21  ;;  %860 = vst [vmem:[#allocation3 + $0x178] sm:$0xf] %v847_v28 }
 0x25b   :  { %v887_v42 = vpop.permute.xlu1 %886 }
 0x25c   :  { %v885_v52 = vpop.permute.xlu0 %884 }
 0x25d   :  { %v893_v31 = vsel %vm888_vm3, %v883_v11, %v885_v52  ;;  %v894_v43 = vsel %vm888_vm3, %v885_v52, %v887_v42  ;;  %v1526_v54 = vld [vmem:[#allocation3 + $0x130] sm:$0xff]  ;;  %v1525_v37 = vld [vmem:[#allocation3 + $0x128] sm:$0xff]  ;;  %vm3050_vm3 = vcmask 867328  }
 0x25e   :  { %906 = vst [vmem:[#allocation3 + $0x170] sm:$0xf0] %v893_v31  ;;  %907 = vst [vmem:[#allocation3 + $0x178] sm:$0xf0] %v894_v43  ;;  %1680 = vmatprep.subr.mxu1 %v1526_v54 }
 0x25f   :  { %v651_v36 = vpop.permute.xlu1 %650  ;;  %1681 = vmatpush1.msra.mxu1 %v1525_v37  ;;  %vm3051_vm5 = vmmov %vm3050_vm3 }
 0x260   :  { %v649_v53 = vpop.permute.xlu0 %648 }
 0x261   :  { %v659_v56 = vsel %vm3042_vm9, %v2680_v32, %v649_v53  ;;  %v660_v5 = vsel %vm3043_vm15, %v649_v53, %v651_v36  ;;  %vm3055_vm9 = vmmov %vm3045_vm6 }
 0x262   :  { %672 = vst [vmem:[#allocation3 + $0xf0] sm:$0xf] %v659_v56  ;;  %673 = vst [vmem:[#allocation3 + $0xf8] sm:$0xf] %v660_v5 }
 0x263   :  { %v698_v3 = vpop.permute.xlu1 %697  ;;  %vm3056_vm15 = vmmov %vm3050_vm3 }
 0x264   :  { %v696_v58 = vpop.permute.xlu0 %695 }
 0x265   :  { %v706_v51 = vsel %vm3044_vm12, %v2690_v47, %v696_v58  ;;  %v707_v59 = vsel %vm3045_vm6, %v696_v58, %v698_v3  ;;  %v1534_v15 = vld [vmem:[#allocation3 + $0x178] sm:$0xff]  ;;  %v1533_v55 = vld [vmem:[#allocation3 + $0x170] sm:$0xff]  ;;  %vm3057_vm12 = vmmov %vm3050_vm3  ;;  %vm3058_vm6 = vcmask 1022976  }
 0x266   :  { %719 = vst [vmem:[#allocation3 + $0xf0] sm:$0xf0] %v706_v51  ;;  %720 = vst [vmem:[#allocation3 + $0xf8] sm:$0xf0] %v707_v59  ;;  %1749 = vmatprep.subr.mxu0 %v1534_v15 }
 0x267   :  { %v748_v60 = vpop.permute.xlu1 %747  ;;  %1750 = vmatpush1.msra.mxu0 %v1533_v55 }
 0x268   :  { %v746_v62 = vpop.permute.xlu0 %745 }
 0x269   :  { %v754_v32 = vsel %vm3046_vm13, %v744_v17, %v746_v62  ;;  %v755_v26 = vsel %vm3047_vm14, %v746_v62, %v748_v60  ;;  %vm1808_vm14 = vcmask 257152  }
 0x26a   :  { %767 = vst [vmem:[#allocation3 + $0x138] sm:$0xf] %v754_v32  ;;  %768 = vst [vmem:[#allocation3 + $0x140] sm:$0xf] %v755_v26 }
 0x26b   :  { %v795_v63 = vpop.permute.xlu1 %794 }
 0x26c   :  { %v793_v2 = vpop.permute.xlu0 %792 }
 0x26d   :  { %v801_v47 = vsel %vm3048_vm0, %v791_v39, %v793_v2  ;;  %v802_v40 = vsel %vm3049_vm1, %v793_v2, %v795_v63  ;;  %v1520_v14 = vld [vmem:[#allocation3 + $0xf8] sm:$0xff]  ;;  %v1519_v25 = vld [vmem:[#allocation3 + $0xf0] sm:$0xff]  ;;  %vm1813_vm0 = vcmask 388352   ;;  %vm1818_vm1 = vcmask 519552  }
 0x26e   :  { %814 = vst [vmem:[#allocation3 + $0x138] sm:$0xf0] %v801_v47  ;;  %815 = vst [vmem:[#allocation3 + $0x140] sm:$0xf0] %v802_v40  ;;  %1682 = vmatprep.subr.mxu1 %v1520_v14  ;;  %v1496_v63 = vld [vmem:[#allocation3 + $0x18] sm:$0xff]  ;;  %v1495_v47 = vld [vmem:[#allocation3 + $0x10] sm:$0xff] }
 0x26f   :  { %v558_v7 = vpop.permute.xlu1 %557  ;;  %1683 = vmatpush1.msra.mxu1 %v1519_v25 }
 0x270   :  { %v556_v6 = vpop.permute.xlu0 %555 }
 0x271   :  { %v566_v11 = vsel %vm563_vm4, %v2707_v57, %v556_v6  ;;  %v567_v13 = vsel %vm563_vm4, %v556_v6, %v558_v7 }
 0x272   :  { %579 = vst [vmem:[#allocation3 + $0xb8] sm:$0xf] %v566_v11  ;;  %580 = vst [vmem:[#allocation3 + $0xc0] sm:$0xf] %v567_v13 }
 0x273   :  { %v605_v16 = vpop.permute.xlu1 %604 }
 0x274   :  { %v603_v19 = vpop.permute.xlu0 %602 }
 0x275   :  { %v613_v12 = vsel %vm3050_vm3, %v2715_v61, %v603_v19  ;;  %v614_v22 = vsel %vm3051_vm5, %v603_v19, %v605_v16  ;;  %v1528_v48 = vld [vmem:[#allocation3 + $0x140] sm:$0xff]  ;;  %v1527_v24 = vld [vmem:[#allocation3 + $0x138] sm:$0xff]  ;;  %vm1823_vm3 = vcmask 650752   ;;  %vm1828_vm5 = vcmask 781952  }
 0x276   :  { %626 = vst [vmem:[#allocation3 + $0xb8] sm:$0xf0] %v613_v12  ;;  %627 = vst [vmem:[#allocation3 + $0xc0] sm:$0xf0] %v614_v22  ;;  %1751 = vmatprep.subr.mxu0 %v1528_v48  ;;  %v1498_v48 = vld [vmem:[#allocation3 + $0x28] sm:$0xff] }
 0x277   :  { %v655_v1 = vpop.permute.xlu1 %654  ;;  %1752 = vmatpush1.msra.mxu0 %v1527_v24 }
 0x278   :  { %v653_v27 = vpop.permute.xlu0 %652 }
 0x279   :  { %v661_v57 = vsel %vm3052_vm10, %v651_v36, %v653_v27  ;;  %v662_v29 = vsel %vm3053_vm2, %v653_v27, %v655_v1  ;;  %v1497_v1 = vld [vmem:[#allocation3 + $0x20] sm:$0xff]  ;;  %vm1837_vm10 = vcmask 913152   ;;  %vm1842_vm2 = vcmask 1044352  }
 0x27a   :  { %674 = vst [vmem:[#allocation3 + $0x100] sm:$0xf] %v661_v57  ;;  %675 = vst [vmem:[#allocation3 + $0x108] sm:$0xf] %v662_v29 }
 0x27b   :  { %v702_v0 = vpop.permute.xlu1 %701 }
 0x27c   :  { %v700_v8 = vpop.permute.xlu0 %699 }
 0x27d   :  { %v708_v61 = vsel %vm3054_vm7, %v698_v3, %v700_v8  ;;  %v709_v10 = vsel %vm3055_vm9, %v700_v8, %v702_v0  ;;  %v1514_v23 = vld [vmem:[#allocation3 + $0xc0] sm:$0xff]  ;;  %v1513_v20 = vld [vmem:[#allocation3 + $0xb8] sm:$0xff]  ;;  %vm1900_vm9 = vcmask 621568  }
 0x27e   :  { %721 = vst [vmem:[#allocation3 + $0x100] sm:$0xf0] %v708_v61  ;;  %722 = vst [vmem:[#allocation3 + $0x108] sm:$0xf0] %v709_v10  ;;  %1684 = vmatprep.subr.mxu1 %v1514_v23 }
 0x27f   :  { %v465_v17 = vpop.permute.xlu1 %464  ;;  %1685 = vmatpush1.msra.mxu1 %v1513_v20 }
 0x280   :  { %v463_v35 = vpop.permute.xlu0 %462 }
 0x281   :  { %v473_v38 = vsel %vm470_vm11, %v2729_v9, %v463_v35  ;;  %v474_v49 = vsel %vm470_vm11, %v463_v35, %v465_v17 }
 0x282   :  { %486 = vst [vmem:[#allocation3 + $0x80] sm:$0xf] %v473_v38  ;;  %487 = vst [vmem:[#allocation3 + $0x88] sm:$0xf] %v474_v49 }
 0x283   :  { %v512_v39 = vpop.permute.xlu1 %511 }
 0x284   :  { %v510_v45 = vpop.permute.xlu0 %509 }
 0x285   :  { %v520_v33 = vsel %vm517_vm8, %v2736_v18, %v510_v45  ;;  %v521_v41 = vsel %vm517_vm8, %v510_v45, %v512_v39  ;;  %v1522_v34 = vld [vmem:[#allocation3 + $0x108] sm:$0xff]  ;;  %v1521_v44 = vld [vmem:[#allocation3 + $0x100] sm:$0xff] }
 0x286   :  { %533 = vst [vmem:[#allocation3 + $0x80] sm:$0xf0] %v520_v33  ;;  %534 = vst [vmem:[#allocation3 + $0x88] sm:$0xf0] %v521_v41  ;;  %1753 = vmatprep.subr.mxu0 %v1522_v34 }
 0x287   :  { %v562_v46 = vpop.permute.xlu1 %561  ;;  %1754 = vmatpush1.msra.mxu0 %v1521_v44 }
 0x288   :  { %v560_v50 = vpop.permute.xlu0 %559 }
 0x289   :  { %v568_v9 = vsel %vm563_vm4, %v558_v7, %v560_v50  ;;  %v569_v21 = vsel %vm563_vm4, %v560_v50, %v562_v46  ;;  %vm3059_vm4 = vmmov %vm3058_vm6 }
 0x28a   :  { %581 = vst [vmem:[#allocation3 + $0xc8] sm:$0xf] %v568_v9  ;;  %582 = vst [vmem:[#allocation3 + $0xd0] sm:$0xf] %v569_v21 }
 0x28b   :  { %v609_v28 = vpop.permute.xlu1 %608  ;;  %vm3061_vm13 = vmmov %vm3059_vm4 }
 0x28c   :  { %v607_v42 = vpop.permute.xlu0 %606 }
 0x28d   :  { %v615_v18 = vsel %vm3056_vm15, %v605_v16, %v607_v42  ;;  %v616_v52 = vsel %vm3057_vm12, %v607_v42, %v609_v28  ;;  %v1508_v31 = vld [vmem:[#allocation3 + $0x88] sm:$0xff]  ;;  %v1507_v43 = vld [vmem:[#allocation3 + $0x80] sm:$0xff] }
 0x28e   :  { %628 = vst [vmem:[#allocation3 + $0xc8] sm:$0xf0] %v615_v18  ;;  %629 = vst [vmem:[#allocation3 + $0xd0] sm:$0xf0] %v616_v52  ;;  %1686 = vmatprep.subr.mxu1 %v1508_v31 }
 0x28f   :  { %v419_v54 = vpop.permute.xlu1 %418  ;;  %1687 = vmatpush1.msra.mxu1 %v1507_v43 }
 0x290   :  { %v417_v37 = vpop.permute.xlu0 %416 }
 0x291   :  { %v427_v36 = vsel %vm3058_vm6, %v2609_v30, %v417_v37  ;;  %v428_v53 = vsel %vm3059_vm4, %v417_v37, %v419_v54 }
 0x292   :  { %440 = vst [vmem:[#allocation3 + $0x48] sm:$0xf0] %v427_v36  ;;  %441 = vst [vmem:[#allocation3 + $0x50] sm:$0xf0] %v428_v53 }
 0x293   :  { %v469_v56 = vpop.permute.xlu1 %468 }
 0x294   :  { %v467_v5 = vpop.permute.xlu0 %466 }
 0x295   :  { %v475_v3 = vsel %vm470_vm11, %v465_v17, %v467_v5  ;;  %v476_v58 = vsel %vm470_vm11, %v467_v5, %v469_v56  ;;  %v1516_v51 = vld [vmem:[#allocation3 + $0xd0] sm:$0xff]  ;;  %v1515_v59 = vld [vmem:[#allocation3 + $0xc8] sm:$0xff]  ;;  %vm3060_vm11 = vmmov %vm3059_vm4 }
 0x296   :  { %488 = vst [vmem:[#allocation3 + $0x90] sm:$0xf] %v475_v3  ;;  %489 = vst [vmem:[#allocation3 + $0x98] sm:$0xf] %v476_v58  ;;  %1755 = vmatprep.subr.mxu0 %v1516_v51 }
 0x297   :  { %v516_v15 = vpop.permute.xlu1 %515  ;;  %1756 = vmatpush1.msra.mxu0 %v1515_v59 }
 0x298   :  { %v514_v55 = vpop.permute.xlu0 %513 }
 0x299   :  { %v522_v30 = vsel %vm517_vm8, %v512_v39, %v514_v55  ;;  %v523_v60 = vsel %vm517_vm8, %v514_v55, %v516_v15  ;;  %v1502_v62 = vld [vmem:[#allocation3 + $0x50] sm:$0xff]  ;;  %v1501_v32 = vld [vmem:[#allocation3 + $0x48] sm:$0xff]  ;;  %vm1802_vm8 = vcmask 125952  }
 0x29a   :  { %535 = vst [vmem:[#allocation3 + $0x90] sm:$0xf0] %v522_v30  ;;  %536 = vst [vmem:[#allocation3 + $0x98] sm:$0xf0] %v523_v60  ;;  %1688 = vmatprep.subr.mxu1 %v1502_v62 }
 0x29b   :  { %v423_v26 = vpop.permute.xlu1 %422  ;;  %1689 = vmatpush1.msra.mxu1 %v1501_v32 }
 0x29c   :  { %v421_v2 = vpop.permute.xlu0 %420  ;;  %1690 = vmatprep.subr.mxu1 %v1496_v63 }
 0x29d   :  { %v429_v40 = vsel %vm3060_vm11, %v419_v54, %v421_v2  ;;  %v430_v14 = vsel %vm3061_vm13, %v421_v2, %v423_v26  ;;  %1691 = vmatpush1.msra.mxu1 %v1495_v47 }
 0x29e   :  { %442 = vst [vmem:[#allocation3 + $0x58] sm:$0xf0] %v429_v40  ;;  %443 = vst [vmem:[#allocation3 + $0x60] sm:$0xf0] %v430_v14  ;;  %1725 = vmatmul.mubr.f32.vlgmr.msra.gmra.mxu1 %v2780_v4 }
 0x29f   :  { %v1032_v25 = vpop.permute.xlu1 %1031 }
 0x2a0   :  { %v982_v7 = vpop.permute.xlu0 %981 }
 0x2a1   :  { %v1510_v6 = vld [vmem:[#allocation3 + $0x98] sm:$0xff]  ;;  %v1509_v11 = vld [vmem:[#allocation3 + $0x90] sm:$0xff] }
 0x2a2   :  { %1757 = vmatprep.subr.mxu0 %v1510_v6 }
 0x2a3   :  { %v1132_v13 = vpop.permute.xlu1 %1131  ;;  %1758 = vmatpush1.msra.mxu0 %v1509_v11 }
 0x2a4   :  { %v1082_v16 = vpop.permute.xlu0 %1081 }
 0x2a5   :  { %v1504_v19 = vld [vmem:[#allocation3 + $0x60] sm:$0xff]  ;;  %v1503_v12 = vld [vmem:[#allocation3 + $0x58] sm:$0xff] }
 0x2a6   :  { %1759 = vmatprep.subr.mxu0 %v1504_v19 }
 0x2a7   :  { %v1232_v22 = vpop.permute.xlu1 %1231  ;;  %1760 = vmatpush1.msra.mxu0 %v1503_v12 }
 0x2a8   :  { %1761 = vmatprep.subr.mxu0 %v1498_v48  ;;  %v1182_v24 = vpop.permute.xlu0 %1181 }
 0x2a9   :  { %1762 = vmatpush1.msra.mxu0 %v1497_v1 }
 0x2aa   :  { %1796 = vmatmul.mubr.f32.vlgmr.msra.gmra.mxu0 %v2780_v4 }
 0x2ab   :  { %v1332_v27 = vpop.permute.xlu1 %1331 }
 0x2ac   :  { %v1282_v57 = vpop.permute.xlu0 %1281 }
 0x2af   :  { %v1382_v29 = vpop.permute.xlu1 %1381 }
 0x2b0   :  { %v1432_v0 = vpop.permute.xlu0 %1431 }
 0x2bc   :  { %v1655_v8 = vpop.f32.mrf.mxu0 }
 0x2bd   :  { %1810 = vrot.lane.b32.xlu0 %v1655_v8, %s2166_s22  ;;  %1805 = vrot.lane.b32.xlu1 %v1655_v8, %s2164_s9  ;;  %1803 = vst.msk [vmem:[#allocation9] sm:$0xf] %vm1802_vm8, %v1655_v8 }
 0x2be   :  { %v1657_v61 = vpop.f32.mrf.mxu0 }
 0x2bf   :  { %v1831_v44 = vcombine.low %v1655_v8, %v1657_v61 }
 0x2c1   :  { %1815 = vrot.lane.b32.xlu0 %v1655_v8, %s2167_s26  ;;  %1820 = vrot.lane.b32.xlu1 %v1655_v8, %s2168_s29 }
 0x2c5   :  { %1825 = vrot.lane.b32.xlu0 %v1655_v8, %s2165_s10  ;;  %1852 = vrot.lane.b32.xlu1 %v1657_v61, %s2159_s3 }
 0x2c9   :  { %1844 = vrot.lane.b32.xlu0 %v1657_v61, %s2169_s7 }
 0x2cd   :  { %1848 = vrot.lane.b32.xlu0 %v1657_v61, %s2170_s11 }
 0x2d1   :  { %1856 = vrot.lane.b32.xlu0 %v1657_v61, %s2156_s27 }
 0x2d5   :  { %1860 = vrot.lane.b32.xlu0 %v1657_v61, %s2171_s14 }
 0x32f   :  { %v1811_v4 = vpop.permute.xlu0 %1810  ;;  %v1806_v10 = vpop.permute.xlu1 %1805 }
 0x330   :  { %1809 = vst.msk [vmem:[#allocation9] sm:$0xf] %vm1808_vm14, %v1806_v10 }
 0x331   :  { %1814 = vst.msk [vmem:[#allocation9] sm:$0xf] %vm1813_vm0, %v1811_v4 }
 0x333   :  { %v1816_v23 = vpop.permute.xlu0 %1815  ;;  %v1821_v20 = vpop.permute.xlu1 %1820 }
 0x334   :  { %1819 = vst.msk [vmem:[#allocation9] sm:$0xf] %vm1818_vm1, %v1816_v23 }
 0x335   :  { %1824 = vst.msk [vmem:[#allocation9] sm:$0xf] %vm1823_vm3, %v1821_v20 }
 0x337   :  { %v1826_v17 = vpop.permute.xlu0 %1825  ;;  %v1853_v38 = vpop.permute.xlu1 %1852 }
 0x338   :  { %1829 = vst.msk [vmem:[#allocation9] sm:$0xf] %vm1828_vm5, %v1826_v17 }
 0x33b   :  { %v1845_v35 = vpop.permute.xlu0 %1844 }
 0x33c   :  { %1847 = vst.msk [vmem:[#allocation9 + $0x4] sm:$0xf] %vm1802_vm8, %v1845_v35 }
 0x33f   :  { %v1849_v49 = vpop.permute.xlu0 %1848 }
 0x340   :  { %1851 = vst.msk [vmem:[#allocation9 + $0x4] sm:$0xf] %vm1808_vm14, %v1849_v49 }
 0x341   :  { %1855 = vst.msk [vmem:[#allocation9 + $0x4] sm:$0xf] %vm1813_vm0, %v1853_v38 }
 0x343   :  { %v1857_v39 = vpop.permute.xlu0 %1856 }
 0x344   :  { %1859 = vst.msk [vmem:[#allocation9 + $0x4] sm:$0xf] %vm1818_vm1, %v1857_v39 }
 0x347   :  { %v1861_v45 = vpop.permute.xlu0 %1860 }
 0x348   :  { %1863 = vst.msk [vmem:[#allocation9 + $0x4] sm:$0xf] %vm1823_vm3, %v1861_v45 }
 0x35e   :  { %v1726_v33 = vpop.f32.mrf.mxu1 }
 0x35f   :  { %1869 = vrot.lane.b32.xlu0 %v1726_v33, %s2172_s15  ;;  %1865 = vrot.lane.b32.xlu1 %v1726_v33, %s2173_s16 }
 0x360   :  { %v1728_v41 = vpop.f32.mrf.mxu1 }
 0x363   :  { %1873 = vrot.lane.b32.xlu0 %v1726_v33, %s2157_s28  ;;  %1839 = vrot.lane.b32.xlu1 %v1657_v61, %s2174_s17 }
 0x367   :  { %1887 = vrot.lane.b32.xlu0 %v1728_v41, %s2156_s27  ;;  %1878 = vrot.lane.b32.xlu1 %v1728_v41, %s2170_s11 }
 0x36a   :  { %v1797_v34 = vpop.f32.mrf.mxu0 }
 0x36b   :  { %1916 = vrot.lane.b32.xlu0 %v1797_v34, %s2175_s18  ;;  %1883 = vrot.lane.b32.xlu1 %v1728_v41, %s2159_s3  ;;  %v1896_v46 = vcombine.low %v1728_v41, %v1797_v34 }
 0x36c   :  { %v1799_v50 = vpop.f32.mrf.mxu0 }
 0x36f   :  { %1904 = vrot.lane.b32.xlu0 %v1797_v34, %s2172_s15  ;;  %1832 = vrot.lane.b32.xlu1 %v1831_v44, %s2162_s6 }
 0x373   :  { %1891 = vrot.lane.b32.xlu1 %v1728_v41, %s2171_s14  ;;  %1897 = vrot.lane.b32.xlu0 %v1896_v46, %s2173_s16 }
 0x377   :  { %1920 = vrot.lane.b32.xlu1 %v1797_v34, %s2176_s19  ;;  %1929 = vrot.lane.b32.xlu0 %v1799_v50, %s2150_s0  ;;  %s2181_s0 = smov [#allocation9]  }
 0x37b   :  { %1924 = vrot.lane.b32.xlu1 %v1797_v34, %s2177_s20  ;;  %1941 = vrot.lane.b32.xlu0 %v1799_v50, %s2178_s1 }
 0x37f   :  { %1908 = vrot.lane.b32.xlu1 %v1797_v34, %s2157_s28  ;;  %1945 = vrot.lane.b32.xlu0 %v1799_v50, %s2179_s24 }
 0x383   :  { %1933 = vrot.lane.b32.xlu1 %v1799_v50, %s2153_s23 }
 0x387   :  { %1937 = vrot.lane.b32.xlu1 %v1799_v50, %s2180_s25 }
 0x38b   :  { %1912 = vrot.lane.b32.xlu1 %v1797_v34, %s2152_s21  ;;  %s1954_s21 = sshll.u32 %s2181_s0, 4  ;;  %s1955_s21 = int_to_ptr.vmem [resolvable:$true] %s1954_s21 }
 0x38c   :  { %s2090_s23 = scalar_lea.vmem %s1955_s21, 256  ;;  %p2095_p11 = scmp.lt.s32.totalorder %s1955_s21, %s1955_s21 }
 0x38d   :  { %p2091_p10 = scmp.ne.s32.totalorder %s1955_s21, %s2090_s23  ;;  %p2096_p12 = scmp.lt.s32.totalorder %s2090_s23, %s2090_s23 }
 0x38f   :  { %p2097_p13 = por %p2096_p12, %p2095_p11 }
 0x391   :  { %p2098_p0 = pnand %p2097_p13, %p2091_p10 }
 0x3d1   :  { %v1870_v9 = vpop.permute.xlu0 %1869  ;;  %v1866_v21 = vpop.permute.xlu1 %1865 }
 0x3d2   :  { %1868 = vst.msk [vmem:[#allocation9 + $0x4] sm:$0xf] %vm1828_vm5, %v1866_v21 }
 0x3d3   :  { %1872 = vst.msk [vmem:[#allocation9 + $0x4] sm:$0xf] %vm1837_vm10, %v1870_v9 }
 0x3d5   :  { %v1874_v28 = vpop.permute.xlu0 %1873  ;;  %v1840_v42 = vpop.permute.xlu1 %1839 }
 0x3d6   :  { %1876 = vst.msk [vmem:[#allocation9 + $0x4] sm:$0xf] %vm1842_vm2, %v1874_v28 }
 0x3d9   :  { %v1888_v18 = vpop.permute.xlu0 %1887  ;;  %v1879_v52 = vpop.permute.xlu1 %1878 }
 0x3da   :  { %1882 = vst.msk [vmem:[#allocation9 + $0x8] sm:$0xf] %vm1802_vm8, %v1879_v52 }
 0x3dd   :  { %v1917_v31 = vpop.permute.xlu0 %1916  ;;  %v1884_v43 = vpop.permute.xlu1 %1883 }
 0x3de   :  { %1919 = vst.msk [vmem:[#allocation9 + $0xc] sm:$0xf] %vm1802_vm8, %v1917_v31 }
 0x3df   :  { %1886 = vst.msk [vmem:[#allocation9 + $0x8] sm:$0xf] %vm1808_vm14, %v1884_v43 }
 0x3e0   :  { %1890 = vst.msk [vmem:[#allocation9 + $0x8] sm:$0xf] %vm1813_vm0, %v1888_v18 }
 0x3e1   :  { %v1905_v54 = vpop.permute.xlu0 %1904  ;;  %v1833_v37 = vpop.permute.xlu1 %1832 }
 0x3e2   :  { %v1834_v36 = vrot.slane %v1833_v37, 4 }
 0x3e4   :  { %v1835_v53 = vsel %vm3054_vm7, %v1833_v37, %v1834_v36 }
 0x3e5   :  { %1838 = vst.msk [vmem:[#allocation9] sm:$0xf] %vm1837_vm10, %v1835_v53  ;;  %v1892_v56 = vpop.permute.xlu1 %1891  ;;  %v1898_v5 = vpop.permute.xlu0 %1897 }
 0x3e6   :  { %1843 = vst.msk [vmem:[#allocation9] sm:$0xf] %vm1842_vm2, %v1840_v42  ;;  %v1899_v3 = vrot.slane %v1898_v5, 4 }
 0x3e7   :  { %1894 = vst.msk [vmem:[#allocation9 + $0x8] sm:$0xf] %vm1818_vm1, %v1892_v56 }
 0x3e8   :  { %v1901_v58 = vsel %vm1900_vm9, %v1898_v5, %v1899_v3 }
 0x3e9   :  { %1903 = vst.msk [vmem:[#allocation9 + $0x8] sm:$0xf] %vm1823_vm3, %v1901_v58  ;;  %v1921_v51 = vpop.permute.xlu1 %1920  ;;  %v1930_v15 = vpop.permute.xlu0 %1929 }
 0x3ea   :  { %1907 = vst.msk [vmem:[#allocation9 + $0x8] sm:$0xf] %vm1828_vm5, %v1905_v54 }
 0x3eb   :  { %1923 = vst.msk [vmem:[#allocation9 + $0xc] sm:$0xf] %vm1808_vm14, %v1921_v51 }
 0x3ed   :  { %v1925_v59 = vpop.permute.xlu1 %1924  ;;  %v1942_v30 = vpop.permute.xlu0 %1941 }
 0x3ee   :  { %1927 = vst.msk [vmem:[#allocation9 + $0xc] sm:$0xf] %vm1813_vm0, %v1925_v59 }
 0x3ef   :  { %1932 = vst.msk [vmem:[#allocation9 + $0xc] sm:$0xf] %vm1818_vm1, %v1930_v15 }
 0x3f1   :  { %v1909_v55 = vpop.permute.xlu1 %1908  ;;  %v1946_v32 = vpop.permute.xlu0 %1945 }
 0x3f2   :  { %1911 = vst.msk [vmem:[#allocation9 + $0x8] sm:$0xf] %vm1837_vm10, %v1909_v55 }
 0x3f5   :  { %v1934_v60 = vpop.permute.xlu1 %1933 }
 0x3f6   :  { %1936 = vst.msk [vmem:[#allocation9 + $0xc] sm:$0xf] %vm1823_vm3, %v1934_v60 }
 0x3f9   :  { %v1938_v62 = vpop.permute.xlu1 %1937 }
 0x3fa   :  { %1940 = vst.msk [vmem:[#allocation9 + $0xc] sm:$0xf] %vm1828_vm5, %v1938_v62 }
 0x3fb   :  { %1944 = vst.msk [vmem:[#allocation9 + $0xc] sm:$0xf] %vm1837_vm10, %v1942_v30 }
 0x3fc   :  { %1948 = vst.msk [vmem:[#allocation9 + $0xc] sm:$0xf] %vm1842_vm2, %v1946_v32 }
 0x3fd   :  { %v1913_v26 = vpop.permute.xlu1 %1912 }
 0x3fe   :  { %1915 = vst.msk [vmem:[#allocation9 + $0x8] sm:$0xf] %vm1842_vm2, %v1913_v26 }
 0x3ff   :  { %2101 = shalt.err (!%p2098_p0)
}
 0x400   :  { %1960 = dma.vmem_to_hbm [thread:$0]  %s1955_s21, 256, %s3027_s2, [#allocation6], %s2117_s12, %s2117_s12, %s2118_s13  }
 0x401   :  { %2114 = dma.done.wait [#allocation6], 256  }
 0x402   :  { %2115 = vsyncadd [#allocation6], 4294967040 }
 0x403   :  { %1964 = vsyncpa [#allocation5], 1 }
 0x404   :  { %1965 = vsyncpa [#allocation8], 1 }
 0x405   :  { %1966 = vsyncpa [#allocation6], 1 }

</bundles_post_ra>
